<compile_context>
chip_gen: v5e
topology: v5e:2x2
jax: 0.10.0
libtpu: 0.0.40
codegen_flags: <defaults>
</compile_context>

<pallas_src>
import functools

import jax
import jax.numpy as jnp
from jax.experimental import pallas as pl
from jax.experimental.pallas import tpu as pltpu


def _layernorm(x, gamma, beta, eps=1e-5):
    mean = jnp.mean(x, axis=-1, keepdims=True)
    var = jnp.mean((x - mean) ** 2, axis=-1, keepdims=True)
    return (x - mean) * jax.lax.rsqrt(var + eps) * gamma + beta


# --------------------------- fused Pallas kernel ------------------------------

def _fused_forward_kernel(x_ref, ew1_ref, eb1_ref, ew2_ref, eb2_ref,
                          wqkv_ref, bqkv_ref, wo_ref, bo_ref,
                          g1_ref, bt1_ref, wf1_ref, bf1_ref,
                          wf2_ref, bf2_ref, g2_ref, bt2_ref,
                          wp_ref, bp_ref, wfin_ref, bfin_ref,
                          out_ref, *, num_heads):
    bf16 = jnp.bfloat16

    # ---------------- feature embedding (element-wise, f32) ----------------
    # x:   [TB, F, 1, 1]
    # ew1: [1, F, H, 1], eb1: [1, F, H, 1], ew2: [1, F, H, E], eb2: [1, F, E]
    h = jnp.maximum(x_ref[...] * ew1_ref[...] + eb1_ref[...], 0.0)    # [TB,F,H,1]
    y = jnp.sum(h * ew2_ref[...], axis=2) + eb2_ref[...]              # [TB,F,E]
    # TODO(synk): replace with two block-diagonal lane-dense matmuls once the
    # [TB, F*E] -> [TB*F, E] lane/sublane reshape lowers reliably in Mosaic.

    TB, F, E = y.shape
    S = F
    num_layers = wqkv_ref.shape[0]
    dh = E // num_heads

    # Resident activation as a [TB*S, E] slab (leading-dim merge is layout-free).
    x2 = y.reshape(TB * S, E)

    # ---------------- transformer encoder layers ----------------
    for l in range(num_layers):
        wqkv_l = wqkv_ref[l]                                          # [E, 3E] bf16
        bqkv_l = bqkv_ref[l]                                          # [1, 3E] f32

        # Fused QKV projection (softmax scale pre-folded into the Q block).
        qkv = jnp.dot(x2.astype(bf16), wqkv_l,
                      preferred_element_type=jnp.float32) + bqkv_l    # [TB*S,3E] f32

        # Multi-head self-attention.  Heads are statically unrolled: Mosaic only
        # reliably lowers dot_general with a single *leading* batch dim, and a
        # head-batched dot on these tiny tiles would unroll to the same MXU
        # pushes anyway.  wo is stored pre-split per head, so the only in-kernel
        # slices are on the computed qkv value (within one lane tile).
        attn = jnp.zeros((TB * S, E), dtype=jnp.float32)
        for hd in range(num_heads):
            lo = hd * dh
            qh = qkv[:, lo:lo + dh].reshape(TB, S, dh).astype(bf16)
            kh = qkv[:, E + lo:E + lo + dh].reshape(TB, S, dh).astype(bf16)
            vh = qkv[:, 2 * E + lo:2 * E + lo + dh].reshape(TB, S, dh).astype(bf16)
            s = jnp.einsum('bqd,bkd->bqk', qh, kh,
                           preferred_element_type=jnp.float32)        # already scaled
            s = s - jnp.max(s, axis=-1, keepdims=True)                # kept for safety
            p = jnp.exp(s)
            a = p * pl.reciprocal(jnp.sum(p, axis=-1, keepdims=True), approx=True)
            ctx = jnp.einsum('bqk,bkd->bqd', a.astype(bf16), vh,
                             preferred_element_type=jnp.float32)      # [TB,S,dh]
            attn = attn + jnp.dot(ctx.reshape(TB * S, dh).astype(bf16),
                                  wo_ref[l, hd],                      # [dh, E] bf16
                                  preferred_element_type=jnp.float32)
        attn = attn + bo_ref[l]

        h1 = _layernorm(x2 + attn, g1_ref[l], bt1_ref[l])             # f32

        ff = jnp.maximum(
            jnp.dot(h1.astype(bf16), wf1_ref[l],
                    preferred_element_type=jnp.float32) + bf1_ref[l], 0.0)
        ff = jnp.dot(ff.astype(bf16), wf2_ref[l],
                     preferred_element_type=jnp.float32) + bf2_ref[l]
        x2 = _layernorm(h1 + ff, g2_ref[l], bt2_ref[l])

    # ---------------- head: x.view(B,-1) -> linear_pre -> ReLU -> linear_final ---
    # wp_ref is w_pre reshaped to [F, E, HD1]; accumulating per-feature slices is
    # mathematically identical to flatten([B,F,E]) @ w_pre.
    # TODO(synk): collapse to one [TB, S*E] @ [S*E, HD1] matmul once the
    # lane/sublane reshape of x2 lowers reliably in Mosaic.
    x3 = x2.reshape(TB, S, E)
    hd1 = wp_ref.shape[2]
    acc = jnp.zeros((TB, hd1), dtype=jnp.float32)
    for f in range(S):
        acc = acc + jnp.dot(x3[:, f, :].astype(bf16), wp_ref[f],
                            preferred_element_type=jnp.float32)
    pre = jnp.maximum(acc + bp_ref[...], 0.0)
    out_ref[...] = jnp.dot(pre.astype(bf16), wfin_ref[...],
                           preferred_element_type=jnp.float32) + bfin_ref[...]


# --------------------------- one-time weight packing ---------------------------

def pack_params(params, num_heads):
    """Pack raw (PyTorch-layout) params into the kernel layout ONCE at init.

    Matmul weights are cast to bf16 (f32 accumulation in-kernel); biases,
    LayerNorm params and the element-wise embedding weights stay f32.
    The softmax scale 1/sqrt(dh) is folded into the Q block of the fused QKV.
    """
    bf16 = jnp.bfloat16
    F, H = params['emb_w1'].shape
    E = params['emb_w2'].shape[2]
    dh = E // num_heads
    scale = 1.0 / (dh ** 0.5)
    layers = params['layers']
    L = len(layers)
    hd1 = params['w_pre'].shape[1]

    return {
        # embedding (element-wise path, f32)
        'ew1': params['emb_w1'].reshape(1, F, H, 1),
        'eb1': params['emb_b1'].reshape(1, F, H, 1),
        'ew2': params['emb_w2'].reshape(1, F, H, E),
        'eb2': params['emb_b2'].reshape(1, F, E),
        # fused QKV with scale folded into Q; bf16 for the MXU
        'wqkv': jnp.stack([jnp.concatenate(
            [l['wq'] * scale, l['wk'], l['wv']], axis=1) for l in layers]).astype(bf16),
        'bqkv': jnp.stack([jnp.concatenate(
            [l['bq'] * scale, l['bk'], l['bv']], axis=1) for l in layers]),
        # output projection pre-split per head: [L, H, dh, E]
        'wo': jnp.stack([l['wo'].reshape(num_heads, dh, E) for l in layers]).astype(bf16),
        'bo': jnp.stack([l['bo'] for l in layers]),
        'g1': jnp.stack([l['g1'] for l in layers]),
        'bt1': jnp.stack([l['bt1'] for l in layers]),
        'wf1': jnp.stack([l['wf1'] for l in layers]).astype(bf16),
        'bf1': jnp.stack([l['bf1'] for l in layers]),
        'wf2': jnp.stack([l['wf2'] for l in layers]).astype(bf16),
        'bf2': jnp.stack([l['bf2'] for l in layers]),
        'g2': jnp.stack([l['g2'] for l in layers]),
        'bt2': jnp.stack([l['bt2'] for l in layers]),
        # head
        'wp': params['w_pre'].reshape(F, E, hd1).astype(bf16),
        'bp': params['b_pre'],
        'wfin': params['w_fin'].astype(bf16),
        'bfin': params['b_fin'],
    }


_WEIGHT_ORDER = ('ew1', 'eb1', 'ew2', 'eb2', 'wqkv', 'bqkv', 'wo', 'bo',
                 'g1', 'bt1', 'wf1', 'bf1', 'wf2', 'bf2', 'g2', 'bt2',
                 'wp', 'bp', 'wfin', 'bfin')


# ----------------------------- forward wrapper --------------------------------

@functools.partial(jax.jit, static_argnums=(2, 3))
def transformer_forward(features, packed, num_heads, grid_batches=1):
    """Single fused pallas_call.  `grid_batches` > 1 shards the batch across
    grid steps (use 2 on v7x when B is large enough that per-step blocks still
    respect the (8,128) tiling); the default 1 is right for v5e/v6e and small B.
    """
    B, F = features.shape
    out_dim = packed['wfin'].shape[1]
    assert B % grid_batches == 0
    tb = B // grid_batches

    # Only per-call data prep: one tiny reshape of the input features.
    x4 = features.reshape(B, F, 1, 1)
    weights = tuple(packed[k] for k in _WEIGHT_ORDER)

    def replicated_spec(arr):
        # Constant block index -> the weight block is not re-fetched per step.
        zeros = (0,) * arr.ndim
        return pl.BlockSpec(arr.shape, lambda b, _z=zeros: _z)

    in_specs = [pl.BlockSpec((tb, F, 1, 1), lambda b: (b, 0, 0, 0))]
    in_specs += [replicated_spec(a) for a in weights]
    out_spec = pl.BlockSpec((tb, out_dim), lambda b: (b, 0))

    return pl.pallas_call(
        functools.partial(_fused_forward_kernel, num_heads=num_heads),
        out_shape=jax.ShapeDtypeStruct((B, out_dim), jnp.float32),
        grid=(grid_batches,),
        in_specs=in_specs,
        out_specs=out_spec,
        compiler_params=pltpu.CompilerParams(
            dimension_semantics=("parallel",)),
    )(x4, *weights)


# --------------------------- parameter init -----------------------------------

def init_params(key, *, num_features, emb_dim, emb_hidden, num_layers, ffn_dim,
                hd1, out_dim):
    keys = iter(jax.random.split(key, 128))

    def w(shape, scale=0.05):
        return (scale * jax.random.normal(next(keys), shape)).astype(jnp.float32)

    params = {
        'emb_w1': w((num_features, emb_hidden)),
        'emb_b1': w((num_features, emb_hidden), 0.02),
        'emb_w2': w((num_features, emb_hidden, emb_dim)),
        'emb_b2': w((num_features, emb_dim), 0.02),
        'layers': [],
        'w_pre': w((num_features * emb_dim, hd1)),
        'b_pre': w((1, hd1), 0.02),
        'w_fin': w((hd1, out_dim)),
        'b_fin': w((1, out_dim), 0.02),
    }
    for _ in range(num_layers):
        params['layers'].append({
            'wq': w((emb_dim, emb_dim)), 'bq': w((1, emb_dim), 0.02),
            'wk': w((emb_dim, emb_dim)), 'bk': w((1, emb_dim), 0.02),
            'wv': w((emb_dim, emb_dim)), 'bv': w((1, emb_dim), 0.02),
            'wo': w((emb_dim, emb_dim)), 'bo': w((1, emb_dim), 0.02),
            'g1': jnp.ones((1, emb_dim), jnp.float32),
            'bt1': jnp.zeros((1, emb_dim), jnp.float32),
            'wf1': w((emb_dim, ffn_dim)), 'bf1': w((1, ffn_dim), 0.02),
            'wf2': w((ffn_dim, emb_dim)), 'bf2': w((1, emb_dim), 0.02),
            'g2': jnp.ones((1, emb_dim), jnp.float32),
            'bt2': jnp.zeros((1, emb_dim), jnp.float32),
        })
    return params


# --------------------------- pure-JAX reference (f32) --------------------------

def reference_forward(x, params, num_heads):
    h = jax.nn.relu(x[:, :, None] * params['emb_w1'][None] + params['emb_b1'][None])
    y = jnp.einsum('bfh,fhe->bfe', h, params['emb_w2']) + params['emb_b2'][None]
    B, S, E = y.shape
    dh = E // num_heads
    for L in params['layers']:
        x2 = y.reshape(B * S, E)
        q = (x2 @ L['wq'] + L['bq']).reshape(B, S, E)
        k = (x2 @ L['wk'] + L['bk']).reshape(B, S, E)
        v = (x2 @ L['wv'] + L['bv']).reshape(B, S, E)
        heads = []
        for hh in range(num_heads):
            sl = slice(hh * dh, (hh + 1) * dh)
            s = jnp.einsum('bqd,bkd->bqk', q[:, :, sl], k[:, :, sl]) / (dh ** 0.5)
            a = jax.nn.softmax(s, axis=-1)
            heads.append(jnp.einsum('bqk,bkd->bqd', a, v[:, :, sl]))
        ctx = jnp.concatenate(heads, axis=-1).reshape(B * S, E)
        attn_out = ctx @ L['wo'] + L['bo']
        h1 = _layernorm(x2 + attn_out, L['g1'], L['bt1'])
        ff = jax.nn.relu(h1 @ L['wf1'] + L['bf1']) @ L['wf2'] + L['bf2']
        y = _layernorm(h1 + ff, L['g2'], L['bt2']).reshape(B, S, E)
    flat = y.reshape(B, -1)
    return jax.nn.relu(flat @ params['w_pre'] + params['b_pre']) @ params['w_fin'] + params['b_fin']


# ------------------------------------ main -------------------------------------

if __name__ == "__main__":
    # Hyper-params implied by the module's __init__ (small synthetic config).
    hp = {
        'EmbeddingDim': 32,
        'num_features': 8,
        'EncoderStack': 2,
        'AttentionHead': 4,
        'Dropout': 0.1,      # identity at inference
        'HD-1': 64,
        'OutDim': 4,
    }
    B = 2

    key = jax.random.PRNGKey(0)
    k_param, k_x = jax.random.split(key)
    params = init_params(
        k_param,
        num_features=hp['num_features'],
        emb_dim=hp['EmbeddingDim'],
        emb_hidden=hp['EmbeddingDim'] // 2,
        num_layers=hp['EncoderStack'],
        ffn_dim=4 * hp['EmbeddingDim'],
        hd1=hp['HD-1'],
        out_dim=hp['OutDim'],
    )
    # One-time packing (hoisted out of the per-call path per perf review).
    packed = pack_params(params, hp['AttentionHead'])

    features = jax.random.normal(k_x, (B, hp['num_features']), dtype=jnp.float32)

    out = transformer_forward(features, packed, hp['AttentionHead'], 1)
    out = jax.block_until_ready(out)

    ref = jax.block_until_ready(reference_forward(features, params, hp['AttentionHead']))
    assert out.shape == (B, hp['OutDim'])
    assert bool(jnp.all(jnp.isfinite(out)))
    assert bool(jnp.allclose(out, ref, rtol=2e-2, atol=2e-2)), (out, ref)

    print("KERNEL_OK")
</pallas_src>

<mosaic_0001>
module attributes {stable_mosaic.version = 11 : i64} {
  func.func @_fused_forward_kernel(%arg0: i32, %arg1: memref<2x8x1x1xf32, #tpu.memory_space<vmem>>, %arg2: memref<1x8x16x1xf32, #tpu.memory_space<vmem>>, %arg3: memref<1x8x16x1xf32, #tpu.memory_space<vmem>>, %arg4: memref<1x8x16x32xf32, #tpu.memory_space<vmem>>, %arg5: memref<1x8x32xf32, #tpu.memory_space<vmem>>, %arg6: memref<2x32x96xbf16, #tpu.memory_space<vmem>>, %arg7: memref<2x1x96xf32, #tpu.memory_space<vmem>>, %arg8: memref<2x4x8x32xbf16, #tpu.memory_space<vmem>>, %arg9: memref<2x1x32xf32, #tpu.memory_space<vmem>>, %arg10: memref<2x1x32xf32, #tpu.memory_space<vmem>>, %arg11: memref<2x1x32xf32, #tpu.memory_space<vmem>>, %arg12: memref<2x32x128xbf16, #tpu.memory_space<vmem>>, %arg13: memref<2x1x128xf32, #tpu.memory_space<vmem>>, %arg14: memref<2x128x32xbf16, #tpu.memory_space<vmem>>, %arg15: memref<2x1x32xf32, #tpu.memory_space<vmem>>, %arg16: memref<2x1x32xf32, #tpu.memory_space<vmem>>, %arg17: memref<2x1x32xf32, #tpu.memory_space<vmem>>, %arg18: memref<8x32x64xbf16, #tpu.memory_space<vmem>>, %arg19: memref<1x64xf32, #tpu.memory_space<vmem>>, %arg20: memref<64x4xbf16, #tpu.memory_space<vmem>>, %arg21: memref<1x4xf32, #tpu.memory_space<vmem>>, %arg22: memref<2x4xf32, #tpu.memory_space<vmem>>) attributes {dimension_semantics = [#tpu.dimension_semantics<parallel>], iteration_bounds = array<i64: 1>, scalar_prefetch = 0 : i64, scratch_operands = 0 : i64, tpu.core_type = #tpu.core_type<tc>, window_params = [{transform_indices = @transform_0, window_bounds = array<i64: 2, 8, 1, 1>}, {pipeline_mode = #tpu.pipeline_mode<synchronous>, transform_indices = @transform_1, window_bounds = array<i64: 1, 8, 16, 1>}, {pipeline_mode = #tpu.pipeline_mode<synchronous>, transform_indices = @transform_2, window_bounds = array<i64: 1, 8, 16, 1>}, {pipeline_mode = #tpu.pipeline_mode<synchronous>, transform_indices = @transform_3, window_bounds = array<i64: 1, 8, 16, 32>}, {pipeline_mode = #tpu.pipeline_mode<synchronous>, transform_indices = @transform_4, window_bounds = array<i64: 1, 8, 32>}, {pipeline_mode = #tpu.pipeline_mode<synchronous>, transform_indices = @transform_5, window_bounds = array<i64: 2, 32, 96>}, {pipeline_mode = #tpu.pipeline_mode<synchronous>, transform_indices = @transform_6, window_bounds = array<i64: 2, 1, 96>}, {pipeline_mode = #tpu.pipeline_mode<synchronous>, transform_indices = @transform_7, window_bounds = array<i64: 2, 4, 8, 32>}, {pipeline_mode = #tpu.pipeline_mode<synchronous>, transform_indices = @transform_8, window_bounds = array<i64: 2, 1, 32>}, {pipeline_mode = #tpu.pipeline_mode<synchronous>, transform_indices = @transform_9, window_bounds = array<i64: 2, 1, 32>}, {pipeline_mode = #tpu.pipeline_mode<synchronous>, transform_indices = @transform_10, window_bounds = array<i64: 2, 1, 32>}, {pipeline_mode = #tpu.pipeline_mode<synchronous>, transform_indices = @transform_11, window_bounds = array<i64: 2, 32, 128>}, {pipeline_mode = #tpu.pipeline_mode<synchronous>, transform_indices = @transform_12, window_bounds = array<i64: 2, 1, 128>}, {pipeline_mode = #tpu.pipeline_mode<synchronous>, transform_indices = @transform_13, window_bounds = array<i64: 2, 128, 32>}, {pipeline_mode = #tpu.pipeline_mode<synchronous>, transform_indices = @transform_14, window_bounds = array<i64: 2, 1, 32>}, {pipeline_mode = #tpu.pipeline_mode<synchronous>, transform_indices = @transform_15, window_bounds = array<i64: 2, 1, 32>}, {pipeline_mode = #tpu.pipeline_mode<synchronous>, transform_indices = @transform_16, window_bounds = array<i64: 2, 1, 32>}, {pipeline_mode = #tpu.pipeline_mode<synchronous>, transform_indices = @transform_17, window_bounds = array<i64: 8, 32, 64>}, {pipeline_mode = #tpu.pipeline_mode<synchronous>, transform_indices = @transform_18, window_bounds = array<i64: 1, 64>}, {pipeline_mode = #tpu.pipeline_mode<synchronous>, transform_indices = @transform_19, window_bounds = array<i64: 64, 4>}, {pipeline_mode = #tpu.pipeline_mode<synchronous>, transform_indices = @transform_20, window_bounds = array<i64: 1, 4>}, {transform_indices = @transform_21, window_bounds = array<i64: 2, 4>}]} {
    %c0 = arith.constant 0 : index
    %c0_0 = arith.constant 0 : index
    %c0_1 = arith.constant 0 : index
    %c0_2 = arith.constant 0 : index
    %0 = vector.load %arg1[%c0, %c0_0, %c0_1, %c0_2] : memref<2x8x1x1xf32, #tpu.memory_space<vmem>>, vector<2x8x1x1xf32>
    %c0_3 = arith.constant 0 : index
    %c0_4 = arith.constant 0 : index
    %c0_5 = arith.constant 0 : index
    %c0_6 = arith.constant 0 : index
    %1 = vector.load %arg2[%c0_3, %c0_4, %c0_5, %c0_6] : memref<1x8x16x1xf32, #tpu.memory_space<vmem>>, vector<1x8x16x1xf32>
    %2 = vector.broadcast %0 : vector<2x8x1x1xf32> to vector<2x8x16x1xf32>
    %3 = vector.broadcast %1 : vector<1x8x16x1xf32> to vector<2x8x16x1xf32>
    %4 = arith.mulf %2, %3 : vector<2x8x16x1xf32>
    %c0_7 = arith.constant 0 : index
    %c0_8 = arith.constant 0 : index
    %c0_9 = arith.constant 0 : index
    %c0_10 = arith.constant 0 : index
    %5 = vector.load %arg3[%c0_7, %c0_8, %c0_9, %c0_10] : memref<1x8x16x1xf32, #tpu.memory_space<vmem>>, vector<1x8x16x1xf32>
    %6 = vector.broadcast %5 : vector<1x8x16x1xf32> to vector<2x8x16x1xf32>
    %7 = arith.addf %4, %6 : vector<2x8x16x1xf32>
    %cst = arith.constant 0.000000e+00 : f32
    %8 = vector.broadcast %cst : f32 to vector<2x8x16x1xf32>
    %9 = arith.maximumf %7, %8 : vector<2x8x16x1xf32>
    %c0_11 = arith.constant 0 : index
    %c0_12 = arith.constant 0 : index
    %c0_13 = arith.constant 0 : index
    %c0_14 = arith.constant 0 : index
    %10 = vector.load %arg4[%c0_11, %c0_12, %c0_13, %c0_14] : memref<1x8x16x32xf32, #tpu.memory_space<vmem>>, vector<1x8x16x32xf32>
    %11 = vector.broadcast %9 : vector<2x8x16x1xf32> to vector<2x8x16x32xf32>
    %12 = vector.broadcast %10 : vector<1x8x16x32xf32> to vector<2x8x16x32xf32>
    %13 = arith.mulf %11, %12 : vector<2x8x16x32xf32>
    %cst_15 = arith.constant dense<0.000000e+00> : vector<2x8x32xf32>
    %14 = vector.multi_reduction <add>, %13, %cst_15 [2] : vector<2x8x16x32xf32> to vector<2x8x32xf32>
    %c0_16 = arith.constant 0 : index
    %c0_17 = arith.constant 0 : index
    %c0_18 = arith.constant 0 : index
    %15 = vector.load %arg5[%c0_16, %c0_17, %c0_18] : memref<1x8x32xf32, #tpu.memory_space<vmem>>, vector<1x8x32xf32>
    %16 = vector.broadcast %15 : vector<1x8x32xf32> to vector<2x8x32xf32>
    %17 = arith.addf %14, %16 : vector<2x8x32xf32>
    %18 = vector.shape_cast %17 : vector<2x8x32xf32> to vector<16x32xf32>
    %c0_19 = arith.constant 0 : index
    %c0_20 = arith.constant 0 : index
    %c0_21 = arith.constant 0 : index
    %19 = vector.load %arg6[%c0_19, %c0_20, %c0_21] : memref<2x32x96xbf16, #tpu.memory_space<vmem>>, vector<1x32x96xbf16>
    %20 = vector.shape_cast %19 : vector<1x32x96xbf16> to vector<32x96xbf16>
    %c0_22 = arith.constant 0 : index
    %c0_23 = arith.constant 0 : index
    %c0_24 = arith.constant 0 : index
    %21 = vector.load %arg7[%c0_22, %c0_23, %c0_24] : memref<2x1x96xf32, #tpu.memory_space<vmem>>, vector<1x1x96xf32>
    %22 = vector.shape_cast %21 : vector<1x1x96xf32> to vector<1x96xf32>
    %23 = arith.truncf %18 : vector<16x32xf32> to vector<16x32xbf16>
    %cst_25 = arith.constant dense<0.000000e+00> : vector<16x96xf32>
    %24 = tpu.matmul %23, %20, %cst_25 {dimension_numbers = #tpu.dot_dimension_numbers<[1], [0], [0], [1], [0, 0, 1, 1], [], []>} : vector<16x32xbf16>, vector<32x96xbf16>, vector<16x96xf32> -> vector<16x96xf32>
    %25 = vector.broadcast %22 : vector<1x96xf32> to vector<16x96xf32>
    %26 = arith.addf %24, %25 : vector<16x96xf32>
    %cst_26 = arith.constant 0.000000e+00 : f32
    %27 = vector.broadcast %cst_26 : f32 to vector<16x32xf32>
    %28 = vector.extract_strided_slice %26 {offsets = [0, 0], sizes = [16, 8], strides = [1, 1]} : vector<16x96xf32> to vector<16x8xf32>
    %29 = vector.shape_cast %28 : vector<16x8xf32> to vector<2x8x8xf32>
    %30 = arith.truncf %29 : vector<2x8x8xf32> to vector<2x8x8xbf16>
    %31 = vector.extract_strided_slice %26 {offsets = [0, 32], sizes = [16, 8], strides = [1, 1]} : vector<16x96xf32> to vector<16x8xf32>
    %32 = vector.shape_cast %31 : vector<16x8xf32> to vector<2x8x8xf32>
    %33 = arith.truncf %32 : vector<2x8x8xf32> to vector<2x8x8xbf16>
    %34 = vector.extract_strided_slice %26 {offsets = [0, 64], sizes = [16, 8], strides = [1, 1]} : vector<16x96xf32> to vector<16x8xf32>
    %35 = vector.shape_cast %34 : vector<16x8xf32> to vector<2x8x8xf32>
    %36 = arith.truncf %35 : vector<2x8x8xf32> to vector<2x8x8xbf16>
    "tpu.trace_start"() <{level = 10 : i32, message = "bqd,bkd->bqk"}> : () -> ()
    %cst_27 = arith.constant dense<0.000000e+00> : vector<2x8x8xf32>
    %37 = tpu.matmul %30, %33, %cst_27 {dimension_numbers = #tpu.dot_dimension_numbers<[2], [2], [1], [1], [0, 0, 0, 1, 1, 1], [0], [0]>} : vector<2x8x8xbf16>, vector<2x8x8xbf16>, vector<2x8x8xf32> -> vector<2x8x8xf32>
    "tpu.trace_stop"() : () -> ()
    %cst_28 = arith.constant dense<0xFF800000> : vector<2x8xf32>
    %38 = vector.multi_reduction <maximumf>, %37, %cst_28 [2] : vector<2x8x8xf32> to vector<2x8xf32>
    %39 = vector.shape_cast %38 : vector<2x8xf32> to vector<2x8x1xf32>
    %40 = vector.broadcast %39 : vector<2x8x1xf32> to vector<2x8x8xf32>
    %41 = arith.subf %37, %40 : vector<2x8x8xf32>
    %42 = math.exp %41 : vector<2x8x8xf32>
    %cst_29 = arith.constant dense<0.000000e+00> : vector<2x8xf32>
    %43 = vector.multi_reduction <add>, %42, %cst_29 [2] : vector<2x8x8xf32> to vector<2x8xf32>
    %44 = vector.shape_cast %43 : vector<2x8xf32> to vector<2x8x1xf32>
    %45 = tpu.reciprocal %44 {approx = true} : vector<2x8x1xf32> -> vector<2x8x1xf32>
    %46 = vector.broadcast %45 : vector<2x8x1xf32> to vector<2x8x8xf32>
    %47 = arith.mulf %42, %46 : vector<2x8x8xf32>
    %48 = arith.truncf %47 : vector<2x8x8xf32> to vector<2x8x8xbf16>
    "tpu.trace_start"() <{level = 10 : i32, message = "bqk,bkd->bqd"}> : () -> ()
    %cst_30 = arith.constant dense<0.000000e+00> : vector<2x8x8xf32>
    %49 = tpu.matmul %48, %36, %cst_30 {dimension_numbers = #tpu.dot_dimension_numbers<[2], [1], [1], [2], [0, 0, 0, 1, 1, 2], [0], [0]>} : vector<2x8x8xbf16>, vector<2x8x8xbf16>, vector<2x8x8xf32> -> vector<2x8x8xf32>
    "tpu.trace_stop"() : () -> ()
    %50 = vector.shape_cast %49 : vector<2x8x8xf32> to vector<16x8xf32>
    %51 = arith.truncf %50 : vector<16x8xf32> to vector<16x8xbf16>
    %c0_31 = arith.constant 0 : index
    %c0_32 = arith.constant 0 : index
    %c0_33 = arith.constant 0 : index
    %c0_34 = arith.constant 0 : index
    %52 = vector.load %arg8[%c0_31, %c0_32, %c0_33, %c0_34] : memref<2x4x8x32xbf16, #tpu.memory_space<vmem>>, vector<1x1x8x32xbf16>
    %53 = vector.shape_cast %52 : vector<1x1x8x32xbf16> to vector<8x32xbf16>
    %cst_35 = arith.constant dense<0.000000e+00> : vector<16x32xf32>
    %54 = tpu.matmul %51, %53, %cst_35 {dimension_numbers = #tpu.dot_dimension_numbers<[1], [0], [0], [1], [0, 0, 1, 1], [], []>} : vector<16x8xbf16>, vector<8x32xbf16>, vector<16x32xf32> -> vector<16x32xf32>
    %55 = arith.addf %27, %54 : vector<16x32xf32>
    %56 = vector.extract_strided_slice %26 {offsets = [0, 8], sizes = [16, 8], strides = [1, 1]} : vector<16x96xf32> to vector<16x8xf32>
    %57 = vector.shape_cast %56 : vector<16x8xf32> to vector<2x8x8xf32>
    %58 = arith.truncf %57 : vector<2x8x8xf32> to vector<2x8x8xbf16>
    %59 = vector.extract_strided_slice %26 {offsets = [0, 40], sizes = [16, 8], strides = [1, 1]} : vector<16x96xf32> to vector<16x8xf32>
    %60 = vector.shape_cast %59 : vector<16x8xf32> to vector<2x8x8xf32>
    %61 = arith.truncf %60 : vector<2x8x8xf32> to vector<2x8x8xbf16>
    %62 = vector.extract_strided_slice %26 {offsets = [0, 72], sizes = [16, 8], strides = [1, 1]} : vector<16x96xf32> to vector<16x8xf32>
    %63 = vector.shape_cast %62 : vector<16x8xf32> to vector<2x8x8xf32>
    %64 = arith.truncf %63 : vector<2x8x8xf32> to vector<2x8x8xbf16>
    "tpu.trace_start"() <{level = 10 : i32, message = "bqd,bkd->bqk"}> : () -> ()
    %cst_36 = arith.constant dense<0.000000e+00> : vector<2x8x8xf32>
    %65 = tpu.matmul %58, %61, %cst_36 {dimension_numbers = #tpu.dot_dimension_numbers<[2], [2], [1], [1], [0, 0, 0, 1, 1, 1], [0], [0]>} : vector<2x8x8xbf16>, vector<2x8x8xbf16>, vector<2x8x8xf32> -> vector<2x8x8xf32>
    "tpu.trace_stop"() : () -> ()
    %cst_37 = arith.constant dense<0xFF800000> : vector<2x8xf32>
    %66 = vector.multi_reduction <maximumf>, %65, %cst_37 [2] : vector<2x8x8xf32> to vector<2x8xf32>
    %67 = vector.shape_cast %66 : vector<2x8xf32> to vector<2x8x1xf32>
    %68 = vector.broadcast %67 : vector<2x8x1xf32> to vector<2x8x8xf32>
    %69 = arith.subf %65, %68 : vector<2x8x8xf32>
    %70 = math.exp %69 : vector<2x8x8xf32>
    %cst_38 = arith.constant dense<0.000000e+00> : vector<2x8xf32>
    %71 = vector.multi_reduction <add>, %70, %cst_38 [2] : vector<2x8x8xf32> to vector<2x8xf32>
    %72 = vector.shape_cast %71 : vector<2x8xf32> to vector<2x8x1xf32>
    %73 = tpu.reciprocal %72 {approx = true} : vector<2x8x1xf32> -> vector<2x8x1xf32>
    %74 = vector.broadcast %73 : vector<2x8x1xf32> to vector<2x8x8xf32>
    %75 = arith.mulf %70, %74 : vector<2x8x8xf32>
    %76 = arith.truncf %75 : vector<2x8x8xf32> to vector<2x8x8xbf16>
    "tpu.trace_start"() <{level = 10 : i32, message = "bqk,bkd->bqd"}> : () -> ()
    %cst_39 = arith.constant dense<0.000000e+00> : vector<2x8x8xf32>
    %77 = tpu.matmul %76, %64, %cst_39 {dimension_numbers = #tpu.dot_dimension_numbers<[2], [1], [1], [2], [0, 0, 0, 1, 1, 2], [0], [0]>} : vector<2x8x8xbf16>, vector<2x8x8xbf16>, vector<2x8x8xf32> -> vector<2x8x8xf32>
    "tpu.trace_stop"() : () -> ()
    %78 = vector.shape_cast %77 : vector<2x8x8xf32> to vector<16x8xf32>
    %79 = arith.truncf %78 : vector<16x8xf32> to vector<16x8xbf16>
    %c0_40 = arith.constant 0 : index
    %c1 = arith.constant 1 : index
    %c0_41 = arith.constant 0 : index
    %c0_42 = arith.constant 0 : index
    %80 = vector.load %arg8[%c0_40, %c1, %c0_41, %c0_42] : memref<2x4x8x32xbf16, #tpu.memory_space<vmem>>, vector<1x1x8x32xbf16>
    %81 = vector.shape_cast %80 : vector<1x1x8x32xbf16> to vector<8x32xbf16>
    %cst_43 = arith.constant dense<0.000000e+00> : vector<16x32xf32>
    %82 = tpu.matmul %79, %81, %cst_43 {dimension_numbers = #tpu.dot_dimension_numbers<[1], [0], [0], [1], [0, 0, 1, 1], [], []>} : vector<16x8xbf16>, vector<8x32xbf16>, vector<16x32xf32> -> vector<16x32xf32>
    %83 = arith.addf %55, %82 : vector<16x32xf32>
    %84 = vector.extract_strided_slice %26 {offsets = [0, 16], sizes = [16, 8], strides = [1, 1]} : vector<16x96xf32> to vector<16x8xf32>
    %85 = vector.shape_cast %84 : vector<16x8xf32> to vector<2x8x8xf32>
    %86 = arith.truncf %85 : vector<2x8x8xf32> to vector<2x8x8xbf16>
    %87 = vector.extract_strided_slice %26 {offsets = [0, 48], sizes = [16, 8], strides = [1, 1]} : vector<16x96xf32> to vector<16x8xf32>
    %88 = vector.shape_cast %87 : vector<16x8xf32> to vector<2x8x8xf32>
    %89 = arith.truncf %88 : vector<2x8x8xf32> to vector<2x8x8xbf16>
    %90 = vector.extract_strided_slice %26 {offsets = [0, 80], sizes = [16, 8], strides = [1, 1]} : vector<16x96xf32> to vector<16x8xf32>
    %91 = vector.shape_cast %90 : vector<16x8xf32> to vector<2x8x8xf32>
    %92 = arith.truncf %91 : vector<2x8x8xf32> to vector<2x8x8xbf16>
    "tpu.trace_start"() <{level = 10 : i32, message = "bqd,bkd->bqk"}> : () -> ()
    %cst_44 = arith.constant dense<0.000000e+00> : vector<2x8x8xf32>
    %93 = tpu.matmul %86, %89, %cst_44 {dimension_numbers = #tpu.dot_dimension_numbers<[2], [2], [1], [1], [0, 0, 0, 1, 1, 1], [0], [0]>} : vector<2x8x8xbf16>, vector<2x8x8xbf16>, vector<2x8x8xf32> -> vector<2x8x8xf32>
    "tpu.trace_stop"() : () -> ()
    %cst_45 = arith.constant dense<0xFF800000> : vector<2x8xf32>
    %94 = vector.multi_reduction <maximumf>, %93, %cst_45 [2] : vector<2x8x8xf32> to vector<2x8xf32>
    %95 = vector.shape_cast %94 : vector<2x8xf32> to vector<2x8x1xf32>
    %96 = vector.broadcast %95 : vector<2x8x1xf32> to vector<2x8x8xf32>
    %97 = arith.subf %93, %96 : vector<2x8x8xf32>
    %98 = math.exp %97 : vector<2x8x8xf32>
    %cst_46 = arith.constant dense<0.000000e+00> : vector<2x8xf32>
    %99 = vector.multi_reduction <add>, %98, %cst_46 [2] : vector<2x8x8xf32> to vector<2x8xf32>
    %100 = vector.shape_cast %99 : vector<2x8xf32> to vector<2x8x1xf32>
    %101 = tpu.reciprocal %100 {approx = true} : vector<2x8x1xf32> -> vector<2x8x1xf32>
    %102 = vector.broadcast %101 : vector<2x8x1xf32> to vector<2x8x8xf32>
    %103 = arith.mulf %98, %102 : vector<2x8x8xf32>
    %104 = arith.truncf %103 : vector<2x8x8xf32> to vector<2x8x8xbf16>
    "tpu.trace_start"() <{level = 10 : i32, message = "bqk,bkd->bqd"}> : () -> ()
    %cst_47 = arith.constant dense<0.000000e+00> : vector<2x8x8xf32>
    %105 = tpu.matmul %104, %92, %cst_47 {dimension_numbers = #tpu.dot_dimension_numbers<[2], [1], [1], [2], [0, 0, 0, 1, 1, 2], [0], [0]>} : vector<2x8x8xbf16>, vector<2x8x8xbf16>, vector<2x8x8xf32> -> vector<2x8x8xf32>
    "tpu.trace_stop"() : () -> ()
    %106 = vector.shape_cast %105 : vector<2x8x8xf32> to vector<16x8xf32>
    %107 = arith.truncf %106 : vector<16x8xf32> to vector<16x8xbf16>
    %c0_48 = arith.constant 0 : index
    %c2 = arith.constant 2 : index
    %c0_49 = arith.constant 0 : index
    %c0_50 = arith.constant 0 : index
    %108 = vector.load %arg8[%c0_48, %c2, %c0_49, %c0_50] : memref<2x4x8x32xbf16, #tpu.memory_space<vmem>>, vector<1x1x8x32xbf16>
    %109 = vector.shape_cast %108 : vector<1x1x8x32xbf16> to vector<8x32xbf16>
    %cst_51 = arith.constant dense<0.000000e+00> : vector<16x32xf32>
    %110 = tpu.matmul %107, %109, %cst_51 {dimension_numbers = #tpu.dot_dimension_numbers<[1], [0], [0], [1], [0, 0, 1, 1], [], []>} : vector<16x8xbf16>, vector<8x32xbf16>, vector<16x32xf32> -> vector<16x32xf32>
    %111 = arith.addf %83, %110 : vector<16x32xf32>
    %112 = vector.extract_strided_slice %26 {offsets = [0, 24], sizes = [16, 8], strides = [1, 1]} : vector<16x96xf32> to vector<16x8xf32>
    %113 = vector.shape_cast %112 : vector<16x8xf32> to vector<2x8x8xf32>
    %114 = arith.truncf %113 : vector<2x8x8xf32> to vector<2x8x8xbf16>
    %115 = vector.extract_strided_slice %26 {offsets = [0, 56], sizes = [16, 8], strides = [1, 1]} : vector<16x96xf32> to vector<16x8xf32>
    %116 = vector.shape_cast %115 : vector<16x8xf32> to vector<2x8x8xf32>
    %117 = arith.truncf %116 : vector<2x8x8xf32> to vector<2x8x8xbf16>
    %118 = vector.extract_strided_slice %26 {offsets = [0, 88], sizes = [16, 8], strides = [1, 1]} : vector<16x96xf32> to vector<16x8xf32>
    %119 = vector.shape_cast %118 : vector<16x8xf32> to vector<2x8x8xf32>
    %120 = arith.truncf %119 : vector<2x8x8xf32> to vector<2x8x8xbf16>
    "tpu.trace_start"() <{level = 10 : i32, message = "bqd,bkd->bqk"}> : () -> ()
    %cst_52 = arith.constant dense<0.000000e+00> : vector<2x8x8xf32>
    %121 = tpu.matmul %114, %117, %cst_52 {dimension_numbers = #tpu.dot_dimension_numbers<[2], [2], [1], [1], [0, 0, 0, 1, 1, 1], [0], [0]>} : vector<2x8x8xbf16>, vector<2x8x8xbf16>, vector<2x8x8xf32> -> vector<2x8x8xf32>
    "tpu.trace_stop"() : () -> ()
    %cst_53 = arith.constant dense<0xFF800000> : vector<2x8xf32>
    %122 = vector.multi_reduction <maximumf>, %121, %cst_53 [2] : vector<2x8x8xf32> to vector<2x8xf32>
    %123 = vector.shape_cast %122 : vector<2x8xf32> to vector<2x8x1xf32>
    %124 = vector.broadcast %123 : vector<2x8x1xf32> to vector<2x8x8xf32>
    %125 = arith.subf %121, %124 : vector<2x8x8xf32>
    %126 = math.exp %125 : vector<2x8x8xf32>
    %cst_54 = arith.constant dense<0.000000e+00> : vector<2x8xf32>
    %127 = vector.multi_reduction <add>, %126, %cst_54 [2] : vector<2x8x8xf32> to vector<2x8xf32>
    %128 = vector.shape_cast %127 : vector<2x8xf32> to vector<2x8x1xf32>
    %129 = tpu.reciprocal %128 {approx = true} : vector<2x8x1xf32> -> vector<2x8x1xf32>
    %130 = vector.broadcast %129 : vector<2x8x1xf32> to vector<2x8x8xf32>
    %131 = arith.mulf %126, %130 : vector<2x8x8xf32>
    %132 = arith.truncf %131 : vector<2x8x8xf32> to vector<2x8x8xbf16>
    "tpu.trace_start"() <{level = 10 : i32, message = "bqk,bkd->bqd"}> : () -> ()
    %cst_55 = arith.constant dense<0.000000e+00> : vector<2x8x8xf32>
    %133 = tpu.matmul %132, %120, %cst_55 {dimension_numbers = #tpu.dot_dimension_numbers<[2], [1], [1], [2], [0, 0, 0, 1, 1, 2], [0], [0]>} : vector<2x8x8xbf16>, vector<2x8x8xbf16>, vector<2x8x8xf32> -> vector<2x8x8xf32>
    "tpu.trace_stop"() : () -> ()
    %134 = vector.shape_cast %133 : vector<2x8x8xf32> to vector<16x8xf32>
    %135 = arith.truncf %134 : vector<16x8xf32> to vector<16x8xbf16>
    %c0_56 = arith.constant 0 : index
    %c3 = arith.constant 3 : index
    %c0_57 = arith.constant 0 : index
    %c0_58 = arith.constant 0 : index
    %136 = vector.load %arg8[%c0_56, %c3, %c0_57, %c0_58] : memref<2x4x8x32xbf16, #tpu.memory_space<vmem>>, vector<1x1x8x32xbf16>
    %137 = vector.shape_cast %136 : vector<1x1x8x32xbf16> to vector<8x32xbf16>
    %cst_59 = arith.constant dense<0.000000e+00> : vector<16x32xf32>
    %138 = tpu.matmul %135, %137, %cst_59 {dimension_numbers = #tpu.dot_dimension_numbers<[1], [0], [0], [1], [0, 0, 1, 1], [], []>} : vector<16x8xbf16>, vector<8x32xbf16>, vector<16x32xf32> -> vector<16x32xf32>
    %139 = arith.addf %111, %138 : vector<16x32xf32>
    %c0_60 = arith.constant 0 : index
    %c0_61 = arith.constant 0 : index
    %c0_62 = arith.constant 0 : index
    %140 = vector.load %arg9[%c0_60, %c0_61, %c0_62] : memref<2x1x32xf32, #tpu.memory_space<vmem>>, vector<1x1x32xf32>
    %141 = vector.shape_cast %140 : vector<1x1x32xf32> to vector<1x32xf32>
    %142 = vector.broadcast %141 : vector<1x32xf32> to vector<16x32xf32>
    %143 = arith.addf %139, %142 : vector<16x32xf32>
    %144 = arith.addf %18, %143 : vector<16x32xf32>
    %c0_63 = arith.constant 0 : index
    %c0_64 = arith.constant 0 : index
    %c0_65 = arith.constant 0 : index
    %145 = vector.load %arg10[%c0_63, %c0_64, %c0_65] : memref<2x1x32xf32, #tpu.memory_space<vmem>>, vector<1x1x32xf32>
    %146 = vector.shape_cast %145 : vector<1x1x32xf32> to vector<1x32xf32>
    %c0_66 = arith.constant 0 : index
    %c0_67 = arith.constant 0 : index
    %c0_68 = arith.constant 0 : index
    %147 = vector.load %arg11[%c0_66, %c0_67, %c0_68] : memref<2x1x32xf32, #tpu.memory_space<vmem>>, vector<1x1x32xf32>
    %148 = vector.shape_cast %147 : vector<1x1x32xf32> to vector<1x32xf32>
    %cst_69 = arith.constant dense<0.000000e+00> : vector<16xf32>
    %149 = vector.multi_reduction <add>, %144, %cst_69 [1] : vector<16x32xf32> to vector<16xf32>
    %150 = vector.shape_cast %149 : vector<16xf32> to vector<16x1xf32>
    %cst_70 = arith.constant 3.200000e+01 : f32
    %151 = vector.broadcast %cst_70 : f32 to vector<16x1xf32>
    %152 = arith.divf %150, %151 : vector<16x1xf32>
    %153 = vector.broadcast %152 : vector<16x1xf32> to vector<16x32xf32>
    %154 = arith.subf %144, %153 : vector<16x32xf32>
    %155 = arith.mulf %154, %154 : vector<16x32xf32>
    %cst_71 = arith.constant dense<0.000000e+00> : vector<16xf32>
    %156 = vector.multi_reduction <add>, %155, %cst_71 [1] : vector<16x32xf32> to vector<16xf32>
    %157 = vector.shape_cast %156 : vector<16xf32> to vector<16x1xf32>
    %cst_72 = arith.constant 3.200000e+01 : f32
    %158 = vector.broadcast %cst_72 : f32 to vector<16x1xf32>
    %159 = arith.divf %157, %158 : vector<16x1xf32>
    %160 = vector.broadcast %152 : vector<16x1xf32> to vector<16x32xf32>
    %161 = arith.subf %144, %160 : vector<16x32xf32>
    %cst_73 = arith.constant 9.99999974E-6 : f32
    %162 = vector.broadcast %cst_73 : f32 to vector<16x1xf32>
    %163 = arith.addf %159, %162 : vector<16x1xf32>
    %164 = math.rsqrt %163 : vector<16x1xf32>
    %165 = vector.broadcast %164 : vector<16x1xf32> to vector<16x32xf32>
    %166 = arith.mulf %161, %165 : vector<16x32xf32>
    %167 = vector.broadcast %146 : vector<1x32xf32> to vector<16x32xf32>
    %168 = arith.mulf %166, %167 : vector<16x32xf32>
    %169 = vector.broadcast %148 : vector<1x32xf32> to vector<16x32xf32>
    %170 = arith.addf %168, %169 : vector<16x32xf32>
    %171 = arith.truncf %170 : vector<16x32xf32> to vector<16x32xbf16>
    %c0_74 = arith.constant 0 : index
    %c0_75 = arith.constant 0 : index
    %c0_76 = arith.constant 0 : index
    %172 = vector.load %arg12[%c0_74, %c0_75, %c0_76] : memref<2x32x128xbf16, #tpu.memory_space<vmem>>, vector<1x32x128xbf16>
    %173 = vector.shape_cast %172 : vector<1x32x128xbf16> to vector<32x128xbf16>
    %cst_77 = arith.constant dense<0.000000e+00> : vector<16x128xf32>
    %174 = tpu.matmul %171, %173, %cst_77 {dimension_numbers = #tpu.dot_dimension_numbers<[1], [0], [0], [1], [0, 0, 1, 1], [], []>} : vector<16x32xbf16>, vector<32x128xbf16>, vector<16x128xf32> -> vector<16x128xf32>
    %c0_78 = arith.constant 0 : index
    %c0_79 = arith.constant 0 : index
    %c0_80 = arith.constant 0 : index
    %175 = vector.load %arg13[%c0_78, %c0_79, %c0_80] : memref<2x1x128xf32, #tpu.memory_space<vmem>>, vector<1x1x128xf32>
    %176 = vector.shape_cast %175 : vector<1x1x128xf32> to vector<1x128xf32>
    %177 = vector.broadcast %176 : vector<1x128xf32> to vector<16x128xf32>
    %178 = arith.addf %174, %177 : vector<16x128xf32>
    %cst_81 = arith.constant 0.000000e+00 : f32
    %179 = vector.broadcast %cst_81 : f32 to vector<16x128xf32>
    %180 = arith.maximumf %178, %179 : vector<16x128xf32>
    %181 = arith.truncf %180 : vector<16x128xf32> to vector<16x128xbf16>
    %c0_82 = arith.constant 0 : index
    %c0_83 = arith.constant 0 : index
    %c0_84 = arith.constant 0 : index
    %182 = vector.load %arg14[%c0_82, %c0_83, %c0_84] : memref<2x128x32xbf16, #tpu.memory_space<vmem>>, vector<1x128x32xbf16>
    %183 = vector.shape_cast %182 : vector<1x128x32xbf16> to vector<128x32xbf16>
    %cst_85 = arith.constant dense<0.000000e+00> : vector<16x32xf32>
    %184 = tpu.matmul %181, %183, %cst_85 {dimension_numbers = #tpu.dot_dimension_numbers<[1], [0], [0], [1], [0, 0, 1, 1], [], []>} : vector<16x128xbf16>, vector<128x32xbf16>, vector<16x32xf32> -> vector<16x32xf32>
    %c0_86 = arith.constant 0 : index
    %c0_87 = arith.constant 0 : index
    %c0_88 = arith.constant 0 : index
    %185 = vector.load %arg15[%c0_86, %c0_87, %c0_88] : memref<2x1x32xf32, #tpu.memory_space<vmem>>, vector<1x1x32xf32>
    %186 = vector.shape_cast %185 : vector<1x1x32xf32> to vector<1x32xf32>
    %187 = vector.broadcast %186 : vector<1x32xf32> to vector<16x32xf32>
    %188 = arith.addf %184, %187 : vector<16x32xf32>
    %189 = arith.addf %170, %188 : vector<16x32xf32>
    %c0_89 = arith.constant 0 : index
    %c0_90 = arith.constant 0 : index
    %c0_91 = arith.constant 0 : index
    %190 = vector.load %arg16[%c0_89, %c0_90, %c0_91] : memref<2x1x32xf32, #tpu.memory_space<vmem>>, vector<1x1x32xf32>
    %191 = vector.shape_cast %190 : vector<1x1x32xf32> to vector<1x32xf32>
    %c0_92 = arith.constant 0 : index
    %c0_93 = arith.constant 0 : index
    %c0_94 = arith.constant 0 : index
    %192 = vector.load %arg17[%c0_92, %c0_93, %c0_94] : memref<2x1x32xf32, #tpu.memory_space<vmem>>, vector<1x1x32xf32>
    %193 = vector.shape_cast %192 : vector<1x1x32xf32> to vector<1x32xf32>
    %cst_95 = arith.constant dense<0.000000e+00> : vector<16xf32>
    %194 = vector.multi_reduction <add>, %189, %cst_95 [1] : vector<16x32xf32> to vector<16xf32>
    %195 = vector.shape_cast %194 : vector<16xf32> to vector<16x1xf32>
    %cst_96 = arith.constant 3.200000e+01 : f32
    %196 = vector.broadcast %cst_96 : f32 to vector<16x1xf32>
    %197 = arith.divf %195, %196 : vector<16x1xf32>
    %198 = vector.broadcast %197 : vector<16x1xf32> to vector<16x32xf32>
    %199 = arith.subf %189, %198 : vector<16x32xf32>
    %200 = arith.mulf %199, %199 : vector<16x32xf32>
    %cst_97 = arith.constant dense<0.000000e+00> : vector<16xf32>
    %201 = vector.multi_reduction <add>, %200, %cst_97 [1] : vector<16x32xf32> to vector<16xf32>
    %202 = vector.shape_cast %201 : vector<16xf32> to vector<16x1xf32>
    %cst_98 = arith.constant 3.200000e+01 : f32
    %203 = vector.broadcast %cst_98 : f32 to vector<16x1xf32>
    %204 = arith.divf %202, %203 : vector<16x1xf32>
    %205 = vector.broadcast %197 : vector<16x1xf32> to vector<16x32xf32>
    %206 = arith.subf %189, %205 : vector<16x32xf32>
    %cst_99 = arith.constant 9.99999974E-6 : f32
    %207 = vector.broadcast %cst_99 : f32 to vector<16x1xf32>
    %208 = arith.addf %204, %207 : vector<16x1xf32>
    %209 = math.rsqrt %208 : vector<16x1xf32>
    %210 = vector.broadcast %209 : vector<16x1xf32> to vector<16x32xf32>
    %211 = arith.mulf %206, %210 : vector<16x32xf32>
    %212 = vector.broadcast %191 : vector<1x32xf32> to vector<16x32xf32>
    %213 = arith.mulf %211, %212 : vector<16x32xf32>
    %214 = vector.broadcast %193 : vector<1x32xf32> to vector<16x32xf32>
    %215 = arith.addf %213, %214 : vector<16x32xf32>
    %c1_100 = arith.constant 1 : index
    %c0_101 = arith.constant 0 : index
    %c0_102 = arith.constant 0 : index
    %216 = vector.load %arg6[%c1_100, %c0_101, %c0_102] : memref<2x32x96xbf16, #tpu.memory_space<vmem>>, vector<1x32x96xbf16>
    %217 = vector.shape_cast %216 : vector<1x32x96xbf16> to vector<32x96xbf16>
    %c1_103 = arith.constant 1 : index
    %c0_104 = arith.constant 0 : index
    %c0_105 = arith.constant 0 : index
    %218 = vector.load %arg7[%c1_103, %c0_104, %c0_105] : memref<2x1x96xf32, #tpu.memory_space<vmem>>, vector<1x1x96xf32>
    %219 = vector.shape_cast %218 : vector<1x1x96xf32> to vector<1x96xf32>
    %220 = arith.truncf %215 : vector<16x32xf32> to vector<16x32xbf16>
    %cst_106 = arith.constant dense<0.000000e+00> : vector<16x96xf32>
    %221 = tpu.matmul %220, %217, %cst_106 {dimension_numbers = #tpu.dot_dimension_numbers<[1], [0], [0], [1], [0, 0, 1, 1], [], []>} : vector<16x32xbf16>, vector<32x96xbf16>, vector<16x96xf32> -> vector<16x96xf32>
    %222 = vector.broadcast %219 : vector<1x96xf32> to vector<16x96xf32>
    %223 = arith.addf %221, %222 : vector<16x96xf32>
    %cst_107 = arith.constant 0.000000e+00 : f32
    %224 = vector.broadcast %cst_107 : f32 to vector<16x32xf32>
    %225 = vector.extract_strided_slice %223 {offsets = [0, 0], sizes = [16, 8], strides = [1, 1]} : vector<16x96xf32> to vector<16x8xf32>
    %226 = vector.shape_cast %225 : vector<16x8xf32> to vector<2x8x8xf32>
    %227 = arith.truncf %226 : vector<2x8x8xf32> to vector<2x8x8xbf16>
    %228 = vector.extract_strided_slice %223 {offsets = [0, 32], sizes = [16, 8], strides = [1, 1]} : vector<16x96xf32> to vector<16x8xf32>
    %229 = vector.shape_cast %228 : vector<16x8xf32> to vector<2x8x8xf32>
    %230 = arith.truncf %229 : vector<2x8x8xf32> to vector<2x8x8xbf16>
    %231 = vector.extract_strided_slice %223 {offsets = [0, 64], sizes = [16, 8], strides = [1, 1]} : vector<16x96xf32> to vector<16x8xf32>
    %232 = vector.shape_cast %231 : vector<16x8xf32> to vector<2x8x8xf32>
    %233 = arith.truncf %232 : vector<2x8x8xf32> to vector<2x8x8xbf16>
    "tpu.trace_start"() <{level = 10 : i32, message = "bqd,bkd->bqk"}> : () -> ()
    %cst_108 = arith.constant dense<0.000000e+00> : vector<2x8x8xf32>
    %234 = tpu.matmul %227, %230, %cst_108 {dimension_numbers = #tpu.dot_dimension_numbers<[2], [2], [1], [1], [0, 0, 0, 1, 1, 1], [0], [0]>} : vector<2x8x8xbf16>, vector<2x8x8xbf16>, vector<2x8x8xf32> -> vector<2x8x8xf32>
    "tpu.trace_stop"() : () -> ()
    %cst_109 = arith.constant dense<0xFF800000> : vector<2x8xf32>
    %235 = vector.multi_reduction <maximumf>, %234, %cst_109 [2] : vector<2x8x8xf32> to vector<2x8xf32>
    %236 = vector.shape_cast %235 : vector<2x8xf32> to vector<2x8x1xf32>
    %237 = vector.broadcast %236 : vector<2x8x1xf32> to vector<2x8x8xf32>
    %238 = arith.subf %234, %237 : vector<2x8x8xf32>
    %239 = math.exp %238 : vector<2x8x8xf32>
    %cst_110 = arith.constant dense<0.000000e+00> : vector<2x8xf32>
    %240 = vector.multi_reduction <add>, %239, %cst_110 [2] : vector<2x8x8xf32> to vector<2x8xf32>
    %241 = vector.shape_cast %240 : vector<2x8xf32> to vector<2x8x1xf32>
    %242 = tpu.reciprocal %241 {approx = true} : vector<2x8x1xf32> -> vector<2x8x1xf32>
    %243 = vector.broadcast %242 : vector<2x8x1xf32> to vector<2x8x8xf32>
    %244 = arith.mulf %239, %243 : vector<2x8x8xf32>
    %245 = arith.truncf %244 : vector<2x8x8xf32> to vector<2x8x8xbf16>
    "tpu.trace_start"() <{level = 10 : i32, message = "bqk,bkd->bqd"}> : () -> ()
    %cst_111 = arith.constant dense<0.000000e+00> : vector<2x8x8xf32>
    %246 = tpu.matmul %245, %233, %cst_111 {dimension_numbers = #tpu.dot_dimension_numbers<[2], [1], [1], [2], [0, 0, 0, 1, 1, 2], [0], [0]>} : vector<2x8x8xbf16>, vector<2x8x8xbf16>, vector<2x8x8xf32> -> vector<2x8x8xf32>
    "tpu.trace_stop"() : () -> ()
    %247 = vector.shape_cast %246 : vector<2x8x8xf32> to vector<16x8xf32>
    %248 = arith.truncf %247 : vector<16x8xf32> to vector<16x8xbf16>
    %c1_112 = arith.constant 1 : index
    %c0_113 = arith.constant 0 : index
    %c0_114 = arith.constant 0 : index
    %c0_115 = arith.constant 0 : index
    %249 = vector.load %arg8[%c1_112, %c0_113, %c0_114, %c0_115] : memref<2x4x8x32xbf16, #tpu.memory_space<vmem>>, vector<1x1x8x32xbf16>
    %250 = vector.shape_cast %249 : vector<1x1x8x32xbf16> to vector<8x32xbf16>
    %cst_116 = arith.constant dense<0.000000e+00> : vector<16x32xf32>
    %251 = tpu.matmul %248, %250, %cst_116 {dimension_numbers = #tpu.dot_dimension_numbers<[1], [0], [0], [1], [0, 0, 1, 1], [], []>} : vector<16x8xbf16>, vector<8x32xbf16>, vector<16x32xf32> -> vector<16x32xf32>
    %252 = arith.addf %224, %251 : vector<16x32xf32>
    %253 = vector.extract_strided_slice %223 {offsets = [0, 8], sizes = [16, 8], strides = [1, 1]} : vector<16x96xf32> to vector<16x8xf32>
    %254 = vector.shape_cast %253 : vector<16x8xf32> to vector<2x8x8xf32>
    %255 = arith.truncf %254 : vector<2x8x8xf32> to vector<2x8x8xbf16>
    %256 = vector.extract_strided_slice %223 {offsets = [0, 40], sizes = [16, 8], strides = [1, 1]} : vector<16x96xf32> to vector<16x8xf32>
    %257 = vector.shape_cast %256 : vector<16x8xf32> to vector<2x8x8xf32>
    %258 = arith.truncf %257 : vector<2x8x8xf32> to vector<2x8x8xbf16>
    %259 = vector.extract_strided_slice %223 {offsets = [0, 72], sizes = [16, 8], strides = [1, 1]} : vector<16x96xf32> to vector<16x8xf32>
    %260 = vector.shape_cast %259 : vector<16x8xf32> to vector<2x8x8xf32>
    %261 = arith.truncf %260 : vector<2x8x8xf32> to vector<2x8x8xbf16>
    "tpu.trace_start"() <{level = 10 : i32, message = "bqd,bkd->bqk"}> : () -> ()
    %cst_117 = arith.constant dense<0.000000e+00> : vector<2x8x8xf32>
    %262 = tpu.matmul %255, %258, %cst_117 {dimension_numbers = #tpu.dot_dimension_numbers<[2], [2], [1], [1], [0, 0, 0, 1, 1, 1], [0], [0]>} : vector<2x8x8xbf16>, vector<2x8x8xbf16>, vector<2x8x8xf32> -> vector<2x8x8xf32>
    "tpu.trace_stop"() : () -> ()
    %cst_118 = arith.constant dense<0xFF800000> : vector<2x8xf32>
    %263 = vector.multi_reduction <maximumf>, %262, %cst_118 [2] : vector<2x8x8xf32> to vector<2x8xf32>
    %264 = vector.shape_cast %263 : vector<2x8xf32> to vector<2x8x1xf32>
    %265 = vector.broadcast %264 : vector<2x8x1xf32> to vector<2x8x8xf32>
    %266 = arith.subf %262, %265 : vector<2x8x8xf32>
    %267 = math.exp %266 : vector<2x8x8xf32>
    %cst_119 = arith.constant dense<0.000000e+00> : vector<2x8xf32>
    %268 = vector.multi_reduction <add>, %267, %cst_119 [2] : vector<2x8x8xf32> to vector<2x8xf32>
    %269 = vector.shape_cast %268 : vector<2x8xf32> to vector<2x8x1xf32>
    %270 = tpu.reciprocal %269 {approx = true} : vector<2x8x1xf32> -> vector<2x8x1xf32>
    %271 = vector.broadcast %270 : vector<2x8x1xf32> to vector<2x8x8xf32>
    %272 = arith.mulf %267, %271 : vector<2x8x8xf32>
    %273 = arith.truncf %272 : vector<2x8x8xf32> to vector<2x8x8xbf16>
    "tpu.trace_start"() <{level = 10 : i32, message = "bqk,bkd->bqd"}> : () -> ()
    %cst_120 = arith.constant dense<0.000000e+00> : vector<2x8x8xf32>
    %274 = tpu.matmul %273, %261, %cst_120 {dimension_numbers = #tpu.dot_dimension_numbers<[2], [1], [1], [2], [0, 0, 0, 1, 1, 2], [0], [0]>} : vector<2x8x8xbf16>, vector<2x8x8xbf16>, vector<2x8x8xf32> -> vector<2x8x8xf32>
    "tpu.trace_stop"() : () -> ()
    %275 = vector.shape_cast %274 : vector<2x8x8xf32> to vector<16x8xf32>
    %276 = arith.truncf %275 : vector<16x8xf32> to vector<16x8xbf16>
    %c1_121 = arith.constant 1 : index
    %c1_122 = arith.constant 1 : index
    %c0_123 = arith.constant 0 : index
    %c0_124 = arith.constant 0 : index
    %277 = vector.load %arg8[%c1_121, %c1_122, %c0_123, %c0_124] : memref<2x4x8x32xbf16, #tpu.memory_space<vmem>>, vector<1x1x8x32xbf16>
    %278 = vector.shape_cast %277 : vector<1x1x8x32xbf16> to vector<8x32xbf16>
    %cst_125 = arith.constant dense<0.000000e+00> : vector<16x32xf32>
    %279 = tpu.matmul %276, %278, %cst_125 {dimension_numbers = #tpu.dot_dimension_numbers<[1], [0], [0], [1], [0, 0, 1, 1], [], []>} : vector<16x8xbf16>, vector<8x32xbf16>, vector<16x32xf32> -> vector<16x32xf32>
    %280 = arith.addf %252, %279 : vector<16x32xf32>
    %281 = vector.extract_strided_slice %223 {offsets = [0, 16], sizes = [16, 8], strides = [1, 1]} : vector<16x96xf32> to vector<16x8xf32>
    %282 = vector.shape_cast %281 : vector<16x8xf32> to vector<2x8x8xf32>
    %283 = arith.truncf %282 : vector<2x8x8xf32> to vector<2x8x8xbf16>
    %284 = vector.extract_strided_slice %223 {offsets = [0, 48], sizes = [16, 8], strides = [1, 1]} : vector<16x96xf32> to vector<16x8xf32>
    %285 = vector.shape_cast %284 : vector<16x8xf32> to vector<2x8x8xf32>
    %286 = arith.truncf %285 : vector<2x8x8xf32> to vector<2x8x8xbf16>
    %287 = vector.extract_strided_slice %223 {offsets = [0, 80], sizes = [16, 8], strides = [1, 1]} : vector<16x96xf32> to vector<16x8xf32>
    %288 = vector.shape_cast %287 : vector<16x8xf32> to vector<2x8x8xf32>
    %289 = arith.truncf %288 : vector<2x8x8xf32> to vector<2x8x8xbf16>
    "tpu.trace_start"() <{level = 10 : i32, message = "bqd,bkd->bqk"}> : () -> ()
    %cst_126 = arith.constant dense<0.000000e+00> : vector<2x8x8xf32>
    %290 = tpu.matmul %283, %286, %cst_126 {dimension_numbers = #tpu.dot_dimension_numbers<[2], [2], [1], [1], [0, 0, 0, 1, 1, 1], [0], [0]>} : vector<2x8x8xbf16>, vector<2x8x8xbf16>, vector<2x8x8xf32> -> vector<2x8x8xf32>
    "tpu.trace_stop"() : () -> ()
    %cst_127 = arith.constant dense<0xFF800000> : vector<2x8xf32>
    %291 = vector.multi_reduction <maximumf>, %290, %cst_127 [2] : vector<2x8x8xf32> to vector<2x8xf32>
    %292 = vector.shape_cast %291 : vector<2x8xf32> to vector<2x8x1xf32>
    %293 = vector.broadcast %292 : vector<2x8x1xf32> to vector<2x8x8xf32>
    %294 = arith.subf %290, %293 : vector<2x8x8xf32>
    %295 = math.exp %294 : vector<2x8x8xf32>
    %cst_128 = arith.constant dense<0.000000e+00> : vector<2x8xf32>
    %296 = vector.multi_reduction <add>, %295, %cst_128 [2] : vector<2x8x8xf32> to vector<2x8xf32>
    %297 = vector.shape_cast %296 : vector<2x8xf32> to vector<2x8x1xf32>
    %298 = tpu.reciprocal %297 {approx = true} : vector<2x8x1xf32> -> vector<2x8x1xf32>
    %299 = vector.broadcast %298 : vector<2x8x1xf32> to vector<2x8x8xf32>
    %300 = arith.mulf %295, %299 : vector<2x8x8xf32>
    %301 = arith.truncf %300 : vector<2x8x8xf32> to vector<2x8x8xbf16>
    "tpu.trace_start"() <{level = 10 : i32, message = "bqk,bkd->bqd"}> : () -> ()
    %cst_129 = arith.constant dense<0.000000e+00> : vector<2x8x8xf32>
    %302 = tpu.matmul %301, %289, %cst_129 {dimension_numbers = #tpu.dot_dimension_numbers<[2], [1], [1], [2], [0, 0, 0, 1, 1, 2], [0], [0]>} : vector<2x8x8xbf16>, vector<2x8x8xbf16>, vector<2x8x8xf32> -> vector<2x8x8xf32>
    "tpu.trace_stop"() : () -> ()
    %303 = vector.shape_cast %302 : vector<2x8x8xf32> to vector<16x8xf32>
    %304 = arith.truncf %303 : vector<16x8xf32> to vector<16x8xbf16>
    %c1_130 = arith.constant 1 : index
    %c2_131 = arith.constant 2 : index
    %c0_132 = arith.constant 0 : index
    %c0_133 = arith.constant 0 : index
    %305 = vector.load %arg8[%c1_130, %c2_131, %c0_132, %c0_133] : memref<2x4x8x32xbf16, #tpu.memory_space<vmem>>, vector<1x1x8x32xbf16>
    %306 = vector.shape_cast %305 : vector<1x1x8x32xbf16> to vector<8x32xbf16>
    %cst_134 = arith.constant dense<0.000000e+00> : vector<16x32xf32>
    %307 = tpu.matmul %304, %306, %cst_134 {dimension_numbers = #tpu.dot_dimension_numbers<[1], [0], [0], [1], [0, 0, 1, 1], [], []>} : vector<16x8xbf16>, vector<8x32xbf16>, vector<16x32xf32> -> vector<16x32xf32>
    %308 = arith.addf %280, %307 : vector<16x32xf32>
    %309 = vector.extract_strided_slice %223 {offsets = [0, 24], sizes = [16, 8], strides = [1, 1]} : vector<16x96xf32> to vector<16x8xf32>
    %310 = vector.shape_cast %309 : vector<16x8xf32> to vector<2x8x8xf32>
    %311 = arith.truncf %310 : vector<2x8x8xf32> to vector<2x8x8xbf16>
    %312 = vector.extract_strided_slice %223 {offsets = [0, 56], sizes = [16, 8], strides = [1, 1]} : vector<16x96xf32> to vector<16x8xf32>
    %313 = vector.shape_cast %312 : vector<16x8xf32> to vector<2x8x8xf32>
    %314 = arith.truncf %313 : vector<2x8x8xf32> to vector<2x8x8xbf16>
    %315 = vector.extract_strided_slice %223 {offsets = [0, 88], sizes = [16, 8], strides = [1, 1]} : vector<16x96xf32> to vector<16x8xf32>
    %316 = vector.shape_cast %315 : vector<16x8xf32> to vector<2x8x8xf32>
    %317 = arith.truncf %316 : vector<2x8x8xf32> to vector<2x8x8xbf16>
    "tpu.trace_start"() <{level = 10 : i32, message = "bqd,bkd->bqk"}> : () -> ()
    %cst_135 = arith.constant dense<0.000000e+00> : vector<2x8x8xf32>
    %318 = tpu.matmul %311, %314, %cst_135 {dimension_numbers = #tpu.dot_dimension_numbers<[2], [2], [1], [1], [0, 0, 0, 1, 1, 1], [0], [0]>} : vector<2x8x8xbf16>, vector<2x8x8xbf16>, vector<2x8x8xf32> -> vector<2x8x8xf32>
    "tpu.trace_stop"() : () -> ()
    %cst_136 = arith.constant dense<0xFF800000> : vector<2x8xf32>
    %319 = vector.multi_reduction <maximumf>, %318, %cst_136 [2] : vector<2x8x8xf32> to vector<2x8xf32>
    %320 = vector.shape_cast %319 : vector<2x8xf32> to vector<2x8x1xf32>
    %321 = vector.broadcast %320 : vector<2x8x1xf32> to vector<2x8x8xf32>
    %322 = arith.subf %318, %321 : vector<2x8x8xf32>
    %323 = math.exp %322 : vector<2x8x8xf32>
    %cst_137 = arith.constant dense<0.000000e+00> : vector<2x8xf32>
    %324 = vector.multi_reduction <add>, %323, %cst_137 [2] : vector<2x8x8xf32> to vector<2x8xf32>
    %325 = vector.shape_cast %324 : vector<2x8xf32> to vector<2x8x1xf32>
    %326 = tpu.reciprocal %325 {approx = true} : vector<2x8x1xf32> -> vector<2x8x1xf32>
    %327 = vector.broadcast %326 : vector<2x8x1xf32> to vector<2x8x8xf32>
    %328 = arith.mulf %323, %327 : vector<2x8x8xf32>
    %329 = arith.truncf %328 : vector<2x8x8xf32> to vector<2x8x8xbf16>
    "tpu.trace_start"() <{level = 10 : i32, message = "bqk,bkd->bqd"}> : () -> ()
    %cst_138 = arith.constant dense<0.000000e+00> : vector<2x8x8xf32>
    %330 = tpu.matmul %329, %317, %cst_138 {dimension_numbers = #tpu.dot_dimension_numbers<[2], [1], [1], [2], [0, 0, 0, 1, 1, 2], [0], [0]>} : vector<2x8x8xbf16>, vector<2x8x8xbf16>, vector<2x8x8xf32> -> vector<2x8x8xf32>
    "tpu.trace_stop"() : () -> ()
    %331 = vector.shape_cast %330 : vector<2x8x8xf32> to vector<16x8xf32>
    %332 = arith.truncf %331 : vector<16x8xf32> to vector<16x8xbf16>
    %c1_139 = arith.constant 1 : index
    %c3_140 = arith.constant 3 : index
    %c0_141 = arith.constant 0 : index
    %c0_142 = arith.constant 0 : index
    %333 = vector.load %arg8[%c1_139, %c3_140, %c0_141, %c0_142] : memref<2x4x8x32xbf16, #tpu.memory_space<vmem>>, vector<1x1x8x32xbf16>
    %334 = vector.shape_cast %333 : vector<1x1x8x32xbf16> to vector<8x32xbf16>
    %cst_143 = arith.constant dense<0.000000e+00> : vector<16x32xf32>
    %335 = tpu.matmul %332, %334, %cst_143 {dimension_numbers = #tpu.dot_dimension_numbers<[1], [0], [0], [1], [0, 0, 1, 1], [], []>} : vector<16x8xbf16>, vector<8x32xbf16>, vector<16x32xf32> -> vector<16x32xf32>
    %336 = arith.addf %308, %335 : vector<16x32xf32>
    %c1_144 = arith.constant 1 : index
    %c0_145 = arith.constant 0 : index
    %c0_146 = arith.constant 0 : index
    %337 = vector.load %arg9[%c1_144, %c0_145, %c0_146] : memref<2x1x32xf32, #tpu.memory_space<vmem>>, vector<1x1x32xf32>
    %338 = vector.shape_cast %337 : vector<1x1x32xf32> to vector<1x32xf32>
    %339 = vector.broadcast %338 : vector<1x32xf32> to vector<16x32xf32>
    %340 = arith.addf %336, %339 : vector<16x32xf32>
    %341 = arith.addf %215, %340 : vector<16x32xf32>
    %c1_147 = arith.constant 1 : index
    %c0_148 = arith.constant 0 : index
    %c0_149 = arith.constant 0 : index
    %342 = vector.load %arg10[%c1_147, %c0_148, %c0_149] : memref<2x1x32xf32, #tpu.memory_space<vmem>>, vector<1x1x32xf32>
    %343 = vector.shape_cast %342 : vector<1x1x32xf32> to vector<1x32xf32>
    %c1_150 = arith.constant 1 : index
    %c0_151 = arith.constant 0 : index
    %c0_152 = arith.constant 0 : index
    %344 = vector.load %arg11[%c1_150, %c0_151, %c0_152] : memref<2x1x32xf32, #tpu.memory_space<vmem>>, vector<1x1x32xf32>
    %345 = vector.shape_cast %344 : vector<1x1x32xf32> to vector<1x32xf32>
    %cst_153 = arith.constant dense<0.000000e+00> : vector<16xf32>
    %346 = vector.multi_reduction <add>, %341, %cst_153 [1] : vector<16x32xf32> to vector<16xf32>
    %347 = vector.shape_cast %346 : vector<16xf32> to vector<16x1xf32>
    %cst_154 = arith.constant 3.200000e+01 : f32
    %348 = vector.broadcast %cst_154 : f32 to vector<16x1xf32>
    %349 = arith.divf %347, %348 : vector<16x1xf32>
    %350 = vector.broadcast %349 : vector<16x1xf32> to vector<16x32xf32>
    %351 = arith.subf %341, %350 : vector<16x32xf32>
    %352 = arith.mulf %351, %351 : vector<16x32xf32>
    %cst_155 = arith.constant dense<0.000000e+00> : vector<16xf32>
    %353 = vector.multi_reduction <add>, %352, %cst_155 [1] : vector<16x32xf32> to vector<16xf32>
    %354 = vector.shape_cast %353 : vector<16xf32> to vector<16x1xf32>
    %cst_156 = arith.constant 3.200000e+01 : f32
    %355 = vector.broadcast %cst_156 : f32 to vector<16x1xf32>
    %356 = arith.divf %354, %355 : vector<16x1xf32>
    %357 = vector.broadcast %349 : vector<16x1xf32> to vector<16x32xf32>
    %358 = arith.subf %341, %357 : vector<16x32xf32>
    %cst_157 = arith.constant 9.99999974E-6 : f32
    %359 = vector.broadcast %cst_157 : f32 to vector<16x1xf32>
    %360 = arith.addf %356, %359 : vector<16x1xf32>
    %361 = math.rsqrt %360 : vector<16x1xf32>
    %362 = vector.broadcast %361 : vector<16x1xf32> to vector<16x32xf32>
    %363 = arith.mulf %358, %362 : vector<16x32xf32>
    %364 = vector.broadcast %343 : vector<1x32xf32> to vector<16x32xf32>
    %365 = arith.mulf %363, %364 : vector<16x32xf32>
    %366 = vector.broadcast %345 : vector<1x32xf32> to vector<16x32xf32>
    %367 = arith.addf %365, %366 : vector<16x32xf32>
    %368 = arith.truncf %367 : vector<16x32xf32> to vector<16x32xbf16>
    %c1_158 = arith.constant 1 : index
    %c0_159 = arith.constant 0 : index
    %c0_160 = arith.constant 0 : index
    %369 = vector.load %arg12[%c1_158, %c0_159, %c0_160] : memref<2x32x128xbf16, #tpu.memory_space<vmem>>, vector<1x32x128xbf16>
    %370 = vector.shape_cast %369 : vector<1x32x128xbf16> to vector<32x128xbf16>
    %cst_161 = arith.constant dense<0.000000e+00> : vector<16x128xf32>
    %371 = tpu.matmul %368, %370, %cst_161 {dimension_numbers = #tpu.dot_dimension_numbers<[1], [0], [0], [1], [0, 0, 1, 1], [], []>} : vector<16x32xbf16>, vector<32x128xbf16>, vector<16x128xf32> -> vector<16x128xf32>
    %c1_162 = arith.constant 1 : index
    %c0_163 = arith.constant 0 : index
    %c0_164 = arith.constant 0 : index
    %372 = vector.load %arg13[%c1_162, %c0_163, %c0_164] : memref<2x1x128xf32, #tpu.memory_space<vmem>>, vector<1x1x128xf32>
    %373 = vector.shape_cast %372 : vector<1x1x128xf32> to vector<1x128xf32>
    %374 = vector.broadcast %373 : vector<1x128xf32> to vector<16x128xf32>
    %375 = arith.addf %371, %374 : vector<16x128xf32>
    %cst_165 = arith.constant 0.000000e+00 : f32
    %376 = vector.broadcast %cst_165 : f32 to vector<16x128xf32>
    %377 = arith.maximumf %375, %376 : vector<16x128xf32>
    %378 = arith.truncf %377 : vector<16x128xf32> to vector<16x128xbf16>
    %c1_166 = arith.constant 1 : index
    %c0_167 = arith.constant 0 : index
    %c0_168 = arith.constant 0 : index
    %379 = vector.load %arg14[%c1_166, %c0_167, %c0_168] : memref<2x128x32xbf16, #tpu.memory_space<vmem>>, vector<1x128x32xbf16>
    %380 = vector.shape_cast %379 : vector<1x128x32xbf16> to vector<128x32xbf16>
    %cst_169 = arith.constant dense<0.000000e+00> : vector<16x32xf32>
    %381 = tpu.matmul %378, %380, %cst_169 {dimension_numbers = #tpu.dot_dimension_numbers<[1], [0], [0], [1], [0, 0, 1, 1], [], []>} : vector<16x128xbf16>, vector<128x32xbf16>, vector<16x32xf32> -> vector<16x32xf32>
    %c1_170 = arith.constant 1 : index
    %c0_171 = arith.constant 0 : index
    %c0_172 = arith.constant 0 : index
    %382 = vector.load %arg15[%c1_170, %c0_171, %c0_172] : memref<2x1x32xf32, #tpu.memory_space<vmem>>, vector<1x1x32xf32>
    %383 = vector.shape_cast %382 : vector<1x1x32xf32> to vector<1x32xf32>
    %384 = vector.broadcast %383 : vector<1x32xf32> to vector<16x32xf32>
    %385 = arith.addf %381, %384 : vector<16x32xf32>
    %386 = arith.addf %367, %385 : vector<16x32xf32>
    %c1_173 = arith.constant 1 : index
    %c0_174 = arith.constant 0 : index
    %c0_175 = arith.constant 0 : index
    %387 = vector.load %arg16[%c1_173, %c0_174, %c0_175] : memref<2x1x32xf32, #tpu.memory_space<vmem>>, vector<1x1x32xf32>
    %388 = vector.shape_cast %387 : vector<1x1x32xf32> to vector<1x32xf32>
    %c1_176 = arith.constant 1 : index
    %c0_177 = arith.constant 0 : index
    %c0_178 = arith.constant 0 : index
    %389 = vector.load %arg17[%c1_176, %c0_177, %c0_178] : memref<2x1x32xf32, #tpu.memory_space<vmem>>, vector<1x1x32xf32>
    %390 = vector.shape_cast %389 : vector<1x1x32xf32> to vector<1x32xf32>
    %cst_179 = arith.constant dense<0.000000e+00> : vector<16xf32>
    %391 = vector.multi_reduction <add>, %386, %cst_179 [1] : vector<16x32xf32> to vector<16xf32>
    %392 = vector.shape_cast %391 : vector<16xf32> to vector<16x1xf32>
    %cst_180 = arith.constant 3.200000e+01 : f32
    %393 = vector.broadcast %cst_180 : f32 to vector<16x1xf32>
    %394 = arith.divf %392, %393 : vector<16x1xf32>
    %395 = vector.broadcast %394 : vector<16x1xf32> to vector<16x32xf32>
    %396 = arith.subf %386, %395 : vector<16x32xf32>
    %397 = arith.mulf %396, %396 : vector<16x32xf32>
    %cst_181 = arith.constant dense<0.000000e+00> : vector<16xf32>
    %398 = vector.multi_reduction <add>, %397, %cst_181 [1] : vector<16x32xf32> to vector<16xf32>
    %399 = vector.shape_cast %398 : vector<16xf32> to vector<16x1xf32>
    %cst_182 = arith.constant 3.200000e+01 : f32
    %400 = vector.broadcast %cst_182 : f32 to vector<16x1xf32>
    %401 = arith.divf %399, %400 : vector<16x1xf32>
    %402 = vector.broadcast %394 : vector<16x1xf32> to vector<16x32xf32>
    %403 = arith.subf %386, %402 : vector<16x32xf32>
    %cst_183 = arith.constant 9.99999974E-6 : f32
    %404 = vector.broadcast %cst_183 : f32 to vector<16x1xf32>
    %405 = arith.addf %401, %404 : vector<16x1xf32>
    %406 = math.rsqrt %405 : vector<16x1xf32>
    %407 = vector.broadcast %406 : vector<16x1xf32> to vector<16x32xf32>
    %408 = arith.mulf %403, %407 : vector<16x32xf32>
    %409 = vector.broadcast %388 : vector<1x32xf32> to vector<16x32xf32>
    %410 = arith.mulf %408, %409 : vector<16x32xf32>
    %411 = vector.broadcast %390 : vector<1x32xf32> to vector<16x32xf32>
    %412 = arith.addf %410, %411 : vector<16x32xf32>
    %413 = vector.shape_cast %412 : vector<16x32xf32> to vector<2x8x32xf32>
    %cst_184 = arith.constant 0.000000e+00 : f32
    %414 = vector.broadcast %cst_184 : f32 to vector<2x64xf32>
    %415 = vector.extract_strided_slice %413 {offsets = [0, 0, 0], sizes = [2, 1, 32], strides = [1, 1, 1]} : vector<2x8x32xf32> to vector<2x1x32xf32>
    %416 = vector.shape_cast %415 : vector<2x1x32xf32> to vector<2x32xf32>
    %417 = arith.truncf %416 : vector<2x32xf32> to vector<2x32xbf16>
    %c0_185 = arith.constant 0 : index
    %c0_186 = arith.constant 0 : index
    %c0_187 = arith.constant 0 : index
    %418 = vector.load %arg18[%c0_185, %c0_186, %c0_187] : memref<8x32x64xbf16, #tpu.memory_space<vmem>>, vector<1x32x64xbf16>
    %419 = vector.shape_cast %418 : vector<1x32x64xbf16> to vector<32x64xbf16>
    %cst_188 = arith.constant dense<0.000000e+00> : vector<2x64xf32>
    %420 = tpu.matmul %417, %419, %cst_188 {dimension_numbers = #tpu.dot_dimension_numbers<[1], [0], [0], [1], [0, 0, 1, 1], [], []>} : vector<2x32xbf16>, vector<32x64xbf16>, vector<2x64xf32> -> vector<2x64xf32>
    %421 = arith.addf %414, %420 : vector<2x64xf32>
    %422 = vector.extract_strided_slice %413 {offsets = [0, 1, 0], sizes = [2, 1, 32], strides = [1, 1, 1]} : vector<2x8x32xf32> to vector<2x1x32xf32>
    %423 = vector.shape_cast %422 : vector<2x1x32xf32> to vector<2x32xf32>
    %424 = arith.truncf %423 : vector<2x32xf32> to vector<2x32xbf16>
    %c1_189 = arith.constant 1 : index
    %c0_190 = arith.constant 0 : index
    %c0_191 = arith.constant 0 : index
    %425 = vector.load %arg18[%c1_189, %c0_190, %c0_191] : memref<8x32x64xbf16, #tpu.memory_space<vmem>>, vector<1x32x64xbf16>
    %426 = vector.shape_cast %425 : vector<1x32x64xbf16> to vector<32x64xbf16>
    %cst_192 = arith.constant dense<0.000000e+00> : vector<2x64xf32>
    %427 = tpu.matmul %424, %426, %cst_192 {dimension_numbers = #tpu.dot_dimension_numbers<[1], [0], [0], [1], [0, 0, 1, 1], [], []>} : vector<2x32xbf16>, vector<32x64xbf16>, vector<2x64xf32> -> vector<2x64xf32>
    %428 = arith.addf %421, %427 : vector<2x64xf32>
    %429 = vector.extract_strided_slice %413 {offsets = [0, 2, 0], sizes = [2, 1, 32], strides = [1, 1, 1]} : vector<2x8x32xf32> to vector<2x1x32xf32>
    %430 = vector.shape_cast %429 : vector<2x1x32xf32> to vector<2x32xf32>
    %431 = arith.truncf %430 : vector<2x32xf32> to vector<2x32xbf16>
    %c2_193 = arith.constant 2 : index
    %c0_194 = arith.constant 0 : index
    %c0_195 = arith.constant 0 : index
    %432 = vector.load %arg18[%c2_193, %c0_194, %c0_195] : memref<8x32x64xbf16, #tpu.memory_space<vmem>>, vector<1x32x64xbf16>
    %433 = vector.shape_cast %432 : vector<1x32x64xbf16> to vector<32x64xbf16>
    %cst_196 = arith.constant dense<0.000000e+00> : vector<2x64xf32>
    %434 = tpu.matmul %431, %433, %cst_196 {dimension_numbers = #tpu.dot_dimension_numbers<[1], [0], [0], [1], [0, 0, 1, 1], [], []>} : vector<2x32xbf16>, vector<32x64xbf16>, vector<2x64xf32> -> vector<2x64xf32>
    %435 = arith.addf %428, %434 : vector<2x64xf32>
    %436 = vector.extract_strided_slice %413 {offsets = [0, 3, 0], sizes = [2, 1, 32], strides = [1, 1, 1]} : vector<2x8x32xf32> to vector<2x1x32xf32>
    %437 = vector.shape_cast %436 : vector<2x1x32xf32> to vector<2x32xf32>
    %438 = arith.truncf %437 : vector<2x32xf32> to vector<2x32xbf16>
    %c3_197 = arith.constant 3 : index
    %c0_198 = arith.constant 0 : index
    %c0_199 = arith.constant 0 : index
    %439 = vector.load %arg18[%c3_197, %c0_198, %c0_199] : memref<8x32x64xbf16, #tpu.memory_space<vmem>>, vector<1x32x64xbf16>
    %440 = vector.shape_cast %439 : vector<1x32x64xbf16> to vector<32x64xbf16>
    %cst_200 = arith.constant dense<0.000000e+00> : vector<2x64xf32>
    %441 = tpu.matmul %438, %440, %cst_200 {dimension_numbers = #tpu.dot_dimension_numbers<[1], [0], [0], [1], [0, 0, 1, 1], [], []>} : vector<2x32xbf16>, vector<32x64xbf16>, vector<2x64xf32> -> vector<2x64xf32>
    %442 = arith.addf %435, %441 : vector<2x64xf32>
    %443 = vector.extract_strided_slice %413 {offsets = [0, 4, 0], sizes = [2, 1, 32], strides = [1, 1, 1]} : vector<2x8x32xf32> to vector<2x1x32xf32>
    %444 = vector.shape_cast %443 : vector<2x1x32xf32> to vector<2x32xf32>
    %445 = arith.truncf %444 : vector<2x32xf32> to vector<2x32xbf16>
    %c4 = arith.constant 4 : index
    %c0_201 = arith.constant 0 : index
    %c0_202 = arith.constant 0 : index
    %446 = vector.load %arg18[%c4, %c0_201, %c0_202] : memref<8x32x64xbf16, #tpu.memory_space<vmem>>, vector<1x32x64xbf16>
    %447 = vector.shape_cast %446 : vector<1x32x64xbf16> to vector<32x64xbf16>
    %cst_203 = arith.constant dense<0.000000e+00> : vector<2x64xf32>
    %448 = tpu.matmul %445, %447, %cst_203 {dimension_numbers = #tpu.dot_dimension_numbers<[1], [0], [0], [1], [0, 0, 1, 1], [], []>} : vector<2x32xbf16>, vector<32x64xbf16>, vector<2x64xf32> -> vector<2x64xf32>
    %449 = arith.addf %442, %448 : vector<2x64xf32>
    %450 = vector.extract_strided_slice %413 {offsets = [0, 5, 0], sizes = [2, 1, 32], strides = [1, 1, 1]} : vector<2x8x32xf32> to vector<2x1x32xf32>
    %451 = vector.shape_cast %450 : vector<2x1x32xf32> to vector<2x32xf32>
    %452 = arith.truncf %451 : vector<2x32xf32> to vector<2x32xbf16>
    %c5 = arith.constant 5 : index
    %c0_204 = arith.constant 0 : index
    %c0_205 = arith.constant 0 : index
    %453 = vector.load %arg18[%c5, %c0_204, %c0_205] : memref<8x32x64xbf16, #tpu.memory_space<vmem>>, vector<1x32x64xbf16>
    %454 = vector.shape_cast %453 : vector<1x32x64xbf16> to vector<32x64xbf16>
    %cst_206 = arith.constant dense<0.000000e+00> : vector<2x64xf32>
    %455 = tpu.matmul %452, %454, %cst_206 {dimension_numbers = #tpu.dot_dimension_numbers<[1], [0], [0], [1], [0, 0, 1, 1], [], []>} : vector<2x32xbf16>, vector<32x64xbf16>, vector<2x64xf32> -> vector<2x64xf32>
    %456 = arith.addf %449, %455 : vector<2x64xf32>
    %457 = vector.extract_strided_slice %413 {offsets = [0, 6, 0], sizes = [2, 1, 32], strides = [1, 1, 1]} : vector<2x8x32xf32> to vector<2x1x32xf32>
    %458 = vector.shape_cast %457 : vector<2x1x32xf32> to vector<2x32xf32>
    %459 = arith.truncf %458 : vector<2x32xf32> to vector<2x32xbf16>
    %c6 = arith.constant 6 : index
    %c0_207 = arith.constant 0 : index
    %c0_208 = arith.constant 0 : index
    %460 = vector.load %arg18[%c6, %c0_207, %c0_208] : memref<8x32x64xbf16, #tpu.memory_space<vmem>>, vector<1x32x64xbf16>
    %461 = vector.shape_cast %460 : vector<1x32x64xbf16> to vector<32x64xbf16>
    %cst_209 = arith.constant dense<0.000000e+00> : vector<2x64xf32>
    %462 = tpu.matmul %459, %461, %cst_209 {dimension_numbers = #tpu.dot_dimension_numbers<[1], [0], [0], [1], [0, 0, 1, 1], [], []>} : vector<2x32xbf16>, vector<32x64xbf16>, vector<2x64xf32> -> vector<2x64xf32>
    %463 = arith.addf %456, %462 : vector<2x64xf32>
    %464 = vector.extract_strided_slice %413 {offsets = [0, 7, 0], sizes = [2, 1, 32], strides = [1, 1, 1]} : vector<2x8x32xf32> to vector<2x1x32xf32>
    %465 = vector.shape_cast %464 : vector<2x1x32xf32> to vector<2x32xf32>
    %466 = arith.truncf %465 : vector<2x32xf32> to vector<2x32xbf16>
    %c7 = arith.constant 7 : index
    %c0_210 = arith.constant 0 : index
    %c0_211 = arith.constant 0 : index
    %467 = vector.load %arg18[%c7, %c0_210, %c0_211] : memref<8x32x64xbf16, #tpu.memory_space<vmem>>, vector<1x32x64xbf16>
    %468 = vector.shape_cast %467 : vector<1x32x64xbf16> to vector<32x64xbf16>
    %cst_212 = arith.constant dense<0.000000e+00> : vector<2x64xf32>
    %469 = tpu.matmul %466, %468, %cst_212 {dimension_numbers = #tpu.dot_dimension_numbers<[1], [0], [0], [1], [0, 0, 1, 1], [], []>} : vector<2x32xbf16>, vector<32x64xbf16>, vector<2x64xf32> -> vector<2x64xf32>
    %470 = arith.addf %463, %469 : vector<2x64xf32>
    %c0_213 = arith.constant 0 : index
    %c0_214 = arith.constant 0 : index
    %471 = vector.load %arg19[%c0_213, %c0_214] : memref<1x64xf32, #tpu.memory_space<vmem>>, vector<1x64xf32>
    %472 = vector.broadcast %471 : vector<1x64xf32> to vector<2x64xf32>
    %473 = arith.addf %470, %472 : vector<2x64xf32>
    %cst_215 = arith.constant 0.000000e+00 : f32
    %474 = vector.broadcast %cst_215 : f32 to vector<2x64xf32>
    %475 = arith.maximumf %473, %474 : vector<2x64xf32>
    %476 = arith.truncf %475 : vector<2x64xf32> to vector<2x64xbf16>
    %c0_216 = arith.constant 0 : index
    %c0_217 = arith.constant 0 : index
    %477 = vector.load %arg20[%c0_216, %c0_217] : memref<64x4xbf16, #tpu.memory_space<vmem>>, vector<64x4xbf16>
    %cst_218 = arith.constant dense<0.000000e+00> : vector<2x4xf32>
    %478 = tpu.matmul %476, %477, %cst_218 {dimension_numbers = #tpu.dot_dimension_numbers<[1], [0], [0], [1], [0, 0, 1, 1], [], []>} : vector<2x64xbf16>, vector<64x4xbf16>, vector<2x4xf32> -> vector<2x4xf32>
    %c0_219 = arith.constant 0 : index
    %c0_220 = arith.constant 0 : index
    %479 = vector.load %arg21[%c0_219, %c0_220] : memref<1x4xf32, #tpu.memory_space<vmem>>, vector<1x4xf32>
    %480 = vector.broadcast %479 : vector<1x4xf32> to vector<2x4xf32>
    %481 = arith.addf %478, %480 : vector<2x4xf32>
    %c0_221 = arith.constant 0 : index
    %c0_222 = arith.constant 0 : index
    %482 = vector.load %arg22[%c0_221, %c0_222] : memref<2x4xf32, #tpu.memory_space<vmem>>, vector<2x4xf32>
    tpu.vector_store %arg22[%c0_221, %c0_222], %481 {strides = array<i32>} : memref<2x4xf32, #tpu.memory_space<vmem>>, vector<2x4xf32>,
    return
  }
  func.func @transform_0(%arg0: i32) -> (i32, i32, i32, i32) {
    %c0_i32 = arith.constant 0 : i32
    %c0_i32_0 = arith.constant 0 : i32
    %c0_i32_1 = arith.constant 0 : i32
    %c0_i32_2 = arith.constant 0 : i32
    return %arg0, %c0_i32, %c0_i32_0, %c0_i32_1 : i32, i32, i32, i32
  }
  func.func @transform_1(%arg0: i32) -> (i32, i32, i32, i32) {
    %c0_i32 = arith.constant 0 : i32
    %c0_i32_0 = arith.constant 0 : i32
    %c0_i32_1 = arith.constant 0 : i32
    %c0_i32_2 = arith.constant 0 : i32
    %c0_i32_3 = arith.constant 0 : i32
    return %c0_i32, %c0_i32_0, %c0_i32_1, %c0_i32_2 : i32, i32, i32, i32
  }
  func.func @transform_2(%arg0: i32) -> (i32, i32, i32, i32) {
    %c0_i32 = arith.constant 0 : i32
    %c0_i32_0 = arith.constant 0 : i32
    %c0_i32_1 = arith.constant 0 : i32
    %c0_i32_2 = arith.constant 0 : i32
    %c0_i32_3 = arith.constant 0 : i32
    return %c0_i32, %c0_i32_0, %c0_i32_1, %c0_i32_2 : i32, i32, i32, i32
  }
  func.func @transform_3(%arg0: i32) -> (i32, i32, i32, i32) {
    %c0_i32 = arith.constant 0 : i32
    %c0_i32_0 = arith.constant 0 : i32
    %c0_i32_1 = arith.constant 0 : i32
    %c0_i32_2 = arith.constant 0 : i32
    %c0_i32_3 = arith.constant 0 : i32
    return %c0_i32, %c0_i32_0, %c0_i32_1, %c0_i32_2 : i32, i32, i32, i32
  }
  func.func @transform_4(%arg0: i32) -> (i32, i32, i32) {
    %c0_i32 = arith.constant 0 : i32
    %c0_i32_0 = arith.constant 0 : i32
    %c0_i32_1 = arith.constant 0 : i32
    %c0_i32_2 = arith.constant 0 : i32
    return %c0_i32, %c0_i32_0, %c0_i32_1 : i32, i32, i32
  }
  func.func @transform_5(%arg0: i32) -> (i32, i32, i32) {
    %c0_i32 = arith.constant 0 : i32
    %c0_i32_0 = arith.constant 0 : i32
    %c0_i32_1 = arith.constant 0 : i32
    %c0_i32_2 = arith.constant 0 : i32
    return %c0_i32, %c0_i32_0, %c0_i32_1 : i32, i32, i32
  }
  func.func @transform_6(%arg0: i32) -> (i32, i32, i32) {
    %c0_i32 = arith.constant 0 : i32
    %c0_i32_0 = arith.constant 0 : i32
    %c0_i32_1 = arith.constant 0 : i32
    %c0_i32_2 = arith.constant 0 : i32
    return %c0_i32, %c0_i32_0, %c0_i32_1 : i32, i32, i32
  }
  func.func @transform_7(%arg0: i32) -> (i32, i32, i32, i32) {
    %c0_i32 = arith.constant 0 : i32
    %c0_i32_0 = arith.constant 0 : i32
    %c0_i32_1 = arith.constant 0 : i32
    %c0_i32_2 = arith.constant 0 : i32
    %c0_i32_3 = arith.constant 0 : i32
    return %c0_i32, %c0_i32_0, %c0_i32_1, %c0_i32_2 : i32, i32, i32, i32
  }
  func.func @transform_8(%arg0: i32) -> (i32, i32, i32) {
    %c0_i32 = arith.constant 0 : i32
    %c0_i32_0 = arith.constant 0 : i32
    %c0_i32_1 = arith.constant 0 : i32
    %c0_i32_2 = arith.constant 0 : i32
    return %c0_i32, %c0_i32_0, %c0_i32_1 : i32, i32, i32
  }
  func.func @transform_9(%arg0: i32) -> (i32, i32, i32) {
    %c0_i32 = arith.constant 0 : i32
    %c0_i32_0 = arith.constant 0 : i32
    %c0_i32_1 = arith.constant 0 : i32
    %c0_i32_2 = arith.constant 0 : i32
    return %c0_i32, %c0_i32_0, %c0_i32_1 : i32, i32, i32
  }
  func.func @transform_10(%arg0: i32) -> (i32, i32, i32) {
    %c0_i32 = arith.constant 0 : i32
    %c0_i32_0 = arith.constant 0 : i32
    %c0_i32_1 = arith.constant 0 : i32
    %c0_i32_2 = arith.constant 0 : i32
    return %c0_i32, %c0_i32_0, %c0_i32_1 : i32, i32, i32
  }
  func.func @transform_11(%arg0: i32) -> (i32, i32, i32) {
    %c0_i32 = arith.constant 0 : i32
    %c0_i32_0 = arith.constant 0 : i32
    %c0_i32_1 = arith.constant 0 : i32
    %c0_i32_2 = arith.constant 0 : i32
    return %c0_i32, %c0_i32_0, %c0_i32_1 : i32, i32, i32
  }
  func.func @transform_12(%arg0: i32) -> (i32, i32, i32) {
    %c0_i32 = arith.constant 0 : i32
    %c0_i32_0 = arith.constant 0 : i32
    %c0_i32_1 = arith.constant 0 : i32
    %c0_i32_2 = arith.constant 0 : i32
    return %c0_i32, %c0_i32_0, %c0_i32_1 : i32, i32, i32
  }
  func.func @transform_13(%arg0: i32) -> (i32, i32, i32) {
    %c0_i32 = arith.constant 0 : i32
    %c0_i32_0 = arith.constant 0 : i32
    %c0_i32_1 = arith.constant 0 : i32
    %c0_i32_2 = arith.constant 0 : i32
    return %c0_i32, %c0_i32_0, %c0_i32_1 : i32, i32, i32
  }
  func.func @transform_14(%arg0: i32) -> (i32, i32, i32) {
    %c0_i32 = arith.constant 0 : i32
    %c0_i32_0 = arith.constant 0 : i32
    %c0_i32_1 = arith.constant 0 : i32
    %c0_i32_2 = arith.constant 0 : i32
    return %c0_i32, %c0_i32_0, %c0_i32_1 : i32, i32, i32
  }
  func.func @transform_15(%arg0: i32) -> (i32, i32, i32) {
    %c0_i32 = arith.constant 0 : i32
    %c0_i32_0 = arith.constant 0 : i32
    %c0_i32_1 = arith.constant 0 : i32
    %c0_i32_2 = arith.constant 0 : i32
    return %c0_i32, %c0_i32_0, %c0_i32_1 : i32, i32, i32
  }
  func.func @transform_16(%arg0: i32) -> (i32, i32, i32) {
    %c0_i32 = arith.constant 0 : i32
    %c0_i32_0 = arith.constant 0 : i32
    %c0_i32_1 = arith.constant 0 : i32
    %c0_i32_2 = arith.constant 0 : i32
    return %c0_i32, %c0_i32_0, %c0_i32_1 : i32, i32, i32
  }
  func.func @transform_17(%arg0: i32) -> (i32, i32, i32) {
    %c0_i32 = arith.constant 0 : i32
    %c0_i32_0 = arith.constant 0 : i32
    %c0_i32_1 = arith.constant 0 : i32
    %c0_i32_2 = arith.constant 0 : i32
    return %c0_i32, %c0_i32_0, %c0_i32_1 : i32, i32, i32
  }
  func.func @transform_18(%arg0: i32) -> (i32, i32) {
    %c0_i32 = arith.constant 0 : i32
    %c0_i32_0 = arith.constant 0 : i32
    %c0_i32_1 = arith.constant 0 : i32
    return %c0_i32, %c0_i32_0 : i32, i32
  }
  func.func @transform_19(%arg0: i32) -> (i32, i32) {
    %c0_i32 = arith.constant 0 : i32
    %c0_i32_0 = arith.constant 0 : i32
    %c0_i32_1 = arith.constant 0 : i32
    return %c0_i32, %c0_i32_0 : i32, i32
  }
  func.func @transform_20(%arg0: i32) -> (i32, i32) {
    %c0_i32 = arith.constant 0 : i32
    %c0_i32_0 = arith.constant 0 : i32
    %c0_i32_1 = arith.constant 0 : i32
    return %c0_i32, %c0_i32_0 : i32, i32
  }
  func.func @transform_21(%arg0: i32) -> (i32, i32) {
    %c0_i32 = arith.constant 0 : i32
    %c0_i32_0 = arith.constant 0 : i32
    return %arg0, %c0_i32 : i32, i32
  }
}

</mosaic_0001>

<bundles_post_ra>
// kernel: transformer_forward.1
= control target key start
LH: loop header
LB: loop body
LE: loop exit
PB: predicated region body
PF: predicated region fallthrough
CT: control target
= control target key end

     0   :  { %s6715_s0 = inlined_call_operand.vmem [shape: f32[2,8,1,1], index: 0, kind: input, shape index: {}]   ;;  %s6716_s1 = inlined_call_operand.vmem [shape: f32[1,8,16,1], index: 1, kind: input, shape index: {}]   ;;  %s6717_s2 = inlined_call_operand.vmem [shape: f32[1,8,16,1], index: 2, kind: input, shape index: {}]   ;;  %s6718_s3 = inlined_call_operand.vmem [shape: f32[1,8,16,32], index: 3, kind: input, shape index: {}]   ;;  %s6719_s4 = inlined_call_operand.vmem [shape: f32[1,8,32], index: 4, kind: input, shape index: {}]   ;;  %s6720_s5 = inlined_call_operand.vmem [shape: bf16[2,32,96], index: 5, kind: input, shape index: {}]   ;;  %s6721_s6 = inlined_call_operand.vmem [shape: f32[2,1,96], index: 6, kind: input, shape index: {}]   ;;  %s6722_s7 = inlined_call_operand.vmem [shape: bf16[2,4,8,32], index: 7, kind: input, shape index: {}]   ;;  %s6723_s8 = inlined_call_operand.vmem [shape: f32[2,1,32], index: 8, kind: input, shape index: {}]   ;;  %s6724_s9 = inlined_call_operand.vmem [shape: f32[2,1,32], index: 9, kind: input, shape index: {}]   ;;  %s6725_s10 = inlined_call_operand.vmem [shape: f32[2,1,32], index: 10, kind: input, shape index: {}]   ;;  %s6726_s11 = inlined_call_operand.vmem [shape: bf16[2,32,128], index: 11, kind: input, shape index: {}]   ;;  %s6727_s12 = inlined_call_operand.vmem [shape: f32[2,1,128], index: 12, kind: input, shape index: {}]   ;;  %s6728_s13 = inlined_call_operand.vmem [shape: bf16[2,128,32], index: 13, kind: input, shape index: {}]   ;;  %s6729_s14 = inlined_call_operand.vmem [shape: f32[2,1,32], index: 14, kind: input, shape index: {}]   ;;  %s6730_s15 = inlined_call_operand.vmem [shape: f32[2,1,32], index: 15, kind: input, shape index: {}]   ;;  %s6731_s16 = inlined_call_operand.vmem [shape: f32[2,1,32], index: 16, kind: input, shape index: {}]   ;;  %s6732_s17 = inlined_call_operand.vmem [shape: bf16[8,32,64], index: 17, kind: input, shape index: {}]   ;;  %s6733_s18 = inlined_call_operand.vmem [shape: f32[1,64], index: 18, kind: input, shape index: {}]   ;;  %s6734_s19 = inlined_call_operand.vmem [shape: bf16[64,4], index: 19, kind: input, shape index: {}]   ;;  %s6735_s20 = inlined_call_operand.vmem [shape: f32[1,4], index: 20, kind: input, shape index: {}]   ;;  %s6736_s21 = inlined_call_operand.hbm [shape: f32[2,4], index: 21, kind: output, shape index: {}]  }
   0x1   :  { %6753 = sst [smem:[#allocation5_spill]] %s6715_s0 }
   0x2   :  { %6754 = sst [smem:[#allocation6_spill]] %s6716_s1 }
   0x3   :  { %6755 = sst [smem:[#allocation7_spill]] %s6717_s2 }
   0x4   :  { %6756 = sst [smem:[#allocation8_spill]] %s6718_s3 }
   0x5   :  { %6757 = sst [smem:[#allocation9_spill]] %s6719_s4 }
   0x6   :  { %6758 = sst [smem:[#allocation10_spill]] %s6720_s5 }
   0x7   :  { %6759 = sst [smem:[#allocation11_spill]] %s6731_s16 }
   0x8   :  { %s6760_s26 = sld [smem:[#allocation6_spill]]  ;;  %v4646_v2 = vmov 0  }
   0x9   :  { %s6761_s16 = sld [smem:[#allocation5_spill]]  ;;  %4503 = vset.pattern.permute.xlu2 %v4646_v2  ;;  %4502 = vset.pattern.permute.xlu1 %v4646_v2 }
   0xa   :  { %s6762_s0 = sld [smem:[#allocation7_spill]]  ;;  %4501 = vset.pattern.permute.xlu0 %v4646_v2 }
   0xe   :  { %v88_v0 = vld [vmem:[%s6760_s26 + $0x10] sm:$0xff]  ;;  %v90_v5 = vld [vmem:[%s6760_s26 + $0x20] sm:$0xff]  ;;  %v89_v11 = vld [vmem:[%s6760_s26 + $0x18] sm:$0xff] }
   0xf   :  { %v4504_v1 = vld [vmem:[%s6761_s16 + $0x9] ss:$0 sm:$0xff]  ;;  %v4505_v6 = vld [vmem:[%s6761_s16 + $0x2] ss:$0 sm:$0xff]  ;;  %v4507_v8 = vld [vmem:[%s6761_s16 + $0x1] ss:$0 sm:$0xff] }
  0x10   :  { %v184_v3 = vld [vmem:[%s6762_s0 + $0x10] sm:$0xff]  ;;  %v168_v4 = vmul.f32 %v4504_v1, %v88_v0  ;;  %v186_v7 = vld [vmem:[%s6762_s0 + $0x20] sm:$0xff]  ;;  %v154_v10 = vmul.f32 %v4505_v6, %v90_v5  ;;  %v91_v12 = vld [vmem:[%s6760_s26 + $0x28] sm:$0xff]  ;;  %v152_v13 = vmul.f32 %v4507_v8, %v88_v0  ;;  %v169_v14 = vmul.f32 %v4504_v1, %v89_v11 }
  0x11   :  { %v185_v15 = vld [vmem:[%s6762_s0 + $0x18] sm:$0xff]  ;;  %v155_v18 = vmul.f32 %v4505_v6, %v91_v12  ;;  %v4506_v19 = vld [vmem:[%s6761_s16 + $0xa] ss:$0 sm:$0xff]  ;;  %v153_v22 = vmul.f32 %v4507_v8, %v89_v11  ;;  %v4508_v27 = vld [vmem:[%s6761_s16] ss:$0 sm:$0xff] }
  0x12   :  { %v216_v9 = vadd.f32 %v184_v3, %v168_v4  ;;  %v202_v17 = vadd.f32 %v186_v7, %v154_v10  ;;  %v200_v20 = vadd.f32 %v184_v3, %v152_v13  ;;  %v187_v21 = vld [vmem:[%s6762_s0 + $0x28] sm:$0xff]  ;;  %v217_v24 = vadd.f32 %v185_v15, %v169_v14  ;;  %v86_v30 = vld [vmem:[%s6760_s26] sm:$0xff]  ;;  %v92_v40 = vld [vmem:[%s6760_s26 + $0x30] sm:$0xff] }
  0x13   :  { %v203_v26 = vadd.f32 %v187_v21, %v155_v18  ;;  %v170_v28 = vmul.f32 %v4506_v19, %v90_v5  ;;  %v201_v29 = vadd.f32 %v185_v15, %v153_v22  ;;  %v171_v32 = vmul.f32 %v4506_v19, %v91_v12  ;;  %v182_v37 = vld [vmem:[%s6762_s0] sm:$0xff]  ;;  %v188_v43 = vld [vmem:[%s6762_s0 + $0x30] sm:$0xff]  ;;  %v93_v44 = vld [vmem:[%s6760_s26 + $0x38] sm:$0xff] }
  0x14   :  { %v248_v16 = vmax.f32 %v216_v9, 0.0  ;;  %v234_v23 = vmax.f32 %v202_v17, 0.0  ;;  %v232_v25 = vmax.f32 %v200_v20, 0.0  ;;  %v249_v31 = vmax.f32 %v217_v24, 0.0  ;;  %v4509_v39 = vld [vmem:[%s6761_s16 + $0x3] ss:$0 sm:$0xff] }
  0x15   :  { %v235_v33 = vmax.f32 %v203_v26, 0.0  ;;  %v150_v34 = vmul.f32 %v4508_v27, %v86_v30  ;;  %v218_v35 = vadd.f32 %v186_v7, %v170_v28  ;;  %v233_v36 = vmax.f32 %v201_v29, 0.0  ;;  %v87_v47 = vld [vmem:[%s6760_s26 + $0x8] sm:$0xff]  ;;  %v189_v51 = vld [vmem:[%s6762_s0 + $0x38] sm:$0xff] }
  0x16   :  { %370 = vperm.xlu1 %4502, %v248_v16   ;;  %300 = vperm.xlu2 %4503, %v234_v23   ;;  %v219_v38 = vadd.f32 %v187_v21, %v171_v32  ;;  %v156_v46 = vmul.f32 %v4509_v39, %v92_v40  ;;  %v183_v49 = vld [vmem:[%s6762_s0 + $0x8] sm:$0xff]  ;;  %v157_v50 = vmul.f32 %v4509_v39, %v93_v44 }
  0x17   :  { %290 = vperm.xlu0 %4501, %v232_v25   ;;  %v198_v41 = vadd.f32 %v182_v37, %v150_v34  ;;  %v250_v42 = vmax.f32 %v218_v35, 0.0  ;;  %v4510_v52 = vld [vmem:[%s6761_s16 + $0x8] ss:$0 sm:$0xff]  ;;  %v151_v53 = vmul.f32 %v4508_v27, %v87_v47  ;;  %v4511_v56 = vld [vmem:[%s6761_s16 + $0xb] ss:$0 sm:$0xff] }
  0x18   :  { %v251_v45 = vmax.f32 %v219_v38, 0.0  ;;  %v204_v54 = vadd.f32 %v188_v43, %v156_v46  ;;  %v205_v55 = vadd.f32 %v189_v51, %v157_v50 }
  0x19   :  { %v230_v48 = vmax.f32 %v198_v41, 0.0 }
  0x1e   :  { %375 = vperm.xlu1 %4502, %v249_v31   ;;  %305 = vperm.xlu2 %4503, %v235_v33  }
  0x1f   :  { %295 = vperm.xlu0 %4501, %v233_v36  }
  0x26   :  { %385 = vperm.xlu1 %4502, %v251_v45   ;;  %280 = vperm.xlu2 %4503, %v230_v48  }
  0x27   :  { %26 = vsyncpa [#allocation3], 0  ;;  %380 = vperm.xlu0 %4501, %v250_v42   ;;  %v199_v57 = vadd.f32 %v183_v49, %v151_v53  ;;  %v236_v58 = vmax.f32 %v204_v54, 0.0  ;;  %v167_v59 = vmul.f32 %v4510_v52, %v87_v47  ;;  %v237_v60 = vmax.f32 %v205_v55, 0.0  ;;  %v4512_v1 = vld [vmem:[%s6761_s16 + $0x4] ss:$0 sm:$0xff] }
  0x28   :  { %v172_v61 = vmul.f32 %v4511_v56, %v92_v40  ;;  %v166_v63 = vmul.f32 %v4510_v52, %v86_v30  ;;  %v94_v2 = vld [vmem:[%s6760_s26 + $0x40] sm:$0xff]  ;;  %v95_v5 = vld [vmem:[%s6760_s26 + $0x48] sm:$0xff]  ;;  %v173_v12 = vmul.f32 %v4511_v56, %v93_v44  ;;  %v96_v19 = vld [vmem:[%s6760_s26 + $0x50] sm:$0xff]  ;;  %vm470_vm0 = vcmask 261120   ;;  %s6764_s2 = sld [smem:[#allocation9_spill]]  ;;  %s4647_s25 = smov 96  }
  0x29   :  { %v231_v62 = vmax.f32 %v199_v57, 0.0  ;;  %v215_v0 = vadd.f32 %v183_v49, %v167_v59  ;;  %v158_v7 = vmul.f32 %v4512_v1, %v94_v2  ;;  %v190_v8 = vld [vmem:[%s6762_s0 + $0x40] sm:$0xff]  ;;  %v159_v10 = vmul.f32 %v4512_v1, %v95_v5  ;;  %v191_v13 = vld [vmem:[%s6762_s0 + $0x48] sm:$0xff]  ;;  %v192_v26 = vld [vmem:[%s6762_s0 + $0x50] sm:$0xff]  ;;  %s6765_s5 = sld [smem:[#allocation10_spill]]  ;;  %s4648_s27 = smov 120  }
  0x2a   :  { %v220_v3 = vadd.f32 %v188_v43, %v172_v61  ;;  %v214_v4 = vadd.f32 %v182_v37, %v166_v63  ;;  %v4513_v15 = vld [vmem:[%s6761_s16 + $0xc] ss:$0 sm:$0xff]  ;;  %v4514_v17 = vld [vmem:[%s6761_s16 + $0x5] ss:$0 sm:$0xff]  ;;  %v221_v18 = vadd.f32 %v189_v51, %v173_v12  ;;  %v4515_v28 = vld [vmem:[%s6761_s16 + $0xd] ss:$0 sm:$0xff] }
  0x2b   :  { %v247_v6 = vmax.f32 %v215_v0, 0.0  ;;  %v206_v14 = vadd.f32 %v190_v8, %v158_v7  ;;  %v207_v16 = vadd.f32 %v191_v13, %v159_v10  ;;  %v175_v21 = vmul.f32 %v4513_v15, %v95_v5  ;;  %v97_v31 = vld [vmem:[%s6760_s26 + $0x58] sm:$0xff]  ;;  %v4516_v40 = vld [vmem:[%s6761_s16 + $0x6] ss:$0 sm:$0xff]  ;;  %v99_v41 = vld [vmem:[%s6760_s26 + $0x68] sm:$0xff]  ;;  %s4649_s3 = smov 88  }
  0x2c   :  { %v252_v9 = vmax.f32 %v220_v3, 0.0  ;;  %v246_v11 = vmax.f32 %v214_v4, 0.0  ;;  %v160_v23 = vmul.f32 %v4514_v17, %v96_v19  ;;  %v253_v24 = vmax.f32 %v221_v18, 0.0  ;;  %v193_v38 = vld [vmem:[%s6762_s0 + $0x58] sm:$0xff]  ;;  %v4517_v43 = vld [vmem:[%s6761_s16 + $0xe] ss:$0 sm:$0xff] }
  0x2d   :  { %v238_v20 = vmax.f32 %v206_v14, 0.0  ;;  %v239_v22 = vmax.f32 %v207_v16, 0.0  ;;  %v174_v25 = vmul.f32 %v4513_v15, %v94_v2  ;;  %v223_v27 = vadd.f32 %v191_v13, %v175_v21  ;;  %v98_v45 = vld [vmem:[%s6760_s26 + $0x60] sm:$0xff]  ;;  %v195_v48 = vld [vmem:[%s6762_s0 + $0x68] sm:$0xff]  ;;  %v100_v56 = vld [vmem:[%s6760_s26 + $0x70] sm:$0xff]  ;;  %s6751_s28 = smov 56  }
  0x2e   :  { %310 = vperm.xlu1 %4502, %v236_v58   ;;  %315 = vperm.xlu2 %4503, %v237_v60   ;;  %v208_v29 = vadd.f32 %v192_v26, %v160_v23  ;;  %v176_v33 = vmul.f32 %v4515_v28, %v96_v19  ;;  %v177_v35 = vmul.f32 %v4515_v28, %v97_v31  ;;  %v194_v53 = vld [vmem:[%s6762_s0 + $0x60] sm:$0xff]  ;;  %v101_v59 = vld [vmem:[%s6760_s26 + $0x78] sm:$0xff]  ;;  %v4519_v5 = vld [vmem:[%s6761_s16 + $0xf] ss:$0 sm:$0xff]  ;;  %vm705_vm1 = vcmask 1041409   ;;  %s6749_s26 = smov 48  }
  0x2f   :  { %285 = vperm.xlu0 %4501, %v231_v62   ;;  %v222_v30 = vadd.f32 %v190_v8, %v174_v25  ;;  %v255_v32 = vmax.f32 %v223_v27, 0.0  ;;  %v161_v37 = vmul.f32 %v4514_v17, %v97_v31  ;;  %v163_v47 = vmul.f32 %v4516_v40, %v99_v41  ;;  %v4518_v55 = vld [vmem:[%s6761_s16 + $0x7] ss:$0 sm:$0xff]  ;;  %v196_v62 = vld [vmem:[%s6762_s0 + $0x70] sm:$0xff]  ;;  %v197_v3 = vld [vmem:[%s6762_s0 + $0x78] sm:$0xff]  ;;  %s6763_s0 = sld [smem:[#allocation8_spill]] }
  0x30   :  { %v240_v34 = vmax.f32 %v208_v29, 0.0  ;;  %v224_v39 = vadd.f32 %v192_v26, %v176_v33  ;;  %v225_v42 = vadd.f32 %v193_v38, %v177_v35  ;;  %v178_v50 = vmul.f32 %v4517_v43, %v98_v45  ;;  %s4651_s16 = smov 80   ;;  %s4653_s29 = smov 112  }
  0x31   :  { %v254_v36 = vmax.f32 %v222_v30, 0.0  ;;  %v209_v44 = vadd.f32 %v193_v38, %v161_v37  ;;  %v162_v52 = vmul.f32 %v4516_v40, %v98_v45  ;;  %v211_v54 = vadd.f32 %v195_v48, %v163_v47  ;;  %s4654_s4 = smov 64   ;;  %s6747_s23 = smov 72  }
  0x32   :  { %v256_v46 = vmax.f32 %v224_v39, 0.0  ;;  %v257_v49 = vmax.f32 %v225_v42, 0.0  ;;  %v226_v57 = vadd.f32 %v194_v53, %v178_v50  ;;  %v164_v61 = vmul.f32 %v4518_v55, %v100_v56  ;;  %s6745_s1 = smov 104  }
  0x33   :  { %v241_v51 = vmax.f32 %v209_v44, 0.0  ;;  %v210_v58 = vadd.f32 %v194_v53, %v162_v52  ;;  %v243_v60 = vmax.f32 %v211_v54, 0.0  ;;  %v165_v0 = vmul.f32 %v4518_v55, %v101_v59 }
  0x34   :  { %v258_v63 = vmax.f32 %v226_v57, 0.0  ;;  %v179_v2 = vmul.f32 %v4517_v43, %v99_v41  ;;  %v212_v4 = vadd.f32 %v196_v62, %v164_v61  ;;  %v180_v12 = vmul.f32 %v4519_v5, %v100_v56 }
  0x35   :  { %v242_v1 = vmax.f32 %v210_v58, 0.0  ;;  %v265_v23 = vld [vmem:[%s6763_s0 + $0x18] sm:$0xff]  ;;  %v266_v27 = vld [vmem:[%s6763_s0 + $0x20] sm:$0xff]  ;;  %v267_v28 = vld [vmem:[%s6763_s0 + $0x28] sm:$0xff]  ;;  %vm708_vm2 = vcmask 1042434   ;;  %vm711_vm3 = vcmask 1043459  }
  0x36   :  { %365 = vperm.xlu1 %4502, %v247_v6   ;;  %390 = vperm.xlu2 %4503, %v252_v9   ;;  %v213_v6 = vadd.f32 %v197_v3, %v165_v0  ;;  %v227_v7 = vadd.f32 %v195_v48, %v179_v2  ;;  %v244_v8 = vmax.f32 %v212_v4, 0.0  ;;  %v181_v9 = vmul.f32 %v4519_v5, %v101_v59  ;;  %v4935_v58 = vld [vmem:[%s6764_s2] sm:$0xff]  ;;  %v263_v61 = vld [vmem:[%s6763_s0 + $0x8] sm:$0xff]  ;;  %v269_v2 = vld [vmem:[%s6763_s0 + $0x38] sm:$0xff]  ;;  %s6743_s2 = smov 40  }
  0x37   :  { %360 = vperm.xlu0 %4501, %v246_v11   ;;  %v228_v14 = vadd.f32 %v196_v62, %v180_v12  ;;  %v618_v62 = vrot.slane %v4935_v58, 2  ;;  %vm714_vm4 = vcmask 1044484   ;;  %vm717_vm5 = vcmask 1045509  }
  0x38   :  { %v245_v10 = vmax.f32 %v213_v6, 0.0  ;;  %v259_v11 = vmax.f32 %v227_v7, 0.0  ;;  %v229_v13 = vadd.f32 %v197_v3, %v181_v9  ;;  %v268_v3 = vld [vmem:[%s6763_s0 + $0x30] sm:$0xff]  ;;  %vm720_vm6 = vcmask 1046534  }
  0x39   :  { %v260_v16 = vmax.f32 %v228_v14, 0.0  ;;  %vm723_vm7 = vcmask 1047559   ;;  %vm776_vm8 = vcmask 64512   ;;  %vm849_vm9 = vcmask 1043456  }
  0x3a   :  { %v261_v15 = vmax.f32 %v229_v13, 0.0 }
  0x3e   :  { %320 = vperm.xlu1 %4502, %v238_v20   ;;  %325 = vperm.xlu2 %4503, %v239_v22   ;;  %v264_v22 = vld [vmem:[%s6763_s0 + $0x10] sm:$0xff] }
  0x3f   :  { %395 = vperm.xlu0 %4501, %v253_v24  }
  0x46   :  { %405 = vperm.xlu1 %4502, %v255_v32   ;;  %330 = vperm.xlu2 %4503, %v240_v34  }
  0x47   :  { %400 = vperm.xlu0 %4501, %v254_v36  }
  0x4e   :  { %410 = vperm.xlu1 %4502, %v256_v46   ;;  %415 = vperm.xlu2 %4503, %v257_v49  }
  0x4f   :  { %335 = vperm.xlu0 %4501, %v241_v51  }
  0x56   :  { %345 = vperm.xlu1 %4502, %v243_v60   ;;  %420 = vperm.xlu2 %4503, %v258_v63  }
  0x57   :  { %340 = vperm.xlu0 %4501, %v242_v1   ;;  %v262_v1 = vld [vmem:[%s6763_s0] sm:$0xff] }
  0x5e   :  { %350 = vperm.xlu1 %4502, %v244_v8   ;;  %355 = vperm.xlu2 %4503, %v245_v10  }
  0x5f   :  { %425 = vperm.xlu0 %4501, %v259_v11  }
  0x66   :  { %435 = vperm.xlu1 %4502, %v261_v15  }
  0x67   :  { %430 = vperm.xlu0 %4501, %v260_v16  }
  0x70   :  { %v301_v17 = vpop.permute.xlu2 %300 }
  0x71   :  { %v442_v34 = vmul.f32 %v301_v17, %v266_v27 }
  0x73   :  { %v489_v41 = vsel %vm470_vm0, %v442_v34, 0.0 }
  0x78   :  { %v306_v18 = vpop.permute.xlu2 %305 }
  0x79   :  { %v443_v35 = vmul.f32 %v306_v18, %v267_v28 }
  0x7b   :  { %v490_v42 = vsel %vm470_vm0, %v443_v35, 0.0 }
  0x7c   :  { %v491_v45 = vadd.f32 %v490_v42, %v489_v41  ;;  %v273_v41 = vld [vmem:[%s6763_s0 + $0x58] sm:$0xff] }
  0x7e   :  { %v492_v47 = vrot.slane %v491_v45, 4 }
  0x80   :  { %v281_v19 = vpop.permute.xlu2 %280  ;;  %v493_v49 = vadd.f32 %v492_v47, %v491_v45 }
  0x81   :  { %v438_v9 = vmul.f32 %v281_v19, %v262_v1 }
  0x82   :  { %v494_v52 = vrot.slane %v493_v49, 2 }
  0x84   :  { %v495_v54 = vadd.f32 %v494_v52, %v493_v49 }
  0x86   :  { %v496_v57 = vrot.slane %v495_v54, 1 }
  0x88   :  { %v371_v20 = vpop.permute.xlu1 %370  ;;  %v316_v25 = vpop.permute.xlu2 %315  ;;  %v497_v63 = vadd.f32 %v496_v57, %v495_v54 }
  0x89   :  { %v291_v21 = vpop.permute.xlu0 %290  ;;  %v456_v24 = vmul.f32 %v371_v20, %v264_v22  ;;  %v445_v10 = vmul.f32 %v316_v25, %v269_v2  ;;  %v271_v20 = vld [vmem:[%s6763_s0 + $0x48] sm:$0xff] }
  0x8a   :  { %v440_v30 = vmul.f32 %v291_v21, %v264_v22  ;;  %v4952_v8 = vadd.f32 %v618_v62, %v497_v63 }
  0x8b   :  { %v552_v31 = vsel %vm470_vm0, %v456_v24, 0.0  ;;  %v499_v24 = vsel %vm470_vm0, %v445_v10, 0.0 }
  0x8c   :  { %v480_v38 = vsel %vm470_vm0, %v440_v30, 0.0  ;;  %v655_v19 = vpack.c.bf16 %v4952_v8, %v4952_v8 }
  0x8e   :  { %v4977_v45 = vunpack.c.l.b16 %v655_v19 }
  0x90   :  { %v376_v26 = vpop.permute.xlu1 %375  ;;  %v391_v44 = vpop.permute.xlu2 %390 }
  0x91   :  { %v457_v29 = vmul.f32 %v376_v26, %v265_v23  ;;  %v296_v33 = vpop.permute.xlu0 %295  ;;  %v460_v25 = vmul.f32 %v391_v44, %v268_v3 }
  0x92   :  { %v441_v37 = vmul.f32 %v296_v33, %v265_v23  ;;  %v471_v23 = vsel %vm470_vm0, %v438_v9, 0.0 }
  0x93   :  { %v553_v32 = vsel %vm470_vm0, %v457_v29, 0.0 }
  0x94   :  { %v554_v36 = vadd.f32 %v553_v32, %v552_v31  ;;  %v481_v39 = vsel %vm470_vm0, %v441_v37, 0.0  ;;  %v270_v31 = vld [vmem:[%s6763_s0 + $0x40] sm:$0xff]  ;;  %v617_v32 = vrot.slane %v4935_v58, 1 }
  0x95   :  { %v482_v40 = vadd.f32 %v481_v39, %v480_v38 }
  0x96   :  { %v555_v60 = vrot.slane %v554_v36, 4 }
  0x97   :  { %v483_v7 = vrot.slane %v482_v40, 4 }
  0x98   :  { %v386_v43 = vpop.permute.xlu1 %385  ;;  %v326_v50 = vpop.permute.xlu2 %325  ;;  %v556_v4 = vadd.f32 %v555_v60, %v554_v36  ;;  %v272_v36 = vld [vmem:[%s6763_s0 + $0x50] sm:$0xff] }
  0x99   :  { %v381_v46 = vpop.permute.xlu0 %380  ;;  %v459_v12 = vmul.f32 %v386_v43, %v267_v28  ;;  %v484_v18 = vadd.f32 %v483_v7, %v482_v40  ;;  %v447_v34 = vmul.f32 %v326_v50, %v271_v20 }
  0x9a   :  { %v458_v13 = vmul.f32 %v381_v46, %v266_v27  ;;  %v557_v15 = vrot.slane %v556_v4, 2  ;;  %v570_v46 = vsel %vm470_vm0, %v460_v25, 0.0 }
  0x9b   :  { %v562_v27 = vsel %vm470_vm0, %v459_v12, 0.0  ;;  %v485_v35 = vrot.slane %v484_v18, 2  ;;  %v508_v57 = vsel %vm470_vm0, %v447_v34, 0.0  ;;  %v5008_v34 = vld [vmem:[%s6763_s0 + $0x78] sm:$0xff] }
  0x9c   :  { %v561_v28 = vsel %vm470_vm0, %v458_v13, 0.0  ;;  %v558_v33 = vadd.f32 %v557_v15, %v556_v4  ;;  %v4994_v15 = vld [vmem:[%s6763_s0 + $0x68] sm:$0xff] }
  0x9d   :  { %v563_v40 = vadd.f32 %v562_v27, %v561_v28 }
  0x9e   :  { %v559_v50 = vrot.slane %v558_v33, 1 }
  0xa0   :  { %v311_v48 = vpop.permute.xlu1 %310  ;;  %v331_v56 = vpop.permute.xlu2 %330 }
  0xa1   :  { %v286_v51 = vpop.permute.xlu0 %285  ;;  %v444_v5 = vmul.f32 %v311_v48, %v268_v3 }
  0xa2   :  { %v439_v6 = vmul.f32 %v286_v51, %v263_v61  ;;  %v448_v51 = vmul.f32 %v331_v56, %v272_v36 }
  0xa3   :  { %v498_v16 = vsel %vm470_vm0, %v444_v5, 0.0 }
  0xa4   :  { %v472_v17 = vsel %vm470_vm0, %v439_v6, 0.0  ;;  %v500_v29 = vadd.f32 %v499_v24, %v498_v16  ;;  %v560_v6 = vadd.f32 %v559_v50, %v558_v33  ;;  %v516_v7 = vsel %vm470_vm0, %v448_v51, 0.0  ;;  %v274_v33 = vld [vmem:[%s6763_s0 + $0x60] sm:$0xff] }
  0xa5   :  { %v473_v30 = vadd.f32 %v472_v17, %v471_v23 }
  0xa6   :  { %v501_v47 = vrot.slane %v500_v29, 4  ;;  %v5000_v27 = vadd.f32 %v617_v32, %v560_v6 }
  0xa7   :  { %v474_v48 = vrot.slane %v473_v30, 4 }
  0xa8   :  { %v366_v53 = vpop.permute.xlu1 %365  ;;  %v416_v11 = vpop.permute.xlu2 %415  ;;  %v502_v3 = vadd.f32 %v501_v47, %v500_v29 }
  0xa9   :  { %v361_v55 = vpop.permute.xlu0 %360  ;;  %v455_v21 = vmul.f32 %v366_v53, %v263_v61  ;;  %v465_v60 = vmul.f32 %v416_v11, %v273_v41  ;;  %v564_v61 = vrot.slane %v563_v40, 4  ;;  %v475_v56 = vadd.f32 %v474_v48, %v473_v30  ;;  %v4444_v48 = vld [vmem:[%s6765_s5 + $0x8] sm:$0xff] }
  0xaa   :  { %v454_v22 = vmul.f32 %v361_v55, %v262_v1  ;;  %v486_v55 = vadd.f32 %v485_v35, %v484_v18  ;;  %761 = vmatpush.bf16.msra.mxu0 %v4444_v48 }
  0xab   :  { %v544_v37 = vsel %vm470_vm0, %v455_v21, 0.0  ;;  %v589_v11 = vsel %vm470_vm0, %v465_v60, 0.0  ;;  %v565_v17 = vadd.f32 %v564_v61, %v563_v40  ;;  %v503_v21 = vrot.slane %v502_v3, 2  ;;  %v4443_v61 = vld [vmem:[%s6765_s5] sm:$0xff] }
  0xac   :  { %v543_v38 = vsel %vm470_vm0, %v454_v22, 0.0  ;;  %v487_v16 = vrot.slane %v486_v55, 1  ;;  %v476_v22 = vrot.slane %v475_v56, 2 }
  0xad   :  { %v545_v52 = vadd.f32 %v544_v37, %v543_v38 }
  0xae   :  { %v488_v30 = vadd.f32 %v487_v16, %v486_v55  ;;  %v477_v40 = vadd.f32 %v476_v22, %v475_v56  ;;  %v662_v55 = vpack.c.bf16 %v5000_v27, %v5000_v27  ;;  %762 = vmatpush.bf16.msra.mxu0 %v4443_v61 }
  0xaf   :  { %v546_v9 = vrot.slane %v545_v52, 4 }
  0xb0   :  { %v321_v59 = vpop.permute.xlu1 %320  ;;  %v4980_v53 = vpop.permute.xlu2 %420 }
  0xb1   :  { %v396_v0 = vpop.permute.xlu0 %395  ;;  %v446_v42 = vmul.f32 %v321_v59, %v270_v31  ;;  %v547_v23 = vadd.f32 %v546_v9, %v545_v52 }
  0xb2   :  { %v461_v39 = vmul.f32 %v396_v0, %v269_v2 }
  0xb3   :  { %v507_v63 = vsel %vm470_vm0, %v446_v42, 0.0 }
  0xb4   :  { %v571_v59 = vsel %vm470_vm0, %v461_v39, 0.0  ;;  %v509_v12 = vadd.f32 %v508_v57, %v507_v63  ;;  %v504_v39 = vadd.f32 %v503_v21, %v502_v3  ;;  %v5030_v63 = vadd.f32 %v617_v32, %v488_v30 }
  0xb5   :  { %v572_v10 = vadd.f32 %v571_v59, %v570_v46  ;;  %v620_v46 = vrot.slane %v4935_v58, 4 }
  0xb6   :  { %v510_v28 = vrot.slane %v509_v12, 4 }
  0xb7   :  { %v573_v24 = vrot.slane %v572_v10, 4 }
  0xb8   :  { %v406_v14 = vpop.permute.xlu1 %405  ;;  %v356_v35 = vpop.permute.xlu2 %355 }
  0xb9   :  { %v401_v26 = vpop.permute.xlu0 %400  ;;  %v463_v43 = vmul.f32 %v406_v14, %v271_v20  ;;  %v574_v47 = vadd.f32 %v573_v24, %v572_v10  ;;  %v453_v51 = vmul.f32 %v356_v35, %v5008_v34 }
  0xba   :  { %v462_v44 = vmul.f32 %v401_v26, %v270_v31  ;;  %v707_v26 = vrot.slane %v4977_v45, 6  ;;  %v566_v31 = vrot.slane %v565_v17, 2 }
  0xbb   :  { %v580_v0 = vsel %vm470_vm0, %v463_v43, 0.0  ;;  %v619_v43 = vrot.slane %v4935_v58, 3  ;;  %v575_v56 = vrot.slane %v574_v47, 2 }
  0xbc   :  { %v579_v1 = vsel %vm470_vm0, %v462_v44, 0.0  ;;  %v548_v44 = vrot.slane %v547_v23, 2 }
  0xbd   :  { %v581_v13 = vadd.f32 %v580_v0, %v579_v1  ;;  %v567_v0 = vadd.f32 %v566_v31, %v565_v17  ;;  %v505_v1 = vrot.slane %v504_v39, 1  ;;  %v576_v22 = vadd.f32 %v575_v56, %v574_v47 }
  0xbe   :  { %v621_v56 = vrot.slane %v4935_v58, 5 }
  0xbf   :  { %v582_v29 = vrot.slane %v581_v13, 4  ;;  %v568_v17 = vrot.slane %v567_v0, 1 }
  0xc0   :  { %v411_v49 = vpop.permute.xlu1 %410 }
  0xc1   :  { %v464_v54 = vmul.f32 %v411_v49, %v272_v36  ;;  %v336_v2 = vpop.permute.xlu0 %335  ;;  %v511_v49 = vadd.f32 %v510_v28, %v509_v12  ;;  %v583_v50 = vadd.f32 %v582_v29, %v581_v13 }
  0xc2   :  { %v449_v5 = vmul.f32 %v336_v2, %v273_v41  ;;  %v478_v2 = vrot.slane %v477_v40, 1 }
  0xc3   :  { %v588_v4 = vsel %vm470_vm0, %v464_v54, 0.0  ;;  %v5021_v54 = vld [vmem:[%s6763_s0 + $0x70] sm:$0xff]  ;;  %v512_v9 = vrot.slane %v511_v49, 2  ;;  %v584_v10 = vrot.slane %v583_v50, 2 }
  0xc4   :  { %v517_v14 = vsel %vm470_vm0, %v449_v5, 0.0  ;;  %v590_v18 = vadd.f32 %v589_v11, %v588_v4  ;;  %v466_v4 = vmul.f32 %v4980_v53, %v274_v33  ;;  %v535_v11 = vsel %vm470_vm0, %v453_v51, 0.0 }
  0xc5   :  { %v518_v20 = vadd.f32 %v517_v14, %v516_v7  ;;  %v549_v7 = vadd.f32 %v548_v44, %v547_v23  ;;  %v479_v21 = vadd.f32 %v478_v2, %v477_v40  ;;  %v513_v24 = vadd.f32 %v512_v9, %v511_v49 }
  0xc6   :  { %v591_v36 = vrot.slane %v590_v18, 4 }
  0xc7   :  { %v519_v37 = vrot.slane %v518_v20, 4  ;;  %v550_v30 = vrot.slane %v549_v7, 1  ;;  %v5042_v40 = vadd.f32 %v4935_v58, %v479_v21  ;;  %v514_v48 = vrot.slane %v513_v24, 1 }
  0xc8   :  { %v346_v19 = vpop.permute.xlu1 %345  ;;  %v592_v57 = vadd.f32 %v591_v36, %v590_v18  ;;  %v506_v18 = vadd.f32 %v505_v1, %v504_v39  ;;  %v654_v36 = vpack.c.bf16 %v5030_v63, %v5030_v63 }
  0xc9   :  { %v451_v25 = vmul.f32 %v346_v19, %v4994_v15  ;;  %v341_v38 = vpop.permute.xlu0 %340  ;;  %v520_v60 = vadd.f32 %v519_v37, %v518_v20  ;;  %v597_v19 = vsel %vm470_vm0, %v466_v4, 0.0  ;;  %v569_v37 = vadd.f32 %v568_v17, %v567_v0 }
  0xca   :  { %v450_v42 = vmul.f32 %v341_v38, %v274_v33  ;;  %v593_v12 = vrot.slane %v592_v57, 2  ;;  %v5047_v47 = vadd.f32 %v619_v43, %v506_v18  ;;  %v551_v51 = vadd.f32 %v550_v30, %v549_v7 }
  0xcb   :  { %v526_v41 = vsel %vm470_vm0, %v451_v25, 0.0  ;;  %v521_v13 = vrot.slane %v520_v60, 2  ;;  %v585_v25 = vadd.f32 %v584_v10, %v583_v50  ;;  %v689_v21 = vunpack.c.l.b16 %v654_v36 }
  0xcc   :  { %v525_v52 = vsel %vm470_vm0, %v450_v42, 0.0  ;;  %v594_v31 = vadd.f32 %v593_v12, %v592_v57 }
  0xcd   :  { %v527_v59 = vadd.f32 %v526_v41, %v525_v52  ;;  %v522_v33 = vadd.f32 %v521_v13, %v520_v60  ;;  %v577_v41 = vrot.slane %v576_v22, 1  ;;  %v586_v49 = vrot.slane %v585_v25, 1 }
  0xce   :  { %v595_v52 = vrot.slane %v594_v31, 1  ;;  %v704_v36 = vrot.slane %v689_v21, 7 }
  0xcf   :  { %v528_v5 = vrot.slane %v527_v59, 4  ;;  %v523_v57 = vrot.slane %v522_v33, 1 }
  0xd0   :  { %v351_v3 = vpop.permute.xlu1 %350  ;;  %v596_v10 = vadd.f32 %v595_v52, %v594_v31 }
  0xd1   :  { %v452_v6 = vmul.f32 %v351_v3, %v5021_v54  ;;  %v529_v14 = vadd.f32 %v528_v5, %v527_v59  ;;  %v426_v16 = vpop.permute.xlu0 %425  ;;  %v578_v3 = vadd.f32 %v577_v41, %v576_v22  ;;  %v515_v5 = vadd.f32 %v514_v48, %v513_v24 }
  0xd2   :  { %v467_v53 = vmul.f32 %v426_v16, %v4994_v15  ;;  %v623_v16 = vrot.slane %v4935_v58, 7  ;;  %v5066_v22 = vadd.f32 %v618_v62, %v569_v37  ;;  %v5076_v24 = vadd.f32 %v621_v56, %v596_v10 }
  0xd3   :  { %v534_v32 = vsel %vm470_vm0, %v452_v6, 0.0  ;;  %v530_v23 = vrot.slane %v529_v14, 2  ;;  %v587_v6 = vadd.f32 %v586_v49, %v585_v25  ;;  %v5062_v17 = vadd.f32 %v619_v43, %v578_v3 }
  0xd4   :  { %v536_v20 = vadd.f32 %v535_v11, %v534_v32  ;;  %v598_v29 = vsel %vm470_vm0, %v467_v53, 0.0  ;;  %v524_v11 = vadd.f32 %v523_v57, %v522_v33  ;;  %v663_v37 = vpack.c.bf16 %v5066_v22, %v5066_v22 }
  0xd5   :  { %v599_v35 = vadd.f32 %v598_v29, %v597_v19  ;;  %v531_v38 = vadd.f32 %v530_v23, %v529_v14  ;;  %v5056_v14 = vadd.f32 %v4935_v58, %v551_v51  ;;  %v5070_v19 = vadd.f32 %v620_v46, %v515_v5 }
  0xd6   :  { %v537_v28 = vrot.slane %v536_v20, 4  ;;  %v5074_v23 = vadd.f32 %v620_v46, %v587_v6  ;;  %v5078_v43 = vadd.f32 %v621_v56, %v524_v11  ;;  %v656_v29 = vpack.c.bf16 %v5047_v47, %v5047_v47 }
  0xd7   :  { %v600_v42 = vrot.slane %v599_v35, 4  ;;  %v532_v61 = vrot.slane %v531_v38, 1  ;;  %v661_v62 = vpack.c.bf16 %v5056_v14, %v5056_v14  ;;  %v666_v41 = vpack.c.bf16 %v5076_v24, %v5076_v24 }
  0xd8   :  { %v538_v15 = vadd.f32 %v537_v28, %v536_v20  ;;  %v436_v39 = vpop.permute.xlu1 %435  ;;  %v691_v48 = vunpack.c.l.b16 %v656_v29 }
  0xd9   :  { %v469_v44 = vmul.f32 %v436_v39, %v5008_v34  ;;  %v601_v60 = vadd.f32 %v600_v42, %v599_v35  ;;  %v431_v59 = vpop.permute.xlu0 %430  ;;  %v653_v34 = vpack.c.bf16 %v5042_v40, %v5042_v40  ;;  %v533_v32 = vadd.f32 %v532_v61, %v531_v38 }
  0xda   :  { %v539_v50 = vrot.slane %v538_v15, 2  ;;  %v468_v2 = vmul.f32 %v431_v59, %v5021_v54  ;;  %v622_v54 = vrot.slane %v4935_v58, 6  ;;  %v664_v58 = vpack.c.bf16 %v5062_v17, %v5062_v17 }
  0xdb   :  { %v607_v1 = vsel %vm470_vm0, %v469_v44, 0.0  ;;  %v602_v4 = vrot.slane %v601_v60, 2  ;;  %v688_v30 = vunpack.c.l.b16 %v653_v34  ;;  %v657_v38 = vpack.c.bf16 %v5070_v19, %v5070_v19 }
  0xdc   :  { %v540_v0 = vadd.f32 %v539_v50, %v538_v15  ;;  %v606_v9 = vsel %vm470_vm0, %v468_v2, 0.0  ;;  %v5084_v31 = vadd.f32 %v622_v54, %v533_v32  ;;  %v665_v15 = vpack.c.bf16 %v5074_v23, %v5074_v23 }
  0xdd   :  { %v603_v12 = vadd.f32 %v602_v4, %v601_v60  ;;  %v608_v13 = vadd.f32 %v607_v1, %v606_v9  ;;  %v697_v39 = vunpack.c.l.b16 %v662_v55  ;;  %v658_v42 = vpack.c.bf16 %v5078_v43, %v5078_v43 }
  0xde   :  { %v541_v7 = vrot.slane %v540_v0, 1  ;;  %v659_v49 = vpack.c.bf16 %v5084_v31, %v5084_v31  ;;  %v706_v51 = vsel %vm705_vm1, %v704_v36, %v688_v30  ;;  %v696_v52 = vunpack.c.l.b16 %v661_v62 }
  0xdf   :  { %v604_v20 = vrot.slane %v603_v12, 1  ;;  %v609_v53 = vrot.slane %v608_v13, 4  ;;  %v699_v57 = vunpack.c.l.b16 %v664_v58  ;;  %v698_v59 = vunpack.c.l.b16 %v663_v37 }
  0xe0   :  { %v542_v18 = vadd.f32 %v541_v7, %v540_v0  ;;  %v692_v61 = vunpack.c.l.b16 %v657_v38  ;;  %v700_v0 = vunpack.c.l.b16 %v665_v15  ;;  %v725_v1 = vrot.slane %v697_v39, 7 }
  0xe1   :  { %v605_v25 = vadd.f32 %v604_v20, %v603_v12  ;;  %v610_v28 = vadd.f32 %v609_v53, %v608_v13  ;;  %v701_v2 = vunpack.c.l.b16 %v666_v41  ;;  %v693_v34 = vunpack.c.l.b16 %v658_v42  ;;  %v4520_v41 = vld [vmem:[%s6721_s6] ss:$0 sm:$0xff] }
  0xe2   :  { %v5088_v46 = vadd.f32 %v623_v16, %v542_v18  ;;  %v710_v56 = vrot.slane %v691_v48, 5  ;;  %v694_v4 = vunpack.c.l.b16 %v659_v49  ;;  %v709_v6 = vsel %vm708_vm2, %v707_v26, %v706_v51 }
  0xe3   :  { %v5090_v33 = vadd.f32 %v622_v54, %v605_v25  ;;  %v611_v35 = vrot.slane %v610_v28, 2  ;;  %v729_v7 = vrot.slane %v699_v57, 5  ;;  %v726_v11 = vsel %vm705_vm1, %v725_v1, %v696_v52 }
  0xe4   :  { %v660_v55 = vpack.c.bf16 %v5088_v46, %v5088_v46  ;;  %v727_v12 = vrot.slane %v698_v59, 6  ;;  %v713_v13 = vrot.slane %v692_v61, 4  ;;  %v731_v54 = vrot.slane %v700_v0, 4 }
  0xe5   :  { %v612_v44 = vadd.f32 %v611_v35, %v610_v28  ;;  %v667_v50 = vpack.c.bf16 %v5090_v33, %v5090_v33  ;;  %v716_v18 = vrot.slane %v693_v34, 3  ;;  %v733_v20 = vrot.slane %v701_v2, 3 }
  0xe6   :  { %v695_v10 = vunpack.c.l.b16 %v660_v55  ;;  %v712_v45 = vsel %vm711_vm3, %v710_v56, %v709_v6  ;;  %v719_v53 = vrot.slane %v694_v4, 2  ;;  %v728_v26 = vsel %vm708_vm2, %v727_v12, %v726_v11 }
  0xe7   :  { %v613_v60 = vrot.slane %v612_v44, 1  ;;  %v702_v5 = vunpack.c.l.b16 %v667_v50  ;;  %v730_v28 = vsel %vm711_vm3, %v729_v7, %v728_v26  ;;  %v715_v29 = vsel %vm714_vm4, %v713_v13, %v712_v45 }
  0xe8   :  { %v722_v25 = vrot.slane %v695_v10, 1  ;;  %v732_v30 = vsel %vm714_vm4, %v731_v54, %v730_v28  ;;  %v718_v62 = vsel %vm717_vm5, %v716_v18, %v715_v29 }
  0xe9   :  { %v614_v3 = vadd.f32 %v613_v60, %v612_v44  ;;  %v734_v58 = vsel %vm717_vm5, %v733_v20, %v732_v30  ;;  %v721_v36 = vsel %vm720_vm6, %v719_v53, %v718_v62 }
  0xea   :  { %v724_v38 = vsel %vm723_vm7, %v722_v25, %v721_v36 }
  0xeb   :  { %v5115_v9 = vadd.f32 %v623_v16, %v614_v3  ;;  %v735_v16 = vrot.slane %v702_v5, 2 }
  0xed   :  { %v668_v32 = vpack.c.bf16 %v5115_v9, %v5115_v9  ;;  %v736_v37 = vsel %vm720_vm6, %v735_v16, %v734_v58 }
  0xef   :  { %v703_v21 = vunpack.c.l.b16 %v668_v32 }
  0xf1   :  { %v737_v35 = vrot.slane %v703_v21, 1 }
  0xf3   :  { %v738_v15 = vsel %vm723_vm7, %v737_v35, %v736_v37 }
  0xf4   :  { %v739_v39 = vpack.c.b16 %v738_v15, %v724_v38 }
  0xf6   :  { %4155 = vmatmul.msk.bf16.vlgmr.msra.gmra.mxu0 %vm470_vm0, %v739_v39 }
 0x173   :  { %v764_v42 = vpop.f32.mrf.mxu0 }
 0x174   :  { %v765_v44 = vadd.f32 %v4520_v41, %v764_v42 }
 0x176   :  { %v769_v48 = vpack.c.bf16 %v765_v44, %v765_v44 }
 0x178   :  { %v772_v49 = vunpack.c.l.b16 %v769_v48 }
 0x17a   :  { %v5135_v50 = vpack.c.b16 %v772_v49, %v772_v49  ;;  %v4164_v49 = vld [vmem:[%s6722_s7 + $0x4] sm:$0xf] }
 0x17b   :  { %v766_v51 = vpop.f32.mrf.mxu0 }
 0x17c   :  { %v767_v52 = vadd.f32 %v4520_v41, %v766_v51  ;;  %774 = vrot.lane.b32.xlu1 %v5135_v50, %s4647_s25  ;;  %889 = vrot.lane.b32.xlu0 %v5135_v50, %s4648_s27  ;;  %v1008_v51 = vsel %vm849_vm9, %v4164_v49, 0 }
 0x17d   :  { %891 = vrot.lane.b32.xlu2 %v5135_v50, %s4649_s3 }
 0x17e   :  { %v770_v57 = vpack.c.bf16 %v767_v52, %v767_v52 }
 0x180   :  { %v797_v60 = vunpack.c.l.b16 %v770_v57 }
 0x182   :  { %v5143_v55 = vpack.c.b16 %v797_v60, %v797_v60 }
 0x184   :  { %912 = vrot.lane.b32.xlu1 %v5143_v55, %s4648_s27  ;;  %914 = vrot.lane.b32.xlu0 %v5143_v55, %s4649_s3 }
 0x185   :  { %799 = vrot.lane.b32.xlu2 %v5143_v55, %s4647_s25 }
 0x18c   :  { %959 = vrot.lane.b32.xlu1 %v5135_v50, %s6751_s28 }
 0x1d7   :  { %v892_v59 = vpop.permute.xlu2 %891 }
 0x1d8   :  { %v897_v61 = vsel %vm776_vm8, %v892_v59, 0 }
 0x1d9   :  { %906 = vmatpush.bf16.xpose.msrb.mxu0 %v897_v61 }
 0x1df   :  { %v800_v0 = vpop.permute.xlu2 %799 }
 0x1e0   :  { %v805_v1 = vsel %vm776_vm8, %v800_v0, 0 }
 0x1e1   :  { %814 = vmatpush.bf16.xpose.msra.mxu2 %v805_v1  ;;  %1017 = vmatpush.bf16.msra.mxu0 %v1008_v51 }
 0x1e8   :  { %4157 = vmatmul.msk.bf16.vlgmr.msra.gmra.mxu2 %vm776_vm8, %v770_v57 }
 0x1ee   :  { %v775_v2 = vpop.permute.xlu1 %774  ;;  %v890_v34 = vpop.permute.xlu0 %889 }
 0x1ef   :  { %4160 = vmatmul.msk.bf16.vlgmr.msrb.gmra.mxu0 %vm776_vm8, %v890_v34  ;;  %v781_v3 = vsel %vm776_vm8, %v775_v2, 0 }
 0x1f0   :  { %790 = vmatpush.bf16.xpose.msra.mxu1 %v781_v3 }
 0x1f6   :  { %v913_v56 = vpop.permute.xlu1 %912  ;;  %v915_v4 = vpop.permute.xlu0 %914 }
 0x1f7   :  { %4156 = vmatmul.msk.bf16.vlgmr.msra.gmra.mxu1 %vm776_vm8, %v769_v48  ;;  %v920_v5 = vsel %vm776_vm8, %v915_v4, 0 }
 0x1f8   :  { %929 = vmatpush.bf16.xpose.msrb.mxu1 %v920_v5 }
 0x1fe   :  { %v960_v6 = vpop.permute.xlu1 %959 }
 0x1ff   :  { %v965_v7 = vsel %vm849_vm9, %v960_v6, 0 }
 0x200   :  { %974 = vmatpush.bf16.msrb.mxu2 %v965_v7 }
 0x207   :  { %4161 = vmatmul.msk.bf16.vlgmr.msrb.gmra.mxu1 %vm776_vm8, %v913_v56 }
 0x26b   :  { %v816_v10 = vpop.f32.mrf.mxu2 }
 0x26c   :  { %v908_v11 = vpop.f32.mrf.mxu0  ;;  %v823_v45 = vsel %vm776_vm8, %v816_v10, -inf }
 0x26d   :  { %v935_v12 = vsel %vm776_vm8, %v908_v11, -inf }
 0x26e   :  { %936 = vmax.xlane.f32.xlu2 %v935_v12 }
 0x273   :  { %v818_v13 = vpop.f32.mrf.mxu2 }
 0x274   :  { %v792_v54 = vpop.f32.mrf.mxu1  ;;  %v910_v32 = vpop.f32.mrf.mxu0 }
 0x275   :  { %v820_v18 = vsel %vm776_vm8, %v792_v54, -inf }
 0x276   :  { %821 = vmax.xlane.f32.xlu1 %v820_v18 }
 0x27c   :  { %v794_v20 = vpop.f32.mrf.mxu1 }
 0x27e   :  { %824 = vmax.xlane.f32.xlu1 %v823_v45 }
 0x284   :  { %v931_v53 = vpop.f32.mrf.mxu1 }
 0x285   :  { %v938_v16 = vsel %vm776_vm8, %v931_v53, -inf }
 0x286   :  { %1046 = vrot.lane.b32.xlu2 %v5135_v50, %s4651_s16 }
 0x28c   :  { %v933_v26 = vpop.f32.mrf.mxu1 }
 0x2af   :  { %939 = vmax.xlane.f32.xlu2 %v938_v16 }
 0x2c7   :  { %1114 = vrot.lane.b32.xlu2 %v5135_v50, %s6749_s26 }
 0x2e1   :  { %v937_v21 = vpop.xlane.xlu2 %936 }
 0x2e2   :  { %v941_v25 = vsub.f32 %v908_v11, %v937_v21 }
 0x2e4   :  { %v943_v28 = vmul.f32 1.442695, %v941_v25 }
 0x2e6   :  { %4538 = vpow2.f32 %v943_v28 }
 0x2e9   :  { %v822_v29 = vpop.xlane.xlu1 %821  ;;  %v1047_v30 = vpop.permute.xlu2 %1046 }
 0x2ea   :  { %v826_v62 = vsub.f32 %v792_v54, %v822_v29  ;;  %v1052_v58 = vsel %vm776_vm8, %v1047_v30, 0 }
 0x2eb   :  { %1061 = vmatpush.bf16.xpose.msra.mxu2 %v1052_v58 }
 0x2ec   :  { %v4539_v35 = vpop.eup %4538  ;;  %v828_v36 = vmul.f32 1.442695, %v826_v62 }
 0x2ed   :  { %v947_v37 = vsel %vm776_vm8, %v4539_v35, 0.0 }
 0x2ee   :  { %4540 = vpow2.f32 %v828_v36  ;;  %948 = vadd.xlane.f32.xlu0 %v947_v37 }
 0x2f1   :  { %v825_v38 = vpop.xlane.xlu1 %824 }
 0x2f2   :  { %v827_v15 = vsub.f32 %v816_v10, %v825_v38 }
 0x2f4   :  { %v4541_v39 = vpop.eup %4540  ;;  %v830_v41 = vmul.f32 1.442695, %v827_v15  ;;  %v888_v15 = vld [vmem:[%s6722_s7] sm:$0xf] }
 0x2f5   :  { %v832_v42 = vsel %vm776_vm8, %v4541_v39, 0.0 }
 0x2f6   :  { %4542 = vpow2.f32 %v830_v41  ;;  %833 = vadd.xlane.f32.xlu1 %v832_v42 }
 0x2fc   :  { %v4543_v44 = vpop.eup %4542 }
 0x2fd   :  { %v835_v48 = vsel %vm776_vm8, %v4543_v44, 0.0 }
 0x2fe   :  { %836 = vadd.xlane.f32.xlu1 %v835_v48 }
 0x302   :  { %1044 = vrot.lane.b32.xlu0 %v5135_v50, %s4653_s29 }
 0x30a   :  { %844 = vrot.lane.b32.xlu0 %v5135_v50, %s4654_s4 }
 0x312   :  { %866 = vrot.lane.b32.xlu0 %v5143_v55, %s4654_s4 }
 0x31a   :  { %980 = vrot.lane.b32.xlu0 %v5143_v55, %s6751_s28 }
 0x322   :  { %1067 = vrot.lane.b32.xlu0 %v5143_v55, %s4653_s29  ;;  %v940_v52 = vpop.xlane.xlu2 %939 }
 0x323   :  { %v942_v57 = vsub.f32 %v931_v53, %v940_v52 }
 0x325   :  { %v945_v60 = vmul.f32 1.442695, %v942_v57 }
 0x327   :  { %4544 = vpow2.f32 %v945_v60 }
 0x32a   :  { %v1115_v59 = vpop.permute.xlu2 %1114 }
 0x32b   :  { %v1120_v61 = vsel %vm849_vm9, %v1115_v59, 0 }
 0x32c   :  { %1129 = vmatpush.bf16.msrb.mxu0 %v1120_v61 }
 0x32d   :  { %v4545_v0 = vpop.eup %4544 }
 0x32e   :  { %v950_v1 = vsel %vm776_vm8, %v4545_v0, 0.0 }
 0x32f   :  { %951 = vadd.xlane.f32.xlu1 %v950_v1 }
 0x348   :  { %1069 = vrot.lane.b32.xlu1 %v5143_v55, %s4651_s16 }
 0x350   :  { %1183 = vrot.lane.b32.xlu1 %v5135_v50, %s6747_s23 }
 0x358   :  { %1206 = vrot.lane.b32.xlu1 %v5143_v55, %s6747_s23  ;;  %s6771_s23 = smov 40  }
 0x360   :  { %1181 = vrot.lane.b32.xlu1 %v5135_v50, %s6745_s1 }
 0x361   :  { %v949_v2 = vpop.xlane.xlu0 %948 }
 0x362   :  { %4546 = vrcp.f32 %v949_v2 }
 0x368   :  { %v4547_v34 = vpop.eup %4546 }
 0x369   :  { %v955_v3 = vmul.f32 %v4547_v34, %v4539_v35  ;;  %v834_v4 = vpop.xlane.xlu1 %833 }
 0x36a   :  { %4548 = vrcp.f32 %v834_v4 }
 0x36b   :  { %v957_v56 = vpack.c.bf16 %v955_v3, %v955_v3 }
 0x36d   :  { %4162 = vmatmul.msk.bf16.vlgmr.msrb.gmra.mxu2 %vm776_vm8, %v957_v56 }
 0x370   :  { %v4549_v6 = vpop.eup %4548 }
 0x371   :  { %v840_v7 = vmul.f32 %v4549_v6, %v4541_v39  ;;  %v837_v12 = vpop.xlane.xlu1 %836  ;;  %v1028_v39 = vsel %vm849_vm9, %v888_v15, 0 }
 0x372   :  { %4550 = vrcp.f32 %v837_v12  ;;  %1037 = vmatpush.bf16.msra.mxu1 %v1028_v39 }
 0x373   :  { %v842_v13 = vpack.c.bf16 %v840_v7, %v840_v7 }
 0x374   :  { %v1045_v5 = vpop.permute.xlu0 %1044 }
 0x378   :  { %v4551_v18 = vpop.eup %4550 }
 0x379   :  { %v841_v20 = vmul.f32 %v4551_v18, %v4543_v44 }
 0x37b   :  { %v843_v26 = vpack.c.bf16 %v841_v20, %v841_v20 }
 0x37c   :  { %v845_v10 = vpop.permute.xlu0 %844 }
 0x37d   :  { %4167 = vmatmul.msk.bf16.vlgmr.msra.gmra.mxu2 %vm776_vm8, %v1045_v5  ;;  %v851_v11 = vsel %vm849_vm9, %v845_v10, 0 }
 0x37e   :  { %860 = vmatpush.bf16.msra.mxu3 %v851_v11 }
 0x381   :  { %4158 = vmatmul.msk.bf16.vlgmr.msra.gmra.mxu3 %vm776_vm8, %v842_v13 }
 0x384   :  { %v867_v54 = vpop.permute.xlu0 %866 }
 0x385   :  { %v872_v32 = vsel %vm849_vm9, %v867_v54, 0 }
 0x386   :  { %881 = vmatpush.bf16.msrb.mxu3 %v872_v32 }
 0x38c   :  { %v981_v45 = vpop.permute.xlu0 %980 }
 0x38d   :  { %v986_v53 = vsel %vm849_vm9, %v981_v45, 0 }
 0x38e   :  { %995 = vmatpush.bf16.msra.mxu3 %v986_v53 }
 0x391   :  { %4159 = vmatmul.msk.bf16.vlgmr.msrb.gmra.mxu3 %vm776_vm8, %v843_v26 }
 0x394   :  { %v1068_v62 = vpop.permute.xlu0 %1067 }
 0x3a2   :  { %v952_v16 = vpop.xlane.xlu1 %951 }
 0x3a3   :  { %4552 = vrcp.f32 %v952_v16 }
 0x3a9   :  { %v4553_v21 = vpop.eup %4552 }
 0x3aa   :  { %v956_v25 = vmul.f32 %v4553_v21, %v4545_v0 }
 0x3ac   :  { %v958_v28 = vpack.c.bf16 %v956_v25, %v956_v25 }
 0x3ae   :  { %4163 = vmatmul.msk.bf16.vlgmr.msra.gmra.mxu3 %vm776_vm8, %v958_v28 }
 0x3ba   :  { %v1070_v29 = vpop.permute.xlu1 %1069 }
 0x3bb   :  { %v1075_v30 = vsel %vm776_vm8, %v1070_v29, 0 }
 0x3bc   :  { %1084 = vmatpush.bf16.xpose.msrb.mxu3 %v1075_v30 }
 0x3c2   :  { %v1184_v58 = vpop.permute.xlu1 %1183 }
 0x3c3   :  { %v1189_v35 = vsel %vm776_vm8, %v1184_v58, 0  ;;  %4168 = vmatmul.msk.bf16.vlgmr.msrb.gmra.mxu3 %vm776_vm8, %v1068_v62 }
 0x3c4   :  { %1198 = vmatpush.bf16.xpose.msra.mxu3 %v1189_v35 }
 0x3ca   :  { %v1207_v36 = vpop.permute.xlu1 %1206 }
 0x3cb   :  { %v1212_v0 = vsel %vm776_vm8, %v1207_v36, 0 }
 0x3d2   :  { %v1182_v37 = vpop.permute.xlu1 %1181 }
 0x3d3   :  { %4173 = vmatmul.msk.bf16.vlgmr.msra.gmra.mxu3 %vm776_vm8, %v1182_v37 }
 0x3f0   :  { %v976_v38 = vpop.f32.mrf.mxu2 }
 0x3f8   :  { %v978_v41 = vpop.f32.mrf.mxu2 }
 0x400   :  { %v1063_v42 = vpop.f32.mrf.mxu2 }
 0x401   :  { %v1090_v44 = vsel %vm776_vm8, %v1063_v42, -inf }
 0x402   :  { %1091 = vmax.xlane.f32.xlu0 %v1090_v44 }
 0x404   :  { %v862_v48 = vpop.f32.mrf.mxu3 }
 0x408   :  { %v1065_v49 = vpop.f32.mrf.mxu2 }
 0x40c   :  { %v864_v51 = vpop.f32.mrf.mxu3 }
 0x414   :  { %v883_v52 = vpop.f32.mrf.mxu3 }
 0x415   :  { %v887_v57 = vpack.c.bf16 %v883_v52, %v862_v48 }
 0x417   :  { %4166 = vmatmul.msk.bf16.vlgmr.msra.gmra.mxu1 %vm776_vm8, %v887_v57 }
 0x41c   :  { %v885_v60 = vpop.f32.mrf.mxu3 }
 0x431   :  { %v997_v59 = vpop.f32.mrf.mxu3 }
 0x432   :  { %v1001_v61 = vpack.c.bf16 %v997_v59, %v976_v38  ;;  %v4171_v59 = vld [vmem:[%s6722_s7 + $0x8] sm:$0xf] }
 0x434   :  { %4165 = vmatmul.msk.bf16.vlgmr.msra.gmra.mxu0 %vm776_vm8, %v1001_v61  ;;  %v1163_v61 = vsel %vm849_vm9, %v4171_v59, 0 }
 0x435   :  { %1221 = vmatpush.bf16.xpose.msra.mxu0 %v1212_v0  ;;  %1172 = vmatpush.bf16.msrb.mxu2 %v1163_v61 }
 0x439   :  { %v999_v1 = vpop.f32.mrf.mxu3 }
 0x446   :  { %v1086_v2 = vpop.f32.mrf.mxu3 }
 0x447   :  { %v1093_v34 = vsel %vm776_vm8, %v1086_v2, -inf }
 0x448   :  { %1094 = vmax.xlane.f32.xlu1 %v1093_v34 }
 0x44e   :  { %v1088_v3 = vpop.f32.mrf.mxu3 }
 0x456   :  { %v1200_v56 = vpop.f32.mrf.mxu3 }
 0x457   :  { %v1227_v53 = vsel %vm776_vm8, %v1200_v56, -inf }
 0x45e   :  { %v1202_v4 = vpop.f32.mrf.mxu3 }
 0x461   :  { %1251 = vrot.lane.b32.xlu1 %v5135_v50, %s6743_s2 }
 0x475   :  { %v1092_v5 = vpop.xlane.xlu0 %1091 }
 0x476   :  { %v1096_v6 = vsub.f32 %v1063_v42, %v1092_v5 }
 0x478   :  { %v1098_v7 = vmul.f32 1.442695, %v1096_v6 }
 0x47a   :  { %4554 = vpow2.f32 %v1098_v7 }
 0x480   :  { %v4555_v10 = vpop.eup %4554 }
 0x481   :  { %v1102_v11 = vsel %vm776_vm8, %v4555_v10, 0.0 }
 0x482   :  { %1103 = vadd.xlane.f32.xlu2 %v1102_v11 }
 0x494   :  { %v1039_v12 = vpop.f32.mrf.mxu1 }
 0x49a   :  { %1204 = vrot.lane.b32.xlu2 %v5143_v55, %s6745_s1  ;;  %s6766_s1 = sld [smem:[#allocation11_spill]] }
 0x49c   :  { %v1041_v0 = vpop.f32.mrf.mxu1 }
 0x4a2   :  { %1135 = vrot.lane.b32.xlu2 %v5143_v55, %s6749_s26 }
 0x4b1   :  { %v1019_v13 = vpop.f32.mrf.mxu0 }
 0x4b2   :  { %v5226_v54 = vadd.f32 %v1039_v12, %v1019_v13 }
 0x4b9   :  { %v1021_v15 = vpop.f32.mrf.mxu0 }
 0x4bb   :  { %v1095_v32 = vpop.xlane.xlu1 %1094 }
 0x4bc   :  { %v1097_v50 = vsub.f32 %v1086_v2, %v1095_v32 }
 0x4be   :  { %v1100_v18 = vmul.f32 1.442695, %v1097_v50 }
 0x4c0   :  { %4556 = vpow2.f32 %v1100_v18 }
 0x4c6   :  { %v4557_v20 = vpop.eup %4556 }
 0x4c7   :  { %v1105_v45 = vsel %vm776_vm8, %v4557_v20, 0.0 }
 0x4c8   :  { %1106 = vadd.xlane.f32.xlu0 %v1105_v45 }
 0x4cb   :  { %1228 = vmax.xlane.f32.xlu2 %v1227_v53 }
 0x4d3   :  { %v1252_v29 = vpop.permute.xlu1 %1251 }
 0x4d4   :  { %v1257_v58 = vsel %vm849_vm9, %v1252_v29, 0 }
 0x4f5   :  { %v1104_v26 = vpop.xlane.xlu2 %1103 }
 0x4f6   :  { %4558 = vrcp.f32 %v1104_v26 }
 0x4fc   :  { %v4559_v16 = vpop.eup %4558 }
 0x4fd   :  { %v1110_v21 = vmul.f32 %v4559_v16, %v4555_v10  ;;  %v1205_v25 = vpop.permute.xlu2 %1204 }
 0x4ff   :  { %v1112_v28 = vpack.c.bf16 %v1110_v21, %v1110_v21 }
 0x501   :  { %4169 = vmatmul.msk.bf16.vlgmr.msrb.gmra.mxu0 %vm776_vm8, %v1112_v28 }
 0x505   :  { %v1136_v30 = vpop.permute.xlu2 %1135 }
 0x506   :  { %v1141_v62 = vsel %vm849_vm9, %v1136_v30, 0 }
 0x507   :  { %1150 = vmatpush.bf16.msrb.mxu1 %v1141_v62  ;;  %v4521_v62 = vld [vmem:[%s6723_s8] ss:$0 sm:$0xff] }
 0x50b   :  { %1266 = vmatpush.bf16.msra.mxu1 %v1257_v58 }
 0x511   :  { %4174 = vmatmul.msk.bf16.vlgmr.msra.gmra.mxu0 %vm776_vm8, %v1205_v25 }
 0x53b   :  { %v1107_v35 = vpop.xlane.xlu0 %1106 }
 0x53c   :  { %4560 = vrcp.f32 %v1107_v35 }
 0x53e   :  { %v1229_v41 = vpop.xlane.xlu2 %1228 }
 0x53f   :  { %v1233_v42 = vsub.f32 %v1200_v56, %v1229_v41 }
 0x541   :  { %v1235_v48 = vmul.f32 1.442695, %v1233_v42 }
 0x542   :  { %v4561_v36 = vpop.eup %4560 }
 0x543   :  { %v1111_v37 = vmul.f32 %v4561_v36, %v4557_v20  ;;  %4562 = vpow2.f32 %v1235_v48 }
 0x545   :  { %v1113_v38 = vpack.c.bf16 %v1111_v37, %v1111_v37  ;;  %v1042_v37 = vadd.f32 %v1041_v0, %v1021_v15 }
 0x547   :  { %4170 = vmatmul.msk.bf16.vlgmr.msrb.gmra.mxu1 %vm776_vm8, %v1113_v38 }
 0x549   :  { %v4563_v52 = vpop.eup %4562 }
 0x54a   :  { %v1239_v60 = vsel %vm776_vm8, %v4563_v52, 0.0 }
 0x57e   :  { %v1131_v39 = vpop.f32.mrf.mxu0 }
 0x586   :  { %v1133_v44 = vpop.f32.mrf.mxu0 }
 0x58e   :  { %v1223_v49 = vpop.f32.mrf.mxu0 }
 0x58f   :  { %v1230_v51 = vsel %vm776_vm8, %v1223_v49, -inf }
 0x590   :  { %1231 = vmax.xlane.f32.xlu0 %v1230_v51 }
 0x596   :  { %v1225_v57 = vpop.f32.mrf.mxu0 }
 0x598   :  { %1240 = vadd.xlane.f32.xlu0 %v1239_v60 }
 0x5c4   :  { %v1152_v1 = vpop.f32.mrf.mxu1 }
 0x5c5   :  { %v1156_v2 = vpack.c.bf16 %v1152_v1, %v1131_v39 }
 0x5c7   :  { %4172 = vmatmul.msk.bf16.vlgmr.msrb.gmra.mxu2 %vm776_vm8, %v1156_v2 }
 0x5cc   :  { %v1154_v34 = vpop.f32.mrf.mxu1 }
 0x603   :  { %v1232_v3 = vpop.xlane.xlu0 %1231 }
 0x604   :  { %v1234_v56 = vsub.f32 %v1223_v49, %v1232_v3 }
 0x606   :  { %v1237_v4 = vmul.f32 1.442695, %v1234_v56 }
 0x608   :  { %4564 = vpow2.f32 %v1237_v4 }
 0x60b   :  { %v1241_v5 = vpop.xlane.xlu0 %1240 }
 0x60c   :  { %4566 = vrcp.f32 %v1241_v5 }
 0x60e   :  { %v4565_v6 = vpop.eup %4564 }
 0x60f   :  { %v1242_v7 = vsel %vm776_vm8, %v4565_v6, 0.0 }
 0x610   :  { %1243 = vadd.xlane.f32.xlu0 %v1242_v7 }
 0x612   :  { %v4567_v10 = vpop.eup %4566 }
 0x613   :  { %v1247_v11 = vmul.f32 %v4567_v10, %v4563_v52 }
 0x615   :  { %v1249_v12 = vpack.c.bf16 %v1247_v11, %v1247_v11 }
 0x617   :  { %4175 = vmatmul.msk.bf16.vlgmr.msra.gmra.mxu1 %vm776_vm8, %v1249_v12 }
 0x624   :  { %1272 = vrot.lane.b32.xlu0 %v5143_v55, %s6743_s2  ;;  %v4177_v55 = vld [vmem:[%s6722_s7 + $0xc] sm:$0xf] }
 0x625   :  { %v1300_v25 = vsel %vm849_vm9, %v4177_v55, 0 }
 0x626   :  { %1309 = vmatpush.bf16.msrb.mxu3 %v1300_v25 }
 0x64a   :  { %v1174_v13 = vpop.f32.mrf.mxu2 }
 0x64b   :  { %v1179_v32 = vadd.f32 %v1174_v13, %v5226_v54 }
 0x652   :  { %v1176_v54 = vpop.f32.mrf.mxu2 }
 0x653   :  { %v1180_v44 = vadd.f32 %v1176_v54, %v1042_v37 }
 0x683   :  { %v1244_v50 = vpop.xlane.xlu0 %1243 }
 0x684   :  { %4568 = vrcp.f32 %v1244_v50 }
 0x68a   :  { %v4569_v18 = vpop.eup %4568 }
 0x68b   :  { %v1248_v45 = vmul.f32 %v4569_v18, %v4565_v6 }
 0x68d   :  { %v1250_v16 = vpack.c.bf16 %v1248_v45, %v1248_v45 }
 0x694   :  { %v1268_v20 = vpop.f32.mrf.mxu1 }
 0x696   :  { %v1273_v53 = vpop.permute.xlu0 %1272 }
 0x697   :  { %v1278_v26 = vsel %vm849_vm9, %v1273_v53, 0 }
 0x698   :  { %1287 = vmatpush.bf16.msra.mxu2 %v1278_v26 }
 0x69b   :  { %4176 = vmatmul.msk.bf16.vlgmr.msra.gmra.mxu2 %vm776_vm8, %v1250_v16 }
 0x69c   :  { %v1270_v21 = vpop.f32.mrf.mxu1 }
 0x71e   :  { %v1289_v28 = vpop.f32.mrf.mxu2 }
 0x71f   :  { %v1293_v29 = vpack.c.bf16 %v1289_v28, %v1268_v20 }
 0x721   :  { %4178 = vmatmul.msk.bf16.vlgmr.msrb.gmra.mxu3 %vm776_vm8, %v1293_v29 }
 0x726   :  { %v1291_v30 = vpop.f32.mrf.mxu2 }
 0x7a4   :  { %v1311_v58 = vpop.f32.mrf.mxu3 }
 0x7a5   :  { %v1316_v35 = vadd.f32 %v1311_v58, %v1179_v32 }
 0x7a7   :  { %v1322_v36 = vadd.f32 %v4521_v62, %v1316_v35 }
 0x7a9   :  { %v1326_v38 = vrot.slane %v1322_v36, 1  ;;  %v1327_v39 = vrot.slane %v1322_v36, 2  ;;  %v1328_v41 = vrot.slane %v1322_v36, 3  ;;  %v1329_v42 = vrot.slane %v1322_v36, 4 }
 0x7aa   :  { %v1330_v48 = vrot.slane %v1322_v36, 5  ;;  %v1331_v49 = vrot.slane %v1322_v36, 6  ;;  %v1332_v51 = vrot.slane %v1322_v36, 7  ;;  %v5273_v1 = vadd.f32 %v1322_v36, %v5042_v40 }
 0x7ab   :  { %v5258_v52 = vadd.f32 %v1326_v38, %v5030_v63  ;;  %v5261_v57 = vadd.f32 %v1327_v39, %v4952_v8  ;;  %v5264_v60 = vadd.f32 %v1328_v41, %v5047_v47  ;;  %v5267_v15 = vadd.f32 %v1329_v42, %v5070_v19 }
 0x7ac   :  { %v1313_v59 = vpop.f32.mrf.mxu3  ;;  %v5270_v61 = vadd.f32 %v1330_v48, %v5078_v43  ;;  %v5278_v8 = vadd.f32 %v1331_v49, %v5084_v31  ;;  %v5281_v34 = vadd.f32 %v1332_v51, %v5088_v46  ;;  %v4658_v38 = vmov 32.0  }
 0x7ad   :  { %v1317_v0 = vadd.f32 %v1313_v59, %v1180_v44  ;;  %v1390_v63 = vrot.slane %v5258_v52, 7  ;;  %v1392_v2 = vrot.slane %v5261_v57, 6  ;;  %v1394_v43 = vrot.slane %v5264_v60, 5 }
 0x7ae   :  { %v1396_v40 = vrot.slane %v5267_v15, 4  ;;  %v1398_v56 = vrot.slane %v5270_v61, 3  ;;  %v1400_v46 = vrot.slane %v5278_v8, 2  ;;  %v1402_v13 = vrot.slane %v5281_v34, 1 }
 0x7af   :  { %v1323_v47 = vadd.f32 %v4521_v62, %v1317_v0  ;;  %v1391_v19 = vsel %vm705_vm1, %v1390_v63, %v5273_v1  ;;  %4570 = vrcp.f32 %v4658_v38 }
 0x7b0   :  { %v1393_v3 = vsel %vm708_vm2, %v1392_v2, %v1391_v19 }
 0x7b1   :  { %v1395_v4 = vsel %vm711_vm3, %v1394_v43, %v1393_v3  ;;  %v1333_v5 = vrot.slane %v1323_v47, 1  ;;  %v1334_v31 = vrot.slane %v1323_v47, 2  ;;  %v1335_v6 = vrot.slane %v1323_v47, 3 }
 0x7b2   :  { %v1397_v7 = vsel %vm714_vm4, %v1396_v40, %v1395_v4  ;;  %v1336_v10 = vrot.slane %v1323_v47, 4  ;;  %v1337_v11 = vrot.slane %v1323_v47, 5  ;;  %v1338_v32 = vrot.slane %v1323_v47, 6 }
 0x7b3   :  { %v1399_v12 = vsel %vm717_vm5, %v1398_v56, %v1397_v7  ;;  %v5295_v50 = vadd.f32 %v1333_v5, %v5000_v27  ;;  %v1339_v20 = vrot.slane %v1323_v47, 7  ;;  %v5299_v45 = vadd.f32 %v1334_v31, %v5066_v22 }
 0x7b4   :  { %v1401_v18 = vsel %vm720_vm6, %v1400_v46, %v1399_v12  ;;  %v5302_v53 = vadd.f32 %v1335_v6, %v5062_v17  ;;  %v5306_v16 = vadd.f32 %v1323_v47, %v5056_v14  ;;  %v5309_v21 = vadd.f32 %v1336_v10, %v5074_v23 }
 0x7b5   :  { %v1403_v26 = vsel %vm723_vm7, %v1402_v13, %v1401_v18  ;;  %v5313_v55 = vadd.f32 %v1337_v11, %v5076_v24  ;;  %v1404_v25 = vrot.slane %v5295_v50, 7  ;;  %v1406_v22 = vrot.slane %v5299_v45, 6  ;;  %v4571_v39 = vpop.eup %4570 }
 0x7b6   :  { %v1420_v27 = vsel %vm470_vm0, %v1403_v26, 0.0  ;;  %v5318_v17 = vadd.f32 %v1338_v32, %v5090_v33  ;;  %v5321_v54 = vadd.f32 %v1339_v20, %v5115_v9  ;;  %v1408_v23 = vrot.slane %v5302_v53, 5 }
 0x7b7   :  { %1421 = vadd.xlane.f32.xlu2 %v1420_v27  ;;  %v1405_v14 = vsel %vm705_vm1, %v1404_v25, %v5306_v16  ;;  %v1410_v24 = vrot.slane %v5309_v21, 4  ;;  %v1412_v30 = vrot.slane %v5313_v55, 3  ;;  %v1427_v41 = vmul.f32 32.0, %v4571_v39 }
 0x7b8   :  { %v1407_v28 = vsel %vm708_vm2, %v1406_v22, %v1405_v14  ;;  %v1414_v33 = vrot.slane %v5318_v17, 2  ;;  %v1416_v58 = vrot.slane %v5321_v54, 1  ;;  %vm1431_vm10 = vweird.f32 %v4571_v39 }
 0x7b9   :  { %v1409_v29 = vsel %vm711_vm3, %v1408_v23, %v1407_v28  ;;  %v1428_v42 = vsub.f32 1.0, %v1427_v41 }
 0x7ba   :  { %v1411_v62 = vsel %vm714_vm4, %v1410_v24, %v1409_v29 }
 0x7bb   :  { %v1413_v9 = vsel %vm717_vm5, %v1412_v30, %v1411_v62  ;;  %v1429_v44 = vmul.f32 %v4571_v39, %v1428_v42 }
 0x7bc   :  { %v1415_v35 = vsel %vm720_vm6, %v1414_v33, %v1413_v9 }
 0x7bd   :  { %v1417_v36 = vsel %vm723_vm7, %v1416_v58, %v1415_v35  ;;  %v1430_v48 = vadd.f32 %v4571_v39, %v1429_v44 }
 0x7be   :  { %v1423_v37 = vsel %vm470_vm0, %v1417_v36, 0.0 }
 0x7bf   :  { %1424 = vadd.xlane.f32.xlu0 %v1423_v37  ;;  %v5337_v49 = vsel %vm1431_vm10, %v4571_v39, %v1430_v48 }
 0x82a   :  { %v1422_v51 = vpop.xlane.xlu2 %1421 }
 0x82b   :  { %v1433_v59 = vmul.f32 %v5337_v49, %v1422_v51 }
 0x82d   :  { %v1437_v0 = vrot.slane %v1433_v59, 1  ;;  %v1438_v63 = vrot.slane %v1433_v59, 2  ;;  %v1439_v2 = vrot.slane %v1433_v59, 3  ;;  %v1440_v47 = vrot.slane %v1433_v59, 4 }
 0x82e   :  { %v1441_v19 = vrot.slane %v1433_v59, 5  ;;  %v1442_v43 = vrot.slane %v1433_v59, 6  ;;  %v1443_v3 = vrot.slane %v1433_v59, 7  ;;  %v5341_v40 = vsub.f32 %v5273_v1, %v1433_v59 }
 0x82f   :  { %v5344_v56 = vsub.f32 %v5258_v52, %v1437_v0  ;;  %v5347_v4 = vsub.f32 %v5261_v57, %v1438_v63  ;;  %v5350_v5 = vsub.f32 %v5264_v60, %v1439_v2  ;;  %v5353_v31 = vsub.f32 %v5267_v15, %v1440_v47 }
 0x830   :  { %v5356_v6 = vsub.f32 %v5270_v61, %v1441_v19  ;;  %v5359_v7 = vsub.f32 %v5278_v8, %v1442_v43  ;;  %v5362_v1 = vsub.f32 %v5281_v34, %v1443_v3  ;;  %v1483_v10 = vmul.f32 %v5341_v40, %v5341_v40 }
 0x831   :  { %v1484_v52 = vmul.f32 %v5344_v56, %v5344_v56  ;;  %v1485_v57 = vmul.f32 %v5347_v4, %v5347_v4  ;;  %v1486_v60 = vmul.f32 %v5350_v5, %v5350_v5  ;;  %v1487_v15 = vmul.f32 %v5353_v31, %v5353_v31 }
 0x832   :  { %v1488_v61 = vmul.f32 %v5356_v6, %v5356_v6  ;;  %v1489_v8 = vmul.f32 %v5359_v7, %v5359_v7  ;;  %v1490_v34 = vmul.f32 %v5362_v1, %v5362_v1  ;;  %v1425_v46 = vpop.xlane.xlu0 %1424 }
 0x833   :  { %v1515_v11 = vrot.slane %v1484_v52, 7  ;;  %v1517_v12 = vrot.slane %v1485_v57, 6  ;;  %v1434_v13 = vmul.f32 %v5337_v49, %v1425_v46  ;;  %v1519_v32 = vrot.slane %v1486_v60, 5 }
 0x834   :  { %v1521_v18 = vrot.slane %v1487_v15, 4  ;;  %v1523_v26 = vrot.slane %v1488_v61, 3  ;;  %v1525_v27 = vrot.slane %v1489_v8, 2  ;;  %v1527_v25 = vrot.slane %v1490_v34, 1 }
 0x835   :  { %v1516_v20 = vsel %vm705_vm1, %v1515_v11, %v1483_v10  ;;  %v1444_v14 = vrot.slane %v1434_v13, 1  ;;  %v1445_v23 = vrot.slane %v1434_v13, 2  ;;  %v1446_v28 = vrot.slane %v1434_v13, 3 }
 0x836   :  { %v1518_v22 = vsel %vm708_vm2, %v1517_v12, %v1516_v20  ;;  %v1447_v29 = vrot.slane %v1434_v13, 4  ;;  %v1448_v30 = vrot.slane %v1434_v13, 5  ;;  %v1449_v62 = vrot.slane %v1434_v13, 6 }
 0x837   :  { %v1520_v24 = vsel %vm711_vm3, %v1519_v32, %v1518_v22  ;;  %v1450_v9 = vrot.slane %v1434_v13, 7  ;;  %v5386_v58 = vsub.f32 %v5306_v16, %v1434_v13  ;;  %v5389_v35 = vsub.f32 %v5295_v50, %v1444_v14  ;;  %v4446_v32 = vld [vmem:[%s6726_s11 + $0x8] sm:$0xff] }
 0x838   :  { %v1522_v33 = vsel %vm714_vm4, %v1521_v18, %v1520_v24  ;;  %v5393_v37 = vsub.f32 %v5299_v45, %v1445_v23  ;;  %v5396_v38 = vsub.f32 %v5302_v53, %v1446_v28  ;;  %v5399_v39 = vsub.f32 %v5309_v21, %v1447_v29  ;;  %1767 = vmatpush.bf16.msrb.mxu0 %v4446_v32  ;;  %v5448_v29 = vld [vmem:[%s6724_s9] ss:$0 sm:$0xff] }
 0x839   :  { %v1524_v36 = vsel %vm717_vm5, %v1523_v26, %v1522_v33  ;;  %v5403_v42 = vsub.f32 %v5313_v55, %v1448_v30  ;;  %v5406_v16 = vsub.f32 %v5318_v17, %v1449_v62  ;;  %v5410_v44 = vsub.f32 %v5321_v54, %v1450_v9 }
 0x83a   :  { %v1526_v41 = vsel %vm720_vm6, %v1525_v27, %v1524_v36  ;;  %v1492_v45 = vmul.f32 %v5389_v35, %v5389_v35  ;;  %v1493_v53 = vmul.f32 %v5393_v37, %v5393_v37  ;;  %v1494_v55 = vmul.f32 %v5396_v38, %v5396_v38  ;;  %v4445_v27 = vld [vmem:[%s6726_s11] sm:$0xff] }
 0x83b   :  { %v1528_v50 = vsel %vm723_vm7, %v1527_v25, %v1526_v41  ;;  %v1495_v17 = vmul.f32 %v5399_v39, %v5399_v39  ;;  %v1491_v48 = vmul.f32 %v5386_v58, %v5386_v58  ;;  %v1496_v54 = vmul.f32 %v5403_v42, %v5403_v42 }
 0x83c   :  { %v1545_v21 = vsel %vm470_vm0, %v1528_v50, 0.0  ;;  %v1529_v51 = vrot.slane %v1492_v45, 7  ;;  %v1531_v59 = vrot.slane %v1493_v53, 6  ;;  %v1497_v0 = vmul.f32 %v5406_v16, %v5406_v16  ;;  %1768 = vmatpush.bf16.msrb.mxu0 %v4445_v27  ;;  %v5453_v50 = vld [vmem:[%s6725_s10] ss:$0 sm:$0xff] }
 0x83d   :  { %1546 = vadd.xlane.f32.xlu2 %v1545_v21  ;;  %v1498_v63 = vmul.f32 %v5410_v44, %v5410_v44  ;;  %v1533_v47 = vrot.slane %v1494_v55, 5  ;;  %v1535_v43 = vrot.slane %v1495_v17, 4  ;;  %v1537_v52 = vrot.slane %v1496_v54, 3 }
 0x83e   :  { %v1530_v2 = vsel %vm705_vm1, %v1529_v51, %v1491_v48  ;;  %v1539_v60 = vrot.slane %v1497_v0, 2 }
 0x83f   :  { %v1532_v19 = vsel %vm708_vm2, %v1531_v59, %v1530_v2  ;;  %v1541_v61 = vrot.slane %v1498_v63, 1 }
 0x840   :  { %v1534_v3 = vsel %vm711_vm3, %v1533_v47, %v1532_v19 }
 0x841   :  { %v1536_v57 = vsel %vm714_vm4, %v1535_v43, %v1534_v3 }
 0x842   :  { %v1538_v15 = vsel %vm717_vm5, %v1537_v52, %v1536_v57 }
 0x843   :  { %v1540_v8 = vsel %vm720_vm6, %v1539_v60, %v1538_v15 }
 0x844   :  { %v1542_v34 = vsel %vm723_vm7, %v1541_v61, %v1540_v8  ;;  %v4453_v61 = vld [vmem:[%s6728_s13 + $0x30] sm:$0xff] }
 0x845   :  { %v1548_v46 = vsel %vm470_vm0, %v1542_v34, 0.0 }
 0x846   :  { %1549 = vadd.xlane.f32.xlu1 %v1548_v46 }
 0x8b0   :  { %v1547_v10 = vpop.xlane.xlu2 %1546 }
 0x8b1   :  { %v1551_v11 = vmul.f32 %v1547_v10, %v5337_v49 }
 0x8b3   :  { %v1553_v12 = vadd.f32 1e-05, %v1551_v11 }
 0x8b5   :  { %4572 = vrsqrt.f32 %v1553_v12  ;;  %vm1561_vm12 = vweird.f32 %v1553_v12 }
 0x8b9   :  { %v1550_v13 = vpop.xlane.xlu1 %1549 }
 0x8ba   :  { %v1552_v20 = vmul.f32 %v1550_v13, %v5337_v49 }
 0x8bb   :  { %v4573_v18 = vpop.eup %4572 }
 0x8bc   :  { %v1556_v26 = vmul.f32 %v4573_v18, %v1553_v12  ;;  %v1554_v25 = vadd.f32 1e-05, %v1552_v20  ;;  %vm1562_vm11 = vweird.f32 %v4573_v18 }
 0x8bd   :  { %vm1563_vm13 = vmor %vm1561_vm12, %vm1562_vm11 }
 0x8be   :  { %v1557_v22 = vmul.f32 %v4573_v18, %v1556_v26  ;;  %4574 = vrsqrt.f32 %v1554_v25  ;;  %vm1571_vm15 = vweird.f32 %v1554_v25 }
 0x8c0   :  { %v1558_v14 = vmul.f32 0.5, %v1557_v22 }
 0x8c2   :  { %v1559_v23 = vsub.f32 1.5, %v1558_v14 }
 0x8c4   :  { %v1560_v28 = vmul.f32 %v4573_v18, %v1559_v23  ;;  %v4575_v24 = vpop.eup %4574 }
 0x8c5   :  { %v1566_v62 = vmul.f32 %v4575_v24, %v1554_v25  ;;  %vm1572_vm14 = vweird.f32 %v4575_v24  ;;  %v4452_v25 = vld [vmem:[%s6728_s13 + $0x28] sm:$0xff] }
 0x8c6   :  { %v1564_v30 = vsel %vm1563_vm13, %v4573_v18, %v1560_v28  ;;  %vm1573_vm10 = vmor %vm1571_vm15, %vm1572_vm14 }
 0x8c7   :  { %v1577_v33 = vrot.slane %v1564_v30, 1  ;;  %v1578_v9 = vrot.slane %v1564_v30, 2  ;;  %v1579_v36 = vrot.slane %v1564_v30, 3  ;;  %v1580_v41 = vrot.slane %v1564_v30, 4 }
 0x8c8   :  { %v1581_v45 = vrot.slane %v1564_v30, 5  ;;  %v1582_v53 = vrot.slane %v1564_v30, 6  ;;  %v1583_v21 = vrot.slane %v1564_v30, 7  ;;  %v1607_v55 = vmul.f32 %v1564_v30, %v5341_v40 }
 0x8c9   :  { %v1608_v17 = vmul.f32 %v1577_v33, %v5344_v56  ;;  %v1609_v48 = vmul.f32 %v1578_v9, %v5347_v4  ;;  %v1610_v54 = vmul.f32 %v1579_v36, %v5350_v5  ;;  %v1611_v51 = vmul.f32 %v1580_v41, %v5353_v31 }
 0x8ca   :  { %v1612_v59 = vmul.f32 %v1581_v45, %v5356_v6  ;;  %v1626_v0 = vmul.f32 %v5448_v29, %v1607_v55  ;;  %v1567_v63 = vmul.f32 %v4575_v24, %v1566_v62  ;;  %v1613_v2 = vmul.f32 %v1582_v53, %v5359_v7  ;;  %v4454_v7 = vld [vmem:[%s6728_s13 + $0x38] sm:$0xff] }
 0x8cb   :  { %v1627_v47 = vmul.f32 %v5448_v29, %v1608_v17  ;;  %v1628_v19 = vmul.f32 %v5448_v29, %v1609_v48  ;;  %v1629_v40 = vmul.f32 %v5448_v29, %v1610_v54  ;;  %v1630_v56 = vmul.f32 %v5448_v29, %v1611_v51  ;;  %1846 = vmatpush.bf16.msrb.mxu1 %v4454_v7 }
 0x8cc   :  { %v5468_v4 = vadd.f32 %v5453_v50, %v1626_v0  ;;  %v1568_v5 = vmul.f32 0.5, %v1567_v63  ;;  %v1614_v31 = vmul.f32 %v1583_v21, %v5362_v1  ;;  %v1631_v6 = vmul.f32 %v5448_v29, %v1612_v59 }
 0x8cd   :  { %v5476_v43 = vadd.f32 %v5453_v50, %v1627_v47  ;;  %v5479_v3 = vadd.f32 %v5453_v50, %v1628_v19  ;;  %v1632_v52 = vmul.f32 %v5448_v29, %v1613_v2  ;;  %v5483_v57 = vadd.f32 %v5453_v50, %v1629_v40 }
 0x8ce   :  { %v1569_v60 = vsub.f32 1.5, %v1568_v5  ;;  %v1633_v1 = vmul.f32 %v5448_v29, %v1614_v31  ;;  %v5487_v15 = vadd.f32 %v5453_v50, %v1630_v56  ;;  %v5493_v8 = vadd.f32 %v5453_v50, %v1631_v6 }
 0x8cf   :  { %v5496_v34 = vadd.f32 %v5453_v50, %v1632_v52  ;;  %v1661_v46 = vpack.c.bf16 %v5468_v4, %v5468_v4  ;;  %v1662_v12 = vpack.c.bf16 %v5476_v43, %v5476_v43  ;;  %v1663_v13 = vpack.c.bf16 %v5479_v3, %v5479_v3  ;;  %1847 = vmatpush.bf16.msrb.mxu1 %v4453_v61 }
 0x8d0   :  { %v1570_v10 = vmul.f32 %v4575_v24, %v1569_v60  ;;  %v5501_v11 = vadd.f32 %v5453_v50, %v1633_v1  ;;  %v1664_v32 = vpack.c.bf16 %v5483_v57, %v5483_v57  ;;  %v1665_v20 = vpack.c.bf16 %v5487_v15, %v5487_v15 }
 0x8d1   :  { %v1666_v26 = vpack.c.bf16 %v5493_v8, %v5493_v8  ;;  %v1667_v27 = vpack.c.bf16 %v5496_v34, %v5496_v34  ;;  %v1702_v47 = vunpack.c.l.b16 %v1662_v12  ;;  %v1703_v7 = vunpack.c.l.b16 %v1663_v13 }
 0x8d2   :  { %v1574_v18 = vsel %vm1573_vm10, %v4575_v24, %v1570_v10  ;;  %v1668_v19 = vpack.c.bf16 %v5501_v11, %v5501_v11  ;;  %v1701_v1 = vunpack.c.l.b16 %v1661_v46  ;;  %v1704_v61 = vunpack.c.l.b16 %v1664_v32 }
 0x8d3   :  { %v1584_v22 = vrot.slane %v1574_v18, 1  ;;  %v1585_v14 = vrot.slane %v1574_v18, 2  ;;  %v1586_v23 = vrot.slane %v1574_v18, 3  ;;  %v1587_v28 = vrot.slane %v1574_v18, 4  ;;  %1848 = vmatpush.bf16.msrb.mxu1 %v4452_v25 }
 0x8d4   :  { %v1588_v30 = vrot.slane %v1574_v18, 5  ;;  %v1589_v24 = vrot.slane %v1574_v18, 6  ;;  %v1590_v62 = vrot.slane %v1574_v18, 7  ;;  %v1615_v33 = vmul.f32 %v1574_v18, %v5386_v58  ;;  %v4451_v58 = vld [vmem:[%s6728_s13 + $0x20] sm:$0xff] }
 0x8d5   :  { %v1616_v9 = vmul.f32 %v1584_v22, %v5389_v35  ;;  %v1617_v36 = vmul.f32 %v1585_v14, %v5393_v37  ;;  %v1618_v41 = vmul.f32 %v1586_v23, %v5396_v38  ;;  %v1619_v45 = vmul.f32 %v1587_v28, %v5399_v39 }
 0x8d6   :  { %v1620_v53 = vmul.f32 %v1588_v30, %v5403_v42  ;;  %v1634_v21 = vmul.f32 %v5448_v29, %v1615_v33  ;;  %v1621_v55 = vmul.f32 %v1589_v24, %v5406_v16  ;;  %v1622_v17 = vmul.f32 %v1590_v62, %v5410_v44 }
 0x8d7   :  { %v1635_v35 = vmul.f32 %v5448_v29, %v1616_v9  ;;  %v1636_v37 = vmul.f32 %v5448_v29, %v1617_v36  ;;  %v1637_v38 = vmul.f32 %v5448_v29, %v1618_v41  ;;  %v1638_v39 = vmul.f32 %v5448_v29, %v1619_v45  ;;  %1849 = vmatpush.bf16.msrb.mxu1 %v4451_v58 }
 0x8d8   :  { %v5535_v42 = vadd.f32 %v5453_v50, %v1634_v21  ;;  %v1639_v16 = vmul.f32 %v5448_v29, %v1620_v53  ;;  %v1640_v44 = vmul.f32 %v5448_v29, %v1621_v55  ;;  %v1641_v48 = vmul.f32 %v5448_v29, %v1622_v17 }
 0x8d9   :  { %v5541_v54 = vadd.f32 %v5453_v50, %v1635_v35  ;;  %v5544_v51 = vadd.f32 %v5453_v50, %v1636_v37  ;;  %v5547_v59 = vadd.f32 %v5453_v50, %v1637_v38  ;;  %v5550_v0 = vadd.f32 %v5453_v50, %v1638_v39 }
 0x8da   :  { %v5553_v63 = vadd.f32 %v5453_v50, %v1639_v16  ;;  %v5556_v2 = vadd.f32 %v5453_v50, %v1640_v44  ;;  %v5559_v29 = vadd.f32 %v5453_v50, %v1641_v48  ;;  %v1669_v31 = vpack.c.bf16 %v5535_v42, %v5535_v42 }
 0x8db   :  { %v1670_v40 = vpack.c.bf16 %v5541_v54, %v5541_v54  ;;  %v1671_v56 = vpack.c.bf16 %v5544_v51, %v5544_v51  ;;  %v1672_v5 = vpack.c.bf16 %v5547_v59, %v5547_v59  ;;  %v1673_v50 = vpack.c.bf16 %v5550_v0, %v5550_v0 }
 0x8dc   :  { %v1674_v6 = vpack.c.bf16 %v5553_v63, %v5553_v63  ;;  %v1675_v52 = vpack.c.bf16 %v5556_v2, %v5556_v2  ;;  %v1676_v60 = vpack.c.bf16 %v5559_v29, %v5559_v29  ;;  %v1705_v10 = vunpack.c.l.b16 %v1665_v20 }
 0x8dd   :  { %v1706_v12 = vunpack.c.l.b16 %v1666_v26  ;;  %v1710_v18 = vunpack.c.l.b16 %v1670_v40  ;;  %v1711_v25 = vunpack.c.l.b16 %v1671_v56  ;;  %v1707_v22 = vunpack.c.l.b16 %v1667_v27 }
 0x8de   :  { %v1708_v14 = vunpack.c.l.b16 %v1668_v19  ;;  %v1712_v23 = vunpack.c.l.b16 %v1672_v5  ;;  %v1717_v28 = vrot.slane %v1702_v47, 7  ;;  %v1709_v30 = vunpack.c.l.b16 %v1669_v31 }
 0x8df   :  { %v1713_v24 = vunpack.c.l.b16 %v1673_v50  ;;  %v1714_v62 = vunpack.c.l.b16 %v1674_v6  ;;  %v1719_v13 = vrot.slane %v1703_v7, 6  ;;  %v1715_v33 = vunpack.c.l.b16 %v1675_v52  ;;  %v4450_v6 = vld [vmem:[%s6728_s13 + $0x18] sm:$0xff]  ;;  %v4449_v7 = vld [vmem:[%s6728_s13 + $0x10] sm:$0xff]  ;;  %v4448_v52 = vld [vmem:[%s6728_s13 + $0x8] sm:$0xff] }
 0x8e0   :  { %v1718_v9 = vsel %vm705_vm1, %v1717_v28, %v1701_v1  ;;  %v1721_v36 = vrot.slane %v1704_v61, 5  ;;  %v1731_v41 = vrot.slane %v1710_v18, 7  ;;  %v1716_v45 = vunpack.c.l.b16 %v1676_v60  ;;  %1850 = vmatpush.bf16.msrb.mxu1 %v4450_v6  ;;  %v4447_v60 = vld [vmem:[%s6728_s13] sm:$0xff] }
 0x8e1   :  { %v1720_v46 = vsel %vm708_vm2, %v1719_v13, %v1718_v9  ;;  %v1723_v32 = vrot.slane %v1705_v10, 4  ;;  %v1733_v20 = vrot.slane %v1711_v25, 6  ;;  %v1725_v27 = vrot.slane %v1706_v12, 3  ;;  %v4524_v61 = vld [vmem:[%s6727_s12] ss:$0 sm:$0xff] }
 0x8e2   :  { %v1722_v26 = vsel %vm711_vm3, %v1721_v36, %v1720_v46  ;;  %v1732_v53 = vsel %vm705_vm1, %v1731_v41, %v1709_v30  ;;  %v1735_v21 = vrot.slane %v1712_v23, 5  ;;  %v1727_v17 = vrot.slane %v1707_v22, 2  ;;  %v4525_v23 = vld [vmem:[%s6729_s14] ss:$0 sm:$0xff] }
 0x8e3   :  { %v1724_v55 = vsel %vm714_vm4, %v1723_v32, %v1722_v26  ;;  %v1734_v58 = vsel %vm708_vm2, %v1733_v20, %v1732_v53  ;;  %v1737_v35 = vrot.slane %v1713_v24, 4  ;;  %v1739_v39 = vrot.slane %v1714_v62, 3 }
 0x8e4   :  { %v1726_v37 = vsel %vm717_vm5, %v1725_v27, %v1724_v55  ;;  %v1736_v38 = vsel %vm711_vm3, %v1735_v21, %v1734_v58  ;;  %v1741_v48 = vrot.slane %v1715_v33, 2  ;;  %v1729_v47 = vrot.slane %v1708_v14, 1  ;;  %1851 = vmatpush.bf16.msrb.mxu1 %v4449_v7 }
 0x8e5   :  { %v1728_v16 = vsel %vm720_vm6, %v1727_v17, %v1726_v37  ;;  %v1738_v44 = vsel %vm714_vm4, %v1737_v35, %v1736_v38  ;;  %v1743_v40 = vrot.slane %v1716_v45, 1 }
 0x8e6   :  { %v1740_v19 = vsel %vm717_vm5, %v1739_v39, %v1738_v44  ;;  %v1730_v5 = vsel %vm723_vm7, %v1729_v47, %v1728_v16 }
 0x8e7   :  { %v1742_v56 = vsel %vm720_vm6, %v1741_v48, %v1740_v19 }
 0x8e8   :  { %v1744_v31 = vsel %vm723_vm7, %v1743_v40, %v1742_v56  ;;  %1852 = vmatpush.bf16.msrb.mxu1 %v4448_v52 }
 0x8e9   :  { %v1745_v50 = vpack.c.b16 %v1744_v31, %v1730_v5 }
 0x8eb   :  { %4187 = vmatmul.msk.bf16.vlgmr.msrb.gmra.mxu0 %vm470_vm0, %v1745_v50 }
 0x8ec   :  { %1853 = vmatpush.bf16.msrb.mxu1 %v4447_v60 }
 0x968   :  { %v1770_v1 = vpop.f32.mrf.mxu0 }
 0x969   :  { %v1771_v10 = vadd.f32 %v4524_v61, %v1770_v1 }
 0x96b   :  { %v1775_v25 = vmax.f32 %v1771_v10, 0.0 }
 0x970   :  { %v1772_v12 = vpop.f32.mrf.mxu0 }
 0x971   :  { %v1773_v18 = vadd.f32 %v4524_v61, %v1772_v12 }
 0x973   :  { %v1776_v22 = vmax.f32 %v1773_v18, 0.0 }
 0x975   :  { %v1777_v14 = vpack.c.bf16 %v1776_v22, %v1775_v25 }
 0x977   :  { %1854 = vmatmul.bf16.vlgmr.msrb.gmra.mxu1 %v1777_v14 }
 0x9f4   :  { %v1855_v28 = vpop.f32.mrf.mxu1 }
 0x9f5   :  { %v1856_v30 = vadd.f32 %v4525_v23, %v1855_v28 }
 0x9f7   :  { %v1862_v24 = vrot.slane %v1856_v30, 1  ;;  %v1863_v62 = vrot.slane %v1856_v30, 2  ;;  %v1864_v13 = vrot.slane %v1856_v30, 3  ;;  %v1865_v33 = vrot.slane %v1856_v30, 4 }
 0x9f8   :  { %v1866_v9 = vrot.slane %v1856_v30, 5  ;;  %v1867_v36 = vrot.slane %v1856_v30, 6  ;;  %v1868_v41 = vrot.slane %v1856_v30, 7  ;;  %v1892_v27 = vadd.f32 %v1856_v30, %v5468_v4 }
 0x9f9   :  { %v5613_v45 = vadd.f32 %v1862_v24, %v5476_v43  ;;  %v5616_v46 = vadd.f32 %v1863_v62, %v5479_v3  ;;  %v5619_v32 = vadd.f32 %v1864_v13, %v5483_v57  ;;  %v5622_v20 = vadd.f32 %v1865_v33, %v5487_v15 }
 0x9fa   :  { %v5625_v26 = vadd.f32 %v1866_v9, %v5493_v8  ;;  %v5631_v55 = vadd.f32 %v1867_v36, %v5496_v34  ;;  %v1899_v57 = vadd.f32 %v1868_v41, %v5501_v11 }
 0x9fb   :  { %v1926_v53 = vrot.slane %v5613_v45, 7  ;;  %v1928_v21 = vrot.slane %v5616_v46, 6  ;;  %v1930_v15 = vrot.slane %v5619_v32, 5  ;;  %v1932_v58 = vrot.slane %v5622_v20, 4 }
 0x9fc   :  { %v1857_v43 = vpop.f32.mrf.mxu1  ;;  %v1934_v4 = vrot.slane %v5625_v26, 3  ;;  %v1936_v16 = vrot.slane %v5631_v55, 2  ;;  %v1938_v47 = vrot.slane %v1899_v57, 1 }
 0x9fd   :  { %v1858_v3 = vadd.f32 %v4525_v23, %v1857_v43  ;;  %v1927_v17 = vsel %vm705_vm1, %v1926_v53, %v1892_v27 }
 0x9fe   :  { %v1929_v8 = vsel %vm708_vm2, %v1928_v21, %v1927_v17 }
 0x9ff   :  { %v1931_v35 = vsel %vm711_vm3, %v1930_v15, %v1929_v8  ;;  %v1869_v37 = vrot.slane %v1858_v3, 1  ;;  %v1870_v38 = vrot.slane %v1858_v3, 2  ;;  %v1871_v39 = vrot.slane %v1858_v3, 3 }
 0xa00   :  { %v1933_v34 = vsel %vm714_vm4, %v1932_v58, %v1931_v35  ;;  %v1872_v11 = vrot.slane %v1858_v3, 4  ;;  %v1873_v44 = vrot.slane %v1858_v3, 5  ;;  %v1874_v19 = vrot.slane %v1858_v3, 6 }
 0xa01   :  { %v1935_v48 = vsel %vm717_vm5, %v1934_v4, %v1933_v34  ;;  %v5644_v40 = vadd.f32 %v1869_v37, %v5541_v54  ;;  %v1875_v5 = vrot.slane %v1858_v3, 7  ;;  %v5648_v31 = vadd.f32 %v1870_v38, %v5544_v51 }
 0xa02   :  { %v1937_v56 = vsel %vm720_vm6, %v1936_v16, %v1935_v48  ;;  %v5651_v50 = vadd.f32 %v1871_v39, %v5547_v59  ;;  %v5655_v7 = vadd.f32 %v1858_v3, %v5535_v42  ;;  %v5658_v52 = vadd.f32 %v1872_v11, %v5550_v0 }
 0xa03   :  { %v1939_v6 = vsel %vm723_vm7, %v1938_v47, %v1937_v56  ;;  %v5662_v60 = vadd.f32 %v1873_v44, %v5553_v63  ;;  %v1940_v1 = vrot.slane %v5644_v40, 7  ;;  %v1942_v51 = vrot.slane %v5648_v31, 6 }
 0xa04   :  { %v1956_v54 = vsel %vm470_vm0, %v1939_v6, 0.0  ;;  %v5667_v59 = vadd.f32 %v1874_v19, %v5556_v2  ;;  %v5670_v61 = vadd.f32 %v1875_v5, %v5559_v29  ;;  %v1944_v0 = vrot.slane %v5651_v50, 5 }
 0xa05   :  { %1957 = vadd.xlane.f32.xlu2 %v1956_v54  ;;  %v1941_v42 = vsel %vm705_vm1, %v1940_v1, %v5655_v7  ;;  %v1946_v63 = vrot.slane %v5658_v52, 4  ;;  %v1948_v18 = vrot.slane %v5662_v60, 3 }
 0xa06   :  { %v1943_v10 = vsel %vm708_vm2, %v1942_v51, %v1941_v42  ;;  %v1950_v2 = vrot.slane %v5667_v59, 2  ;;  %v1952_v22 = vrot.slane %v5670_v61, 1 }
 0xa07   :  { %v1945_v12 = vsel %vm711_vm3, %v1944_v0, %v1943_v10 }
 0xa08   :  { %v1947_v25 = vsel %vm714_vm4, %v1946_v63, %v1945_v12 }
 0xa09   :  { %v1949_v29 = vsel %vm717_vm5, %v1948_v18, %v1947_v25 }
 0xa0a   :  { %v1951_v14 = vsel %vm720_vm6, %v1950_v2, %v1949_v29 }
 0xa0b   :  { %v1953_v23 = vsel %vm723_vm7, %v1952_v22, %v1951_v14 }
 0xa0c   :  { %v1959_v28 = vsel %vm470_vm0, %v1953_v23, 0.0 }
 0xa0d   :  { %1960 = vadd.xlane.f32.xlu2 %v1959_v28 }
 0xa78   :  { %v1958_v30 = vpop.xlane.xlu2 %1957 }
 0xa79   :  { %v1962_v24 = vmul.f32 %v1958_v30, %v5337_v49 }
 0xa7b   :  { %v1966_v62 = vrot.slane %v1962_v24, 1  ;;  %v1967_v13 = vrot.slane %v1962_v24, 2  ;;  %v1968_v33 = vrot.slane %v1962_v24, 3  ;;  %v1969_v9 = vrot.slane %v1962_v24, 4 }
 0xa7c   :  { %v1970_v36 = vrot.slane %v1962_v24, 5  ;;  %v1971_v41 = vrot.slane %v1962_v24, 6  ;;  %v1972_v53 = vrot.slane %v1962_v24, 7  ;;  %v5687_v21 = vsub.f32 %v1892_v27, %v1962_v24 }
 0xa7d   :  { %v5690_v43 = vsub.f32 %v5613_v45, %v1966_v62  ;;  %v5693_v3 = vsub.f32 %v5616_v46, %v1967_v13  ;;  %v5696_v17 = vsub.f32 %v5619_v32, %v1968_v33  ;;  %v5699_v15 = vsub.f32 %v5622_v20, %v1969_v9 }
 0xa7e   :  { %v5702_v8 = vsub.f32 %v5625_v26, %v1970_v36  ;;  %v5705_v58 = vsub.f32 %v5631_v55, %v1971_v41  ;;  %v5707_v27 = vsub.f32 %v1899_v57, %v1972_v53  ;;  %v2012_v35 = vmul.f32 %v5687_v21, %v5687_v21 }
 0xa7f   :  { %v2013_v45 = vmul.f32 %v5690_v43, %v5690_v43  ;;  %v2014_v46 = vmul.f32 %v5693_v3, %v5693_v3  ;;  %v2015_v32 = vmul.f32 %v5696_v17, %v5696_v17  ;;  %v2016_v20 = vmul.f32 %v5699_v15, %v5699_v15 }
 0xa80   :  { %v2017_v26 = vmul.f32 %v5702_v8, %v5702_v8  ;;  %v2018_v55 = vmul.f32 %v5705_v58, %v5705_v58  ;;  %v2019_v57 = vmul.f32 %v5707_v27, %v5707_v27  ;;  %v1961_v4 = vpop.xlane.xlu2 %1960 }
 0xa81   :  { %v2044_v37 = vrot.slane %v2013_v45, 7  ;;  %v2046_v38 = vrot.slane %v2014_v46, 6  ;;  %v1963_v39 = vmul.f32 %v1961_v4, %v5337_v49  ;;  %v2048_v34 = vrot.slane %v2015_v32, 5 }
 0xa82   :  { %v2050_v16 = vrot.slane %v2016_v20, 4  ;;  %v2052_v44 = vrot.slane %v2017_v26, 3  ;;  %v2054_v48 = vrot.slane %v2018_v55, 2  ;;  %v2056_v47 = vrot.slane %v2019_v57, 1 }
 0xa83   :  { %v2045_v11 = vsel %vm705_vm1, %v2044_v37, %v2012_v35  ;;  %v1973_v56 = vrot.slane %v1963_v39, 1  ;;  %v1974_v5 = vrot.slane %v1963_v39, 2  ;;  %v1975_v6 = vrot.slane %v1963_v39, 3 }
 0xa84   :  { %v2047_v19 = vsel %vm708_vm2, %v2046_v38, %v2045_v11  ;;  %v1976_v1 = vrot.slane %v1963_v39, 4  ;;  %v1977_v51 = vrot.slane %v1963_v39, 5  ;;  %v1978_v42 = vrot.slane %v1963_v39, 6 }
 0xa85   :  { %v2049_v54 = vsel %vm711_vm3, %v2048_v34, %v2047_v19  ;;  %v1979_v10 = vrot.slane %v1963_v39, 7  ;;  %v5731_v63 = vsub.f32 %v5655_v7, %v1963_v39  ;;  %v5734_v12 = vsub.f32 %v5644_v40, %v1973_v56  ;;  %v4456_v34 = vld [vmem:[%s6765_s5 + $0x18] sm:$0xff] }
 0xa86   :  { %v2051_v0 = vsel %vm714_vm4, %v2050_v16, %v2049_v54  ;;  %v5738_v25 = vsub.f32 %v5648_v31, %v1974_v5  ;;  %v5741_v2 = vsub.f32 %v5651_v50, %v1975_v6  ;;  %v5744_v29 = vsub.f32 %v5658_v52, %v1976_v1  ;;  %2298 = vmatpush.bf16.msrb.mxu2 %v4456_v34  ;;  %v5793_v1 = vld [vmem:[%s6730_s15] ss:$0 sm:$0xff] }
 0xa87   :  { %v2053_v18 = vsel %vm717_vm5, %v2052_v44, %v2051_v0  ;;  %v5748_v14 = vsub.f32 %v5662_v60, %v1977_v51  ;;  %v5751_v7 = vsub.f32 %v5667_v59, %v1978_v42  ;;  %v5755_v23 = vsub.f32 %v5670_v61, %v1979_v10 }
 0xa88   :  { %v2055_v22 = vsel %vm720_vm6, %v2054_v48, %v2053_v18  ;;  %v2021_v31 = vmul.f32 %v5734_v12, %v5734_v12  ;;  %v2022_v50 = vmul.f32 %v5738_v25, %v5738_v25  ;;  %v2023_v60 = vmul.f32 %v5741_v2, %v5741_v2  ;;  %v4455_v48 = vld [vmem:[%s6765_s5 + $0x10] sm:$0xff] }
 0xa89   :  { %v2057_v40 = vsel %vm723_vm7, %v2056_v47, %v2055_v22  ;;  %v2024_v59 = vmul.f32 %v5744_v29, %v5744_v29  ;;  %v2020_v28 = vmul.f32 %v5731_v63, %v5731_v63  ;;  %v2025_v61 = vmul.f32 %v5748_v14, %v5748_v14 }
 0xa8a   :  { %v2074_v52 = vsel %vm470_vm0, %v2057_v40, 0.0  ;;  %v2058_v30 = vrot.slane %v2021_v31, 7  ;;  %v2060_v24 = vrot.slane %v2022_v50, 6  ;;  %v2026_v62 = vmul.f32 %v5751_v7, %v5751_v7  ;;  %2299 = vmatpush.bf16.msrb.mxu2 %v4455_v48  ;;  %v5798_v40 = vld [vmem:[%s6766_s1] ss:$0 sm:$0xff] }
 0xa8b   :  { %2075 = vadd.xlane.f32.xlu2 %v2074_v52  ;;  %v2027_v13 = vmul.f32 %v5755_v23, %v5755_v23  ;;  %v2062_v9 = vrot.slane %v2023_v60, 5  ;;  %v2064_v41 = vrot.slane %v2024_v59, 4  ;;  %v2066_v45 = vrot.slane %v2025_v61, 3 }
 0xa8c   :  { %v2059_v33 = vsel %vm705_vm1, %v2058_v30, %v2020_v28  ;;  %v2068_v32 = vrot.slane %v2026_v62, 2 }
 0xa8d   :  { %v2061_v36 = vsel %vm708_vm2, %v2060_v24, %v2059_v33  ;;  %v2070_v26 = vrot.slane %v2027_v13, 1 }
 0xa8e   :  { %v2063_v53 = vsel %vm711_vm3, %v2062_v9, %v2061_v36 }
 0xa8f   :  { %v2065_v46 = vsel %vm714_vm4, %v2064_v41, %v2063_v53 }
 0xa90   :  { %v2067_v20 = vsel %vm717_vm5, %v2066_v45, %v2065_v46 }
 0xa91   :  { %v2069_v55 = vsel %vm720_vm6, %v2068_v32, %v2067_v20 }
 0xa92   :  { %v2071_v57 = vsel %vm723_vm7, %v2070_v26, %v2069_v55 }
 0xa93   :  { %v2077_v4 = vsel %vm470_vm0, %v2071_v57, 0.0 }
 0xa94   :  { %2078 = vadd.xlane.f32.xlu2 %v2077_v4 }
 0xafe   :  { %v2076_v35 = vpop.xlane.xlu2 %2075 }
 0xaff   :  { %v2080_v37 = vmul.f32 %v2076_v35, %v5337_v49 }
 0xb01   :  { %v2082_v38 = vadd.f32 1e-05, %v2080_v37 }
 0xb03   :  { %4576 = vrsqrt.f32 %v2082_v38  ;;  %vm2090_vm12 = vweird.f32 %v2082_v38 }
 0xb07   :  { %v2079_v39 = vpop.xlane.xlu2 %2078 }
 0xb08   :  { %v2081_v11 = vmul.f32 %v2079_v39, %v5337_v49 }
 0xb09   :  { %v4577_v16 = vpop.eup %4576 }
 0xb0a   :  { %v2085_v44 = vmul.f32 %v4577_v16, %v2082_v38  ;;  %v2083_v47 = vadd.f32 1e-05, %v2081_v11  ;;  %vm2091_vm11 = vweird.f32 %v4577_v16 }
 0xb0b   :  { %vm2092_vm13 = vmor %vm2090_vm12, %vm2091_vm11 }
 0xb0c   :  { %v2086_v19 = vmul.f32 %v4577_v16, %v2085_v44  ;;  %4578 = vrsqrt.f32 %v2083_v47  ;;  %vm2100_vm15 = vweird.f32 %v2083_v47 }
 0xb0e   :  { %v2087_v56 = vmul.f32 0.5, %v2086_v19 }
 0xb10   :  { %v2088_v5 = vsub.f32 1.5, %v2087_v56 }
 0xb12   :  { %v2089_v6 = vmul.f32 %v4577_v16, %v2088_v5  ;;  %v4579_v54 = vpop.eup %4578 }
 0xb13   :  { %v2095_v42 = vmul.f32 %v4579_v54, %v2083_v47  ;;  %vm2101_vm14 = vweird.f32 %v4579_v54 }
 0xb14   :  { %v2093_v51 = vsel %vm2092_vm13, %v4577_v16, %v2089_v6  ;;  %vm2102_vm10 = vmor %vm2100_vm15, %vm2101_vm14 }
 0xb15   :  { %v2106_v0 = vrot.slane %v2093_v51, 1  ;;  %v2107_v10 = vrot.slane %v2093_v51, 2  ;;  %v2108_v18 = vrot.slane %v2093_v51, 3  ;;  %v2109_v22 = vrot.slane %v2093_v51, 4 }
 0xb16   :  { %v2110_v31 = vrot.slane %v2093_v51, 5  ;;  %v2111_v50 = vrot.slane %v2093_v51, 6  ;;  %v2112_v52 = vrot.slane %v2093_v51, 7  ;;  %v2136_v60 = vmul.f32 %v2093_v51, %v5687_v21 }
 0xb17   :  { %v2137_v59 = vmul.f32 %v2106_v0, %v5690_v43  ;;  %v2138_v28 = vmul.f32 %v2107_v10, %v5693_v3  ;;  %v2139_v61 = vmul.f32 %v2108_v18, %v5696_v17  ;;  %v2140_v30 = vmul.f32 %v2109_v22, %v5699_v15 }
 0xb18   :  { %v2141_v24 = vmul.f32 %v2110_v31, %v5702_v8  ;;  %v2155_v62 = vmul.f32 %v5793_v1, %v2136_v60  ;;  %v2096_v13 = vmul.f32 %v4579_v54, %v2095_v42  ;;  %v2142_v33 = vmul.f32 %v2111_v50, %v5705_v58 }
 0xb19   :  { %v2156_v9 = vmul.f32 %v5793_v1, %v2137_v59  ;;  %v2157_v36 = vmul.f32 %v5793_v1, %v2138_v28  ;;  %v2158_v21 = vmul.f32 %v5793_v1, %v2139_v61  ;;  %v2159_v43 = vmul.f32 %v5793_v1, %v2140_v30 }
 0xb1a   :  { %v5813_v3 = vadd.f32 %v5798_v40, %v2155_v62  ;;  %v2097_v17 = vmul.f32 0.5, %v2096_v13  ;;  %v2143_v15 = vmul.f32 %v2112_v52, %v5707_v27  ;;  %v2160_v8 = vmul.f32 %v5793_v1, %v2141_v24 }
 0xb1b   :  { %v5818_v41 = vadd.f32 %v5798_v40, %v2156_v9  ;;  %v5821_v58 = vadd.f32 %v5798_v40, %v2157_v36  ;;  %v2161_v53 = vmul.f32 %v5793_v1, %v2142_v33  ;;  %v5825_v45 = vadd.f32 %v5798_v40, %v2158_v21 }
 0xb1c   :  { %v2098_v46 = vsub.f32 1.5, %v2097_v17  ;;  %v2162_v32 = vmul.f32 %v5793_v1, %v2143_v15  ;;  %v5829_v20 = vadd.f32 %v5798_v40, %v2159_v43  ;;  %v5832_v27 = vadd.f32 %v5798_v40, %v2160_v8 }
 0xb1d   :  { %v5835_v26 = vadd.f32 %v5798_v40, %v2161_v53  ;;  %v2197_v55 = vpack.c.bf16 %v5813_v3, %v5813_v3  ;;  %v2198_v35 = vpack.c.bf16 %v5818_v41, %v5818_v41  ;;  %v2199_v37 = vpack.c.bf16 %v5821_v58, %v5821_v58 }
 0xb1e   :  { %v2099_v57 = vmul.f32 %v4579_v54, %v2098_v46  ;;  %v5840_v4 = vadd.f32 %v5798_v40, %v2162_v32  ;;  %v2200_v38 = vpack.c.bf16 %v5825_v45, %v5825_v45  ;;  %v2201_v34 = vpack.c.bf16 %v5829_v20, %v5829_v20 }
 0xb1f   :  { %v2202_v16 = vpack.c.bf16 %v5832_v27, %v5832_v27  ;;  %v2203_v11 = vpack.c.bf16 %v5835_v26, %v5835_v26  ;;  %v2233_v24 = vunpack.c.l.b16 %v2198_v35  ;;  %v2234_v43 = vunpack.c.l.b16 %v2199_v37 }
 0xb20   :  { %v2103_v39 = vsel %vm2102_vm10, %v4579_v54, %v2099_v57  ;;  %v2204_v62 = vpack.c.bf16 %v5840_v4, %v5840_v4  ;;  %v2232_v8 = vunpack.c.l.b16 %v2197_v55  ;;  %v2235_v53 = vunpack.c.l.b16 %v2200_v38 }
 0xb21   :  { %v2113_v44 = vrot.slane %v2103_v39, 1  ;;  %v2114_v48 = vrot.slane %v2103_v39, 2  ;;  %v2115_v47 = vrot.slane %v2103_v39, 3  ;;  %v2116_v19 = vrot.slane %v2103_v39, 4 }
 0xb22   :  { %v2117_v56 = vrot.slane %v2103_v39, 5  ;;  %v2118_v5 = vrot.slane %v2103_v39, 6  ;;  %v2119_v6 = vrot.slane %v2103_v39, 7  ;;  %v2144_v51 = vmul.f32 %v2103_v39, %v5731_v63 }
 0xb23   :  { %v2145_v54 = vmul.f32 %v2113_v44, %v5734_v12  ;;  %v2146_v42 = vmul.f32 %v2114_v48, %v5738_v25  ;;  %v2147_v0 = vmul.f32 %v2115_v47, %v5741_v2  ;;  %v2148_v10 = vmul.f32 %v2116_v19, %v5744_v29 }
 0xb24   :  { %v2149_v18 = vmul.f32 %v2117_v56, %v5748_v14  ;;  %v2163_v22 = vmul.f32 %v5793_v1, %v2144_v51  ;;  %v2150_v31 = vmul.f32 %v2118_v5, %v5751_v7  ;;  %v2151_v50 = vmul.f32 %v2119_v6, %v5755_v23 }
 0xb25   :  { %v2164_v52 = vmul.f32 %v5793_v1, %v2145_v54  ;;  %v2165_v63 = vmul.f32 %v5793_v1, %v2146_v42  ;;  %v2166_v12 = vmul.f32 %v5793_v1, %v2147_v0  ;;  %v2167_v25 = vmul.f32 %v5793_v1, %v2148_v10 }
 0xb26   :  { %v5868_v2 = vadd.f32 %v5798_v40, %v2163_v22  ;;  %v2168_v29 = vmul.f32 %v5793_v1, %v2149_v18  ;;  %v2169_v14 = vmul.f32 %v5793_v1, %v2150_v31  ;;  %v2170_v60 = vmul.f32 %v5793_v1, %v2151_v50 }
 0xb27   :  { %v5874_v7 = vadd.f32 %v5798_v40, %v2164_v52  ;;  %v5877_v23 = vadd.f32 %v5798_v40, %v2165_v63  ;;  %v5880_v59 = vadd.f32 %v5798_v40, %v2166_v12  ;;  %v5883_v28 = vadd.f32 %v5798_v40, %v2167_v25 }
 0xb28   :  { %v5886_v61 = vadd.f32 %v5798_v40, %v2168_v29  ;;  %v5889_v30 = vadd.f32 %v5798_v40, %v2169_v14  ;;  %v5892_v1 = vadd.f32 %v5798_v40, %v2170_v60  ;;  %v2205_v36 = vpack.c.bf16 %v5868_v2, %v5868_v2 }
 0xb29   :  { %v2206_v13 = vpack.c.bf16 %v5874_v7, %v5874_v7  ;;  %v2207_v33 = vpack.c.bf16 %v5877_v23, %v5877_v23  ;;  %v2208_v9 = vpack.c.bf16 %v5880_v59, %v5880_v59  ;;  %v2209_v40 = vpack.c.bf16 %v5883_v28, %v5883_v28 }
 0xb2a   :  { %v2210_v21 = vpack.c.bf16 %v5886_v61, %v5886_v61  ;;  %v2211_v17 = vpack.c.bf16 %v5889_v30, %v5889_v30  ;;  %v2212_v15 = vpack.c.bf16 %v5892_v1, %v5892_v1  ;;  %v2236_v46 = vunpack.c.l.b16 %v2201_v34 }
 0xb2b   :  { %v2237_v32 = vunpack.c.l.b16 %v2202_v16  ;;  %v2241_v57 = vunpack.c.l.b16 %v2206_v13  ;;  %v2242_v35 = vunpack.c.l.b16 %v2207_v33  ;;  %v2238_v39 = vunpack.c.l.b16 %v2203_v11 }
 0xb2c   :  { %v2239_v44 = vunpack.c.l.b16 %v2204_v62  ;;  %v2243_v48 = vunpack.c.l.b16 %v2208_v9  ;;  %v2248_v47 = vrot.slane %v2233_v24, 7  ;;  %v2240_v19 = vunpack.c.l.b16 %v2205_v36 }
 0xb2d   :  { %v2244_v56 = vunpack.c.l.b16 %v2209_v40  ;;  %v2245_v5 = vunpack.c.l.b16 %v2210_v21  ;;  %v2250_v37 = vrot.slane %v2234_v43, 6  ;;  %v2246_v6 = vunpack.c.l.b16 %v2211_v17  ;;  %v4528_v21 = vld [vmem:[%s6721_s6 + $0x1] ss:$0 sm:$0xff]  ;;  %s6767_s6 = smov 56  }
 0xb2e   :  { %v2249_v51 = vsel %vm705_vm1, %v2248_v47, %v2232_v8  ;;  %v2252_v54 = vrot.slane %v2235_v53, 5  ;;  %v2262_v42 = vrot.slane %v2241_v57, 7  ;;  %v2247_v0 = vunpack.c.l.b16 %v2212_v15 }
 0xb2f   :  { %v2251_v55 = vsel %vm708_vm2, %v2250_v37, %v2249_v51  ;;  %v2254_v38 = vrot.slane %v2236_v46, 4  ;;  %v2264_v34 = vrot.slane %v2242_v35, 6  ;;  %v2256_v11 = vrot.slane %v2237_v32, 3 }
 0xb30   :  { %v2253_v16 = vsel %vm711_vm3, %v2252_v54, %v2251_v55  ;;  %v2263_v10 = vsel %vm705_vm1, %v2262_v42, %v2240_v19  ;;  %v2266_v18 = vrot.slane %v2243_v48, 5  ;;  %v2258_v31 = vrot.slane %v2238_v39, 2 }
 0xb31   :  { %v2255_v22 = vsel %vm714_vm4, %v2254_v38, %v2253_v16  ;;  %v2265_v50 = vsel %vm708_vm2, %v2264_v34, %v2263_v10  ;;  %v2268_v52 = vrot.slane %v2244_v56, 4  ;;  %v2270_v25 = vrot.slane %v2245_v5, 3 }
 0xb32   :  { %v2257_v63 = vsel %vm717_vm5, %v2256_v11, %v2255_v22  ;;  %v2267_v12 = vsel %vm711_vm3, %v2266_v18, %v2265_v50  ;;  %v2272_v60 = vrot.slane %v2246_v6, 2  ;;  %v2260_v24 = vrot.slane %v2239_v44, 1 }
 0xb33   :  { %v2259_v29 = vsel %vm720_vm6, %v2258_v31, %v2257_v63  ;;  %v2269_v14 = vsel %vm714_vm4, %v2268_v52, %v2267_v12  ;;  %v2274_v13 = vrot.slane %v2247_v0, 1 }
 0xb34   :  { %v2271_v62 = vsel %vm717_vm5, %v2270_v25, %v2269_v14  ;;  %v2261_v9 = vsel %vm723_vm7, %v2260_v24, %v2259_v29 }
 0xb35   :  { %v2273_v33 = vsel %vm720_vm6, %v2272_v60, %v2271_v62 }
 0xb36   :  { %v2275_v36 = vsel %vm723_vm7, %v2274_v13, %v2273_v33 }
 0xb37   :  { %v2276_v40 = vpack.c.b16 %v2275_v36, %v2261_v9 }
 0xb39   :  { %4233 = vmatmul.msk.bf16.vlgmr.msrb.gmra.mxu2 %vm470_vm0, %v2276_v40 }
 0xbbc   :  { %v2301_v43 = vpop.f32.mrf.mxu2 }
 0xbbd   :  { %v2302_v17 = vadd.f32 %v4528_v21, %v2301_v43 }
 0xbbf   :  { %v2306_v15 = vpack.c.bf16 %v2302_v17, %v2302_v17 }
 0xbc1   :  { %v2309_v8 = vunpack.c.l.b16 %v2306_v15 }
 0xbc3   :  { %v5930_v53 = vpack.c.b16 %v2309_v8, %v2309_v8 }
 0xbc4   :  { %v2303_v46 = vpop.f32.mrf.mxu2 }
 0xbc5   :  { %v2304_v32 = vadd.f32 %v4528_v21, %v2303_v46  ;;  %2427 = vrot.lane.b32.xlu1 %v5930_v53, %s4649_s3  ;;  %2311 = vrot.lane.b32.xlu0 %v5930_v53, %s4647_s25 }
 0xbc7   :  { %v2307_v57 = vpack.c.bf16 %v2304_v32, %v2304_v32 }
 0xbc9   :  { %v2333_v35 = vunpack.c.l.b16 %v2307_v57 }
 0xbcb   :  { %v5936_v39 = vpack.c.b16 %v2333_v35, %v2333_v35 }
 0xbcd   :  { %2335 = vrot.lane.b32.xlu2 %v5936_v39, %s4647_s25  ;;  %2425 = vrot.lane.b32.xlu0 %v5930_v53, %s4648_s27  ;;  %s6768_s25 = smov 48  }
 0xbd5   :  { %2448 = vrot.lane.b32.xlu2 %v5936_v39, %s4648_s27  ;;  %2450 = vrot.lane.b32.xlu0 %v5936_v39, %s4649_s3  ;;  %s6769_s27 = smov 72   ;;  %s6770_s3 = smov 104  }
 0xc27   :  { %v2336_v44 = vpop.permute.xlu2 %2335 }
 0xc28   :  { %v2341_v48 = vsel %vm776_vm8, %v2336_v44, 0 }
 0xc29   :  { %2350 = vmatpush.bf16.xpose.msra.mxu0 %v2341_v48 }
 0xc2f   :  { %v2449_v54 = vpop.permute.xlu2 %2448 }
 0xc30   :  { %4235 = vmatmul.msk.bf16.vlgmr.msra.gmra.mxu0 %vm776_vm8, %v2307_v57 }
 0xc37   :  { %v2428_v47 = vpop.permute.xlu1 %2427  ;;  %v2312_v19 = vpop.permute.xlu0 %2311 }
 0xc38   :  { %v2433_v56 = vsel %vm776_vm8, %v2428_v47, 0  ;;  %v2317_v5 = vsel %vm776_vm8, %v2312_v19, 0 }
 0xc39   :  { %2326 = vmatpush.bf16.xpose.msra.mxu3 %v2317_v5  ;;  %2442 = vmatpush.bf16.xpose.msrb.mxu0 %v2433_v56 }
 0xc3f   :  { %v2426_v37 = vpop.permute.xlu0 %2425 }
 0xc40   :  { %4234 = vmatmul.msk.bf16.vlgmr.msra.gmra.mxu3 %vm776_vm8, %v2306_v15  ;;  %4239 = vmatmul.msk.bf16.vlgmr.msrb.gmra.mxu0 %vm776_vm8, %v2426_v37 }
 0xc47   :  { %v2451_v6 = vpop.permute.xlu0 %2450 }
 0xc48   :  { %v2456_v51 = vsel %vm776_vm8, %v2451_v6, 0 }
 0xc49   :  { %2465 = vmatpush.bf16.xpose.msra.mxu1 %v2456_v51 }
 0xc50   :  { %4240 = vmatmul.msk.bf16.vlgmr.msra.gmra.mxu1 %vm776_vm8, %v2449_v54 }
 0xcad   :  { %v5954_v42 = vpop.f32.mrf.mxu0 }
 0xcae   :  { %v2359_v9 = vsel %vm776_vm8, %v5954_v42, -inf }
 0xcb5   :  { %v2354_v0 = vpop.f32.mrf.mxu0 }
 0xcbd   :  { %v2444_v55 = vpop.f32.mrf.mxu0 }
 0xcbe   :  { %v2471_v38 = vsel %vm776_vm8, %v2444_v55, -inf }
 0xcbf   :  { %2472 = vmax.xlane.f32.xlu0 %v2471_v38 }
 0xcc3   :  { %v2328_v34 = vpop.f32.mrf.mxu3 }
 0xcc4   :  { %v2356_v16 = vsel %vm776_vm8, %v2328_v34, -inf }
 0xcc5   :  { %2357 = vmax.xlane.f32.xlu1 %v2356_v16  ;;  %v2446_v11 = vpop.f32.mrf.mxu0 }
 0xccb   :  { %v2330_v10 = vpop.f32.mrf.mxu3 }
 0xccd   :  { %v2467_v18 = vpop.f32.mrf.mxu1 }
 0xcce   :  { %v2474_v33 = vsel %vm776_vm8, %v2467_v18, -inf }
 0xcd5   :  { %v2469_v22 = vpop.f32.mrf.mxu1 }
 0xcde   :  { %2380 = vrot.lane.b32.xlu1 %v5930_v53, %s4654_s4 }
 0xce6   :  { %2580 = vrot.lane.b32.xlu1 %v5930_v53, %s4653_s29 }
 0xd32   :  { %v2473_v31 = vpop.xlane.xlu0 %2472 }
 0xd33   :  { %v2477_v50 = vsub.f32 %v2444_v55, %v2473_v31 }
 0xd35   :  { %v2479_v52 = vmul.f32 1.442695, %v2477_v50 }
 0xd37   :  { %4580 = vpow2.f32 %v2479_v52  ;;  %v4243_v52 = vld [vmem:[%s6722_s7 + $0x14] sm:$0xf] }
 0xd38   :  { %v2358_v63 = vpop.xlane.xlu1 %2357 }
 0xd39   :  { %v2362_v12 = vsub.f32 %v2328_v34, %v2358_v63  ;;  %v2544_v63 = vsel %vm849_vm9, %v4243_v52, 0 }
 0xd3a   :  { %2553 = vmatpush.bf16.msra.mxu0 %v2544_v63 }
 0xd3b   :  { %v2364_v25 = vmul.f32 1.442695, %v2362_v12 }
 0xd3d   :  { %v4581_v29 = vpop.eup %4580  ;;  %4582 = vpow2.f32 %v2364_v25 }
 0xd3e   :  { %v2483_v14 = vsel %vm776_vm8, %v4581_v29, 0.0 }
 0xd3f   :  { %2484 = vadd.xlane.f32.xlu0 %v2483_v14 }
 0xd43   :  { %v4583_v60 = vpop.eup %4582 }
 0xd44   :  { %v2368_v24 = vsel %vm776_vm8, %v4583_v60, 0.0 }
 0xd45   :  { %2369 = vadd.xlane.f32.xlu2 %v2368_v24 }
 0xd50   :  { %v2381_v62 = vpop.permute.xlu1 %2380 }
 0xd51   :  { %v2386_v13 = vsel %vm849_vm9, %v2381_v62, 0 }
 0xd52   :  { %2395 = vmatpush.bf16.msra.mxu2 %v2386_v13 }
 0xd53   :  { %2582 = vrot.lane.b32.xlu0 %v5930_v53, %s4651_s16 }
 0xd58   :  { %v2581_v48 = vpop.permute.xlu1 %2580 }
 0xd5d   :  { %2495 = vrot.lane.b32.xlu2 %v5930_v53, %s6767_s6 }
 0xd7d   :  { %2475 = vmax.xlane.f32.xlu0 %v2474_v33 }
 0xd86   :  { %2360 = vmax.xlane.f32.xlu2 %v2359_v9 }
 0xd9e   :  { %2401 = vrot.lane.b32.xlu2 %v5936_v39, %s4654_s4 }
 0xda6   :  { %2603 = vrot.lane.b32.xlu2 %v5936_v39, %s4653_s29 }
 0xdb2   :  { %v2485_v40 = vpop.xlane.xlu0 %2484 }
 0xdb8   :  { %v2370_v36 = vpop.xlane.xlu2 %2369 }
 0xdb9   :  { %4584 = vrcp.f32 %v2370_v36 }
 0xdba   :  { %4586 = vrcp.f32 %v2485_v40 }
 0xdbf   :  { %v4585_v21 = vpop.eup %4584 }
 0xdc0   :  { %v2376_v43 = vmul.f32 %v4585_v21, %v4583_v60  ;;  %v2496_v17 = vpop.permute.xlu2 %2495  ;;  %v4587_v57 = vpop.eup %4586 }
 0xdc1   :  { %v2501_v15 = vsel %vm849_vm9, %v2496_v17, 0  ;;  %v2491_v35 = vmul.f32 %v4587_v57, %v4581_v29 }
 0xdc2   :  { %v2378_v8 = vpack.c.bf16 %v2376_v43, %v2376_v43  ;;  %2510 = vmatpush.bf16.msrb.mxu2 %v2501_v15 }
 0xdc3   :  { %v2493_v44 = vpack.c.bf16 %v2491_v35, %v2491_v35 }
 0xdc4   :  { %4236 = vmatmul.msk.bf16.vlgmr.msra.gmra.mxu2 %vm776_vm8, %v2378_v8 }
 0xdc5   :  { %v2583_v46 = vpop.permute.xlu0 %2582 }
 0xdc6   :  { %v2588_v32 = vsel %vm776_vm8, %v2583_v46, 0 }
 0xdc7   :  { %2597 = vmatpush.bf16.xpose.msra.mxu2 %v2588_v32 }
 0xdd4   :  { %4241 = vmatmul.msk.bf16.vlgmr.msrb.gmra.mxu2 %vm776_vm8, %v2493_v44 }
 0xde4   :  { %4246 = vmatmul.msk.bf16.vlgmr.msra.gmra.mxu2 %vm776_vm8, %v2581_v48 }
 0xdf0   :  { %v2476_v47 = vpop.xlane.xlu0 %2475 }
 0xdf1   :  { %v2478_v19 = vsub.f32 %v2467_v18, %v2476_v47  ;;  %v4238_v47 = vld [vmem:[%s6722_s7 + $0x10] sm:$0xf] }
 0xdf3   :  { %v2481_v56 = vmul.f32 1.442695, %v2478_v19  ;;  %v2564_v19 = vsel %vm849_vm9, %v4238_v47, 0 }
 0xdf4   :  { %2573 = vmatpush.bf16.msrb.mxu1 %v2564_v19 }
 0xdf5   :  { %4588 = vpow2.f32 %v2481_v56 }
 0xdf9   :  { %v2361_v5 = vpop.xlane.xlu2 %2360 }
 0xdfa   :  { %v2363_v37 = vsub.f32 %v5954_v42, %v2361_v5 }
 0xdfb   :  { %v4589_v6 = vpop.eup %4588 }
 0xdfc   :  { %v2366_v51 = vmul.f32 1.442695, %v2363_v37  ;;  %v2486_v54 = vsel %vm776_vm8, %v4589_v6, 0.0 }
 0xdfd   :  { %2487 = vadd.xlane.f32.xlu0 %v2486_v54 }
 0xdfe   :  { %4590 = vpow2.f32 %v2366_v51 }
 0xe01   :  { %v2402_v0 = vpop.permute.xlu2 %2401 }
 0xe02   :  { %v2407_v55 = vsel %vm849_vm9, %v2402_v0, 0 }
 0xe03   :  { %2416 = vmatpush.bf16.msrb.mxu3 %v2407_v55 }
 0xe04   :  { %v4591_v38 = vpop.eup %4590 }
 0xe05   :  { %v2371_v34 = vsel %vm776_vm8, %v4591_v38, 0.0 }
 0xe06   :  { %2372 = vadd.xlane.f32.xlu1 %v2371_v34 }
 0xe09   :  { %v2604_v15 = vpop.permute.xlu2 %2603 }
 0xe11   :  { %2605 = vrot.lane.b32.xlu0 %v5936_v39, %s4651_s16 }
 0xe1f   :  { %2516 = vrot.lane.b32.xlu1 %v5936_v39, %s6767_s6  ;;  %s4659_s6 = smov [#allocation2]  }
 0xe27   :  { %2650 = vrot.lane.b32.xlu1 %v5930_v53, %s6768_s25 }
 0xe2f   :  { %2719 = vrot.lane.b32.xlu1 %v5930_v53, %s6769_s27 }
 0xe37   :  { %2742 = vrot.lane.b32.xlu1 %v5936_v39, %s6769_s27 }
 0xe3f   :  { %2717 = vrot.lane.b32.xlu1 %v5930_v53, %s6770_s3 }
 0xe47   :  { %2740 = vrot.lane.b32.xlu1 %v5936_v39, %s6770_s3  ;;  %v2397_v42 = vpop.f32.mrf.mxu2 }
 0xe4f   :  { %v2399_v16 = vpop.f32.mrf.mxu2 }
 0xe57   :  { %v2512_v11 = vpop.f32.mrf.mxu2 }
 0xe5f   :  { %v2514_v10 = vpop.f32.mrf.mxu2 }
 0xe67   :  { %v2599_v18 = vpop.f32.mrf.mxu2 }
 0xe68   :  { %v2626_v22 = vsel %vm776_vm8, %v2599_v18, -inf }
 0xe69   :  { %2627 = vmax.xlane.f32.xlu2 %v2626_v22 }
 0xe6f   :  { %v2601_v31 = vpop.f32.mrf.mxu2 }
 0xe70   :  { %v2488_v14 = vpop.xlane.xlu0 %2487 }
 0xe79   :  { %v2373_v50 = vpop.xlane.xlu1 %2372 }
 0xe7a   :  { %4592 = vrcp.f32 %v2373_v50 }
 0xe7b   :  { %4594 = vrcp.f32 %v2488_v14 }
 0xe80   :  { %v4593_v12 = vpop.eup %4592 }
 0xe81   :  { %v2377_v25 = vmul.f32 %v4593_v12, %v4591_v38  ;;  %v4595_v60 = vpop.eup %4594 }
 0xe82   :  { %v2492_v24 = vmul.f32 %v4595_v60, %v4589_v6 }
 0xe83   :  { %v2379_v29 = vpack.c.bf16 %v2377_v25, %v2377_v25  ;;  %v2606_v62 = vpop.permute.xlu0 %2605 }
 0xe84   :  { %v2611_v9 = vsel %vm776_vm8, %v2606_v62, 0  ;;  %v2494_v36 = vpack.c.bf16 %v2492_v24, %v2492_v24 }
 0xe85   :  { %4237 = vmatmul.msk.bf16.vlgmr.msrb.gmra.mxu3 %vm776_vm8, %v2379_v29 }
 0xe91   :  { %v2517_v13 = vpop.permute.xlu1 %2516 }
 0xe92   :  { %v2522_v33 = vsel %vm849_vm9, %v2517_v13, 0 }
 0xe93   :  { %2531 = vmatpush.bf16.msra.mxu3 %v2522_v33 }
 0xe96   :  { %4242 = vmatmul.msk.bf16.vlgmr.msra.gmra.mxu3 %vm776_vm8, %v2494_v36 }
 0xe97   :  { %2620 = vmatpush.bf16.xpose.msrb.mxu3 %v2611_v9 }
 0xe99   :  { %v2651_v40 = vpop.permute.xlu1 %2650 }
 0xe9a   :  { %v2656_v21 = vsel %vm849_vm9, %v2651_v40, 0 }
 0xe9b   :  { %2665 = vmatpush.bf16.msrb.mxu0 %v2656_v21 }
 0xea1   :  { %v2720_v43 = vpop.permute.xlu1 %2719 }
 0xea2   :  { %v2725_v17 = vsel %vm776_vm8, %v2720_v43, 0 }
 0xea3   :  { %2734 = vmatpush.bf16.xpose.msra.mxu3 %v2725_v17 }
 0xea6   :  { %4247 = vmatmul.msk.bf16.vlgmr.msrb.gmra.mxu3 %vm776_vm8, %v2604_v15 }
 0xea9   :  { %v2743_v8 = vpop.permute.xlu1 %2742 }
 0xeaa   :  { %v2748_v54 = vsel %vm776_vm8, %v2743_v8, 0 }
 0xeb1   :  { %v2718_v46 = vpop.permute.xlu1 %2717 }
 0xeb6   :  { %4252 = vmatmul.msk.bf16.vlgmr.msra.gmra.mxu3 %vm776_vm8, %v2718_v46 }
 0xeb9   :  { %v2741_v52 = vpop.permute.xlu1 %2740 }
 0xedc   :  { %v2628_v32 = vpop.xlane.xlu2 %2627 }
 0xedd   :  { %v2632_v57 = vsub.f32 %v2599_v18, %v2628_v32 }
 0xedf   :  { %v2634_v35 = vmul.f32 1.442695, %v2632_v57 }
 0xee1   :  { %4596 = vpow2.f32 %v2634_v35 }
 0xee7   :  { %v4597_v44 = vpop.eup %4596 }
 0xee8   :  { %v2638_v48 = vsel %vm776_vm8, %v4597_v44, 0.0 }
 0xee9   :  { %2639 = vadd.xlane.f32.xlu0 %v2638_v48 }
 0xefd   :  { %2671 = vrot.lane.b32.xlu0 %v5936_v39, %s6768_s25  ;;  %s4136_s25 = sshll.u32 %s4659_s6, 4  ;;  %s4137_s25 = int_to_ptr.vmem [resolvable:$true] %s4136_s25 }
 0xf08   :  { %v2418_v56 = vpop.f32.mrf.mxu3 }
 0xf09   :  { %v2422_v5 = vpack.c.bf16 %v2418_v56, %v2397_v42 }
 0xf0b   :  { %4245 = vmatmul.msk.bf16.vlgmr.msrb.gmra.mxu1 %vm776_vm8, %v2422_v5 }
 0xf10   :  { %v2420_v37 = vpop.f32.mrf.mxu3 }
 0xf19   :  { %v2533_v6 = vpop.f32.mrf.mxu3 }
 0xf1a   :  { %v2537_v51 = vpack.c.bf16 %v2533_v6, %v2512_v11 }
 0xf1c   :  { %4244 = vmatmul.msk.bf16.vlgmr.msra.gmra.mxu0 %vm776_vm8, %v2537_v51  ;;  %v4250_v51 = vld [vmem:[%s6722_s7 + $0x18] sm:$0xf] }
 0xf1d   :  { %2757 = vmatpush.bf16.xpose.msra.mxu0 %v2748_v54  ;;  %v2699_v54 = vsel %vm849_vm9, %v4250_v51, 0 }
 0xf1e   :  { %2708 = vmatpush.bf16.msrb.mxu2 %v2699_v54 }
 0xf21   :  { %v2535_v0 = vpop.f32.mrf.mxu3 }
 0xf29   :  { %v2622_v55 = vpop.f32.mrf.mxu3 }
 0xf2a   :  { %v2629_v38 = vsel %vm776_vm8, %v2622_v55, -inf }
 0xf2b   :  { %2630 = vmax.xlane.f32.xlu2 %v2629_v38 }
 0xf31   :  { %v2624_v34 = vpop.f32.mrf.mxu3 }
 0xf39   :  { %v2736_v16 = vpop.f32.mrf.mxu3 }
 0xf3a   :  { %v2763_v43 = vsel %vm776_vm8, %v2736_v16, -inf }
 0xf41   :  { %v2738_v10 = vpop.f32.mrf.mxu3 }
 0xf5c   :  { %v2640_v18 = vpop.xlane.xlu0 %2639 }
 0xf5d   :  { %4598 = vrcp.f32 %v2640_v18 }
 0xf63   :  { %v4599_v42 = vpop.eup %4598 }
 0xf64   :  { %v2646_v22 = vmul.f32 %v4599_v42, %v4597_v44 }
 0xf66   :  { %v2648_v31 = vpack.c.bf16 %v2646_v22, %v2646_v22 }
 0xf68   :  { %4248 = vmatmul.msk.bf16.vlgmr.msrb.gmra.mxu0 %vm776_vm8, %v2648_v31 }
 0xf6f   :  { %v2672_v11 = vpop.permute.xlu0 %2671 }
 0xf70   :  { %v2677_v50 = vsel %vm849_vm9, %v2672_v11, 0 }
 0xf71   :  { %2686 = vmatpush.bf16.msra.mxu1 %v2677_v50 }
 0xf78   :  { %4253 = vmatmul.msk.bf16.vlgmr.msra.gmra.mxu0 %vm776_vm8, %v2741_v52 }
 0xf88   :  { %v2575_v63 = vpop.f32.mrf.mxu1 }
 0xf90   :  { %v2577_v0 = vpop.f32.mrf.mxu1 }
 0xf99   :  { %v2555_v12 = vpop.f32.mrf.mxu0 }
 0xf9a   :  { %v6026_v25 = vadd.f32 %v2575_v63, %v2555_v12 }
 0xf9e   :  { %v2631_v29 = vpop.xlane.xlu2 %2630 }
 0xf9f   :  { %v2633_v14 = vsub.f32 %v2622_v55, %v2631_v29  ;;  %v4256_v29 = vld [vmem:[%s6722_s7 + $0x1c] sm:$0xf] }
 0xfa1   :  { %v2636_v60 = vmul.f32 1.442695, %v2633_v14  ;;  %v6031_v13 = vpop.f32.mrf.mxu0  ;;  %v2836_v14 = vsel %vm849_vm9, %v4256_v29, 0 }
 0xfa2   :  { %2845 = vmatpush.bf16.msrb.mxu3 %v2836_v14 }
 0xfa3   :  { %4600 = vpow2.f32 %v2636_v60 }
 0xfa9   :  { %v4601_v24 = vpop.eup %4600 }
 0xfaa   :  { %v2641_v62 = vsel %vm776_vm8, %v4601_v24, 0.0 }
 0xfab   :  { %2642 = vadd.xlane.f32.xlu1 %v2641_v62 }
 0xfc4   :  { %2787 = vrot.lane.b32.xlu1 %v5930_v53, %s6771_s23 }
 0xfe5   :  { %v2667_v33 = vpop.f32.mrf.mxu0 }
 0xfed   :  { %v2669_v9 = vpop.f32.mrf.mxu0 }
 0xff5   :  { %v2759_v36 = vpop.f32.mrf.mxu0 }
 0xff6   :  { %v2766_v40 = vsel %vm776_vm8, %v2759_v36, -inf }
 0xff7   :  { %2767 = vmax.xlane.f32.xlu2 %v2766_v40  ;;  %v4529_v40 = vld [vmem:[%s6723_s8 + $0x1] ss:$0 sm:$0xff] }
 0xffd   :  { %v2761_v21 = vpop.f32.mrf.mxu0 }
 0xfff   :  { %2764 = vmax.xlane.f32.xlu2 %v2763_v43 }
0x101e   :  { %v2643_v17 = vpop.xlane.xlu1 %2642 }
0x101f   :  { %4602 = vrcp.f32 %v2643_v17  ;;  %v2578_v17 = vadd.f32 %v2577_v0, %v6031_v13 }
0x1025   :  { %v4603_v15 = vpop.eup %4602 }
0x1026   :  { %v2647_v8 = vmul.f32 %v4603_v15, %v4601_v24 }
0x1028   :  { %v2649_v46 = vpack.c.bf16 %v2647_v8, %v2647_v8 }
0x102a   :  { %4249 = vmatmul.msk.bf16.vlgmr.msra.gmra.mxu1 %vm776_vm8, %v2649_v46 }
0x1036   :  { %v2788_v53 = vpop.permute.xlu1 %2787 }
0x1037   :  { %v2793_v32 = vsel %vm849_vm9, %v2788_v53, 0 }
0x1038   :  { %2802 = vmatpush.bf16.msrb.mxu1 %v2793_v32 }
0x106a   :  { %v2768_v57 = vpop.xlane.xlu2 %2767 }
0x106b   :  { %v2770_v35 = vsub.f32 %v2759_v36, %v2768_v57 }
0x106d   :  { %v2773_v44 = vmul.f32 1.442695, %v2770_v35 }
0x106f   :  { %4604 = vpow2.f32 %v2773_v44 }
0x1072   :  { %v2765_v48 = vpop.xlane.xlu2 %2764 }
0x1073   :  { %v2769_v47 = vsub.f32 %v2736_v16, %v2765_v48 }
0x1075   :  { %v4605_v19 = vpop.eup %4604  ;;  %v2771_v56 = vmul.f32 1.442695, %v2769_v47 }
0x1076   :  { %v2778_v5 = vsel %vm776_vm8, %v4605_v19, 0.0 }
0x1077   :  { %4606 = vpow2.f32 %v2771_v56  ;;  %2779 = vadd.xlane.f32.xlu0 %v2778_v5 }
0x107d   :  { %v4607_v37 = vpop.eup %4606 }
0x107e   :  { %v2775_v6 = vsel %vm776_vm8, %v4607_v37, 0.0 }
0x107f   :  { %2776 = vadd.xlane.f32.xlu2 %v2775_v6 }
0x1097   :  { %2808 = vrot.lane.b32.xlu2 %v5936_v39, %s6771_s23 }
0x10a7   :  { %v2688_v55 = vpop.f32.mrf.mxu1 }
0x10a8   :  { %v2692_v38 = vpack.c.bf16 %v2688_v55, %v2667_v33 }
0x10aa   :  { %4251 = vmatmul.msk.bf16.vlgmr.msrb.gmra.mxu2 %vm776_vm8, %v2692_v38 }
0x10af   :  { %v2690_v34 = vpop.f32.mrf.mxu1 }
0x10ea   :  { %v2780_v16 = vpop.xlane.xlu0 %2779 }
0x10eb   :  { %4608 = vrcp.f32 %v2780_v16 }
0x10f1   :  { %v4609_v18 = vpop.eup %4608 }
0x10f2   :  { %v2777_v10 = vpop.xlane.xlu2 %2776  ;;  %v2784_v22 = vmul.f32 %v4609_v18, %v4605_v19 }
0x10f3   :  { %4610 = vrcp.f32 %v2777_v10 }
0x10f4   :  { %v2786_v39 = vpack.c.bf16 %v2784_v22, %v2784_v22 }
0x10f9   :  { %v4611_v42 = vpop.eup %4610 }
0x10fa   :  { %v2783_v31 = vmul.f32 %v4611_v42, %v4607_v37  ;;  %v2809_v11 = vpop.permute.xlu2 %2808 }
0x10fb   :  { %v2814_v50 = vsel %vm849_vm9, %v2809_v11, 0 }
0x10fc   :  { %v2785_v52 = vpack.c.bf16 %v2783_v31, %v2783_v31  ;;  %2823 = vmatpush.bf16.msra.mxu2 %v2814_v50 }
0x10fe   :  { %4254 = vmatmul.msk.bf16.vlgmr.msrb.gmra.mxu1 %vm776_vm8, %v2785_v52 }
0x10ff   :  { %4255 = vmatmul.msk.bf16.vlgmr.msra.gmra.mxu2 %vm776_vm8, %v2786_v39 }
0x112d   :  { %v2710_v63 = vpop.f32.mrf.mxu2 }
0x112e   :  { %v2715_v12 = vadd.f32 %v2710_v63, %v6026_v25 }
0x1135   :  { %v2712_v60 = vpop.f32.mrf.mxu2 }
0x1136   :  { %v2716_v32 = vadd.f32 %v2712_v60, %v2578_v17 }
0x117b   :  { %v2804_v24 = vpop.f32.mrf.mxu1 }
0x1182   :  { %v2825_v62 = vpop.f32.mrf.mxu2 }
0x1183   :  { %v2829_v33 = vpack.c.bf16 %v2825_v62, %v2804_v24  ;;  %v2806_v9 = vpop.f32.mrf.mxu1 }
0x1185   :  { %4257 = vmatmul.msk.bf16.vlgmr.msrb.gmra.mxu3 %vm776_vm8, %v2829_v33 }
0x118a   :  { %v2827_v36 = vpop.f32.mrf.mxu2 }
0x1208   :  { %v2847_v25 = vpop.f32.mrf.mxu3 }
0x1209   :  { %v2852_v21 = vadd.f32 %v2847_v25, %v2715_v12 }
0x120b   :  { %v2859_v43 = vadd.f32 %v4529_v40, %v2852_v21 }
0x120d   :  { %v2863_v15 = vrot.slane %v2859_v43, 1  ;;  %v2864_v8 = vrot.slane %v2859_v43, 2  ;;  %v2865_v46 = vrot.slane %v2859_v43, 3  ;;  %v2866_v53 = vrot.slane %v2859_v43, 4 }
0x120e   :  { %v2867_v57 = vrot.slane %v2859_v43, 5  ;;  %v2868_v35 = vrot.slane %v2859_v43, 6  ;;  %v2869_v44 = vrot.slane %v2859_v43, 7  ;;  %v2893_v6 = vadd.f32 %v2859_v43, %v5813_v3 }
0x120f   :  { %v6060_v48 = vadd.f32 %v2863_v15, %v5818_v41  ;;  %v6063_v47 = vadd.f32 %v2864_v8, %v5821_v58  ;;  %v6066_v19 = vadd.f32 %v2865_v46, %v5825_v45  ;;  %v6069_v13 = vadd.f32 %v2866_v53, %v5829_v20 }
0x1210   :  { %v2849_v56 = vpop.f32.mrf.mxu3  ;;  %v6072_v5 = vadd.f32 %v2867_v57, %v5832_v27  ;;  %v6078_v58 = vadd.f32 %v2868_v35, %v5835_v26  ;;  %v2900_v45 = vadd.f32 %v2869_v44, %v5840_v4 }
0x1211   :  { %v2853_v37 = vadd.f32 %v2849_v56, %v2716_v32  ;;  %v2929_v51 = vrot.slane %v6060_v48, 7  ;;  %v2931_v41 = vrot.slane %v6063_v47, 6  ;;  %v2933_v20 = vrot.slane %v6066_v19, 5 }
0x1212   :  { %v2935_v55 = vrot.slane %v6069_v13, 4  ;;  %v2937_v3 = vrot.slane %v6072_v5, 3  ;;  %v2939_v18 = vrot.slane %v6078_v58, 2  ;;  %v2941_v31 = vrot.slane %v2900_v45, 1 }
0x1213   :  { %v2860_v54 = vadd.f32 %v4529_v40, %v2853_v37  ;;  %v2930_v0 = vsel %vm705_vm1, %v2929_v51, %v2893_v6 }
0x1214   :  { %v2932_v27 = vsel %vm708_vm2, %v2931_v41, %v2930_v0 }
0x1215   :  { %v2934_v38 = vsel %vm711_vm3, %v2933_v20, %v2932_v27  ;;  %v2870_v34 = vrot.slane %v2860_v54, 1  ;;  %v2871_v16 = vrot.slane %v2860_v54, 2  ;;  %v2872_v10 = vrot.slane %v2860_v54, 3 }
0x1216   :  { %v2936_v26 = vsel %vm714_vm4, %v2935_v55, %v2934_v38  ;;  %v2873_v4 = vrot.slane %v2860_v54, 4  ;;  %v2874_v42 = vrot.slane %v2860_v54, 5  ;;  %v2875_v11 = vrot.slane %v2860_v54, 6 }
0x1217   :  { %v2938_v22 = vsel %vm717_vm5, %v2937_v3, %v2936_v26  ;;  %v6091_v50 = vadd.f32 %v2870_v34, %v5874_v7  ;;  %v2876_v39 = vrot.slane %v2860_v54, 7  ;;  %v6095_v63 = vadd.f32 %v2871_v16, %v5877_v23 }
0x1218   :  { %v2940_v52 = vsel %vm720_vm6, %v2939_v18, %v2938_v22  ;;  %v6098_v12 = vadd.f32 %v2872_v10, %v5880_v59  ;;  %v6102_v14 = vadd.f32 %v2860_v54, %v5868_v2  ;;  %v6105_v60 = vadd.f32 %v2873_v4, %v5883_v28 }
0x1219   :  { %v2942_v29 = vsel %vm723_vm7, %v2941_v31, %v2940_v52  ;;  %v6109_v24 = vadd.f32 %v2874_v42, %v5886_v61  ;;  %v2943_v62 = vrot.slane %v6091_v50, 7  ;;  %v2945_v23 = vrot.slane %v6095_v63, 6 }
0x121a   :  { %v2959_v7 = vsel %vm470_vm0, %v2942_v29, 0.0  ;;  %v6114_v59 = vadd.f32 %v2875_v11, %v5889_v30  ;;  %v6117_v33 = vadd.f32 %v2876_v39, %v5892_v1  ;;  %v2947_v28 = vrot.slane %v6098_v12, 5 }
0x121b   :  { %2960 = vadd.xlane.f32.xlu2 %v2959_v7  ;;  %v2944_v2 = vsel %vm705_vm1, %v2943_v62, %v6102_v14  ;;  %v2949_v61 = vrot.slane %v6105_v60, 4  ;;  %v2951_v40 = vrot.slane %v6109_v24, 3 }
0x121c   :  { %v2946_v9 = vsel %vm708_vm2, %v2945_v23, %v2944_v2  ;;  %v2953_v30 = vrot.slane %v6114_v59, 2  ;;  %v2955_v21 = vrot.slane %v6117_v33, 1 }
0x121d   :  { %v2948_v36 = vsel %vm711_vm3, %v2947_v28, %v2946_v9 }
0x121e   :  { %v2950_v25 = vsel %vm714_vm4, %v2949_v61, %v2948_v36 }
0x121f   :  { %v2952_v1 = vsel %vm717_vm5, %v2951_v40, %v2950_v25 }
0x1220   :  { %v2954_v43 = vsel %vm720_vm6, %v2953_v30, %v2952_v1 }
0x1221   :  { %v2956_v17 = vsel %vm723_vm7, %v2955_v21, %v2954_v43 }
0x1222   :  { %v2962_v15 = vsel %vm470_vm0, %v2956_v17, 0.0 }
0x1223   :  { %2963 = vadd.xlane.f32.xlu0 %v2962_v15 }
0x128e   :  { %v2961_v8 = vpop.xlane.xlu2 %2960 }
0x128f   :  { %v2965_v46 = vmul.f32 %v2961_v8, %v5337_v49 }
0x1291   :  { %v2969_v53 = vrot.slane %v2965_v46, 1  ;;  %v2970_v32 = vrot.slane %v2965_v46, 2  ;;  %v2971_v57 = vrot.slane %v2965_v46, 3  ;;  %v2972_v35 = vrot.slane %v2965_v46, 4 }
0x1292   :  { %v2973_v44 = vrot.slane %v2965_v46, 5  ;;  %v2974_v56 = vrot.slane %v2965_v46, 6  ;;  %v2975_v37 = vrot.slane %v2965_v46, 7  ;;  %v6134_v51 = vsub.f32 %v2893_v6, %v2965_v46 }
0x1293   :  { %v6137_v41 = vsub.f32 %v6060_v48, %v2969_v53  ;;  %v6140_v54 = vsub.f32 %v6063_v47, %v2970_v32  ;;  %v6143_v0 = vsub.f32 %v6066_v19, %v2971_v57  ;;  %v6146_v20 = vsub.f32 %v6069_v13, %v2972_v35 }
0x1294   :  { %v6149_v27 = vsub.f32 %v6072_v5, %v2973_v44  ;;  %v6152_v55 = vsub.f32 %v6078_v58, %v2974_v56  ;;  %v6154_v6 = vsub.f32 %v2900_v45, %v2975_v37  ;;  %v3015_v38 = vmul.f32 %v6134_v51, %v6134_v51 }
0x1295   :  { %v3016_v48 = vmul.f32 %v6137_v41, %v6137_v41  ;;  %v3017_v47 = vmul.f32 %v6140_v54, %v6140_v54  ;;  %v3018_v19 = vmul.f32 %v6143_v0, %v6143_v0  ;;  %v3019_v13 = vmul.f32 %v6146_v20, %v6146_v20 }
0x1296   :  { %v3020_v5 = vmul.f32 %v6149_v27, %v6149_v27  ;;  %v3021_v58 = vmul.f32 %v6152_v55, %v6152_v55  ;;  %v3022_v45 = vmul.f32 %v6154_v6, %v6154_v6  ;;  %v2964_v3 = vpop.xlane.xlu0 %2963 }
0x1297   :  { %v3047_v34 = vrot.slane %v3016_v48, 7  ;;  %v3049_v16 = vrot.slane %v3017_v47, 6  ;;  %v2966_v10 = vmul.f32 %v2964_v3, %v5337_v49  ;;  %v3051_v26 = vrot.slane %v3018_v19, 5 }
0x1298   :  { %v3053_v18 = vrot.slane %v3019_v13, 4  ;;  %v3055_v42 = vrot.slane %v3020_v5, 3  ;;  %v3057_v22 = vrot.slane %v3021_v58, 2  ;;  %v3059_v31 = vrot.slane %v3022_v45, 1 }
0x1299   :  { %v3048_v4 = vsel %vm705_vm1, %v3047_v34, %v3015_v38  ;;  %v2976_v52 = vrot.slane %v2966_v10, 1  ;;  %v2977_v39 = vrot.slane %v2966_v10, 2  ;;  %v2978_v29 = vrot.slane %v2966_v10, 3 }
0x129a   :  { %v3050_v11 = vsel %vm708_vm2, %v3049_v16, %v3048_v4  ;;  %v2979_v62 = vrot.slane %v2966_v10, 4  ;;  %v2980_v23 = vrot.slane %v2966_v10, 5  ;;  %v2981_v2 = vrot.slane %v2966_v10, 6 }
0x129b   :  { %v3052_v7 = vsel %vm711_vm3, %v3051_v26, %v3050_v11  ;;  %v2982_v9 = vrot.slane %v2966_v10, 7  ;;  %v6178_v61 = vsub.f32 %v6102_v14, %v2966_v10  ;;  %v6181_v36 = vsub.f32 %v6091_v50, %v2976_v52  ;;  %v4458_v26 = vld [vmem:[%s6726_s11 + $0x18] sm:$0xff] }
0x129c   :  { %v3054_v28 = vsel %vm714_vm4, %v3053_v18, %v3052_v7  ;;  %v6185_v25 = vsub.f32 %v6095_v63, %v2977_v39  ;;  %v6188_v30 = vsub.f32 %v6098_v12, %v2978_v29  ;;  %v6191_v1 = vsub.f32 %v6105_v60, %v2979_v62  ;;  %3301 = vmatpush.bf16.msrb.mxu0 %v4458_v26  ;;  %v6240_v62 = vld [vmem:[%s6724_s9 + $0x1] ss:$0 sm:$0xff] }
0x129d   :  { %v3056_v40 = vsel %vm717_vm5, %v3055_v42, %v3054_v28  ;;  %v6195_v43 = vsub.f32 %v6109_v24, %v2980_v23  ;;  %v6198_v14 = vsub.f32 %v6114_v59, %v2981_v2  ;;  %v6202_v17 = vsub.f32 %v6117_v33, %v2982_v9 }
0x129e   :  { %v3058_v21 = vsel %vm720_vm6, %v3057_v22, %v3056_v40  ;;  %v3024_v63 = vmul.f32 %v6181_v36, %v6181_v36  ;;  %v3025_v12 = vmul.f32 %v6185_v25, %v6185_v25  ;;  %v3026_v24 = vmul.f32 %v6188_v30, %v6188_v30  ;;  %v4457_v22 = vld [vmem:[%s6726_s11 + $0x10] sm:$0xff] }
0x129f   :  { %v3060_v50 = vsel %vm723_vm7, %v3059_v31, %v3058_v21  ;;  %v3027_v59 = vmul.f32 %v6191_v1, %v6191_v1  ;;  %v3023_v15 = vmul.f32 %v6178_v61, %v6178_v61  ;;  %v3028_v33 = vmul.f32 %v6195_v43, %v6195_v43 }
0x12a0   :  { %v3077_v60 = vsel %vm470_vm0, %v3060_v50, 0.0  ;;  %v3061_v8 = vrot.slane %v3024_v63, 7  ;;  %v3063_v46 = vrot.slane %v3025_v12, 6  ;;  %v3029_v53 = vmul.f32 %v6198_v14, %v6198_v14  ;;  %3302 = vmatpush.bf16.msrb.mxu0 %v4457_v22  ;;  %v6245_v50 = vld [vmem:[%s6725_s10 + $0x1] ss:$0 sm:$0xff] }
0x12a1   :  { %3078 = vadd.xlane.f32.xlu1 %v3077_v60  ;;  %v3030_v32 = vmul.f32 %v6202_v17, %v6202_v17  ;;  %v3065_v35 = vrot.slane %v3026_v24, 5  ;;  %v3067_v56 = vrot.slane %v3027_v59, 4  ;;  %v3069_v48 = vrot.slane %v3028_v33, 3 }
0x12a2   :  { %v3062_v57 = vsel %vm705_vm1, %v3061_v8, %v3023_v15  ;;  %v3071_v19 = vrot.slane %v3029_v53, 2 }
0x12a3   :  { %v3064_v44 = vsel %vm708_vm2, %v3063_v46, %v3062_v57  ;;  %v3073_v5 = vrot.slane %v3030_v32, 1 }
0x12a4   :  { %v3066_v37 = vsel %vm711_vm3, %v3065_v35, %v3064_v44 }
0x12a5   :  { %v3068_v47 = vsel %vm714_vm4, %v3067_v56, %v3066_v37 }
0x12a6   :  { %v3070_v13 = vsel %vm717_vm5, %v3069_v48, %v3068_v47 }
0x12a7   :  { %v3072_v58 = vsel %vm720_vm6, %v3071_v19, %v3070_v13 }
0x12a8   :  { %v3074_v45 = vsel %vm723_vm7, %v3073_v5, %v3072_v58  ;;  %v4465_v5 = vld [vmem:[%s6728_s13 + $0x70] sm:$0xff] }
0x12a9   :  { %v3080_v3 = vsel %vm470_vm0, %v3074_v45, 0.0 }
0x12aa   :  { %3081 = vadd.xlane.f32.xlu0 %v3080_v3 }
0x1314   :  { %v3079_v38 = vpop.xlane.xlu1 %3078 }
0x1315   :  { %v3083_v34 = vmul.f32 %v3079_v38, %v5337_v49 }
0x1317   :  { %v3085_v16 = vadd.f32 1e-05, %v3083_v34 }
0x1319   :  { %4612 = vrsqrt.f32 %v3085_v16  ;;  %vm3093_vm9 = vweird.f32 %v3085_v16 }
0x131d   :  { %v3082_v10 = vpop.xlane.xlu0 %3081 }
0x131e   :  { %v3084_v4 = vmul.f32 %v3082_v10, %v5337_v49 }
0x131f   :  { %v4613_v18 = vpop.eup %4612 }
0x1320   :  { %v3088_v42 = vmul.f32 %v4613_v18, %v3085_v16  ;;  %v3086_v31 = vadd.f32 1e-05, %v3084_v4  ;;  %vm3094_vm8 = vweird.f32 %v4613_v18 }
0x1321   :  { %vm3095_vm11 = vmor %vm3093_vm9, %vm3094_vm8 }
0x1322   :  { %v3089_v11 = vmul.f32 %v4613_v18, %v3088_v42  ;;  %4614 = vrsqrt.f32 %v3086_v31  ;;  %vm3103_vm13 = vweird.f32 %v3086_v31 }
0x1324   :  { %v3090_v52 = vmul.f32 0.5, %v3089_v11 }
0x1326   :  { %v3091_v39 = vsub.f32 1.5, %v3090_v52 }
0x1328   :  { %v3092_v29 = vmul.f32 %v4613_v18, %v3091_v39  ;;  %v4615_v7 = vpop.eup %4614 }
0x1329   :  { %v3098_v2 = vmul.f32 %v4615_v7, %v3086_v31  ;;  %vm3104_vm12 = vweird.f32 %v4615_v7  ;;  %v4464_v31 = vld [vmem:[%s6728_s13 + $0x68] sm:$0xff] }
0x132a   :  { %v3096_v23 = vsel %vm3095_vm11, %v4613_v18, %v3092_v29  ;;  %vm3105_vm14 = vmor %vm3103_vm13, %vm3104_vm12 }
0x132b   :  { %v3109_v28 = vrot.slane %v3096_v23, 1  ;;  %v3110_v9 = vrot.slane %v3096_v23, 2  ;;  %v3111_v40 = vrot.slane %v3096_v23, 3  ;;  %v3112_v21 = vrot.slane %v3096_v23, 4 }
0x132c   :  { %v3113_v63 = vrot.slane %v3096_v23, 5  ;;  %v3114_v12 = vrot.slane %v3096_v23, 6  ;;  %v3115_v60 = vrot.slane %v3096_v23, 7  ;;  %v3139_v24 = vmul.f32 %v3096_v23, %v6134_v51 }
0x132d   :  { %v3140_v59 = vmul.f32 %v3109_v28, %v6137_v41  ;;  %v3141_v15 = vmul.f32 %v3110_v9, %v6140_v54  ;;  %v3142_v33 = vmul.f32 %v3111_v40, %v6143_v0  ;;  %v3143_v8 = vmul.f32 %v3112_v21, %v6146_v20 }
0x132e   :  { %v3144_v46 = vmul.f32 %v3113_v63, %v6149_v27  ;;  %v3158_v53 = vmul.f32 %v6240_v62, %v3139_v24  ;;  %v3099_v32 = vmul.f32 %v4615_v7, %v3098_v2  ;;  %v3145_v57 = vmul.f32 %v3114_v12, %v6152_v55  ;;  %v4466_v55 = vld [vmem:[%s6728_s13 + $0x78] sm:$0xff] }
0x132f   :  { %v3159_v35 = vmul.f32 %v6240_v62, %v3140_v59  ;;  %v3160_v44 = vmul.f32 %v6240_v62, %v3141_v15  ;;  %v3161_v51 = vmul.f32 %v6240_v62, %v3142_v33  ;;  %v3162_v41 = vmul.f32 %v6240_v62, %v3143_v8  ;;  %3382 = vmatpush.bf16.msra.mxu1 %v4466_v55 }
0x1330   :  { %v6260_v54 = vadd.f32 %v6245_v50, %v3158_v53  ;;  %v3100_v0 = vmul.f32 0.5, %v3099_v32  ;;  %v3146_v20 = vmul.f32 %v3115_v60, %v6154_v6  ;;  %v3163_v27 = vmul.f32 %v6240_v62, %v3144_v46 }
0x1331   :  { %v6268_v56 = vadd.f32 %v6245_v50, %v3159_v35  ;;  %v6271_v37 = vadd.f32 %v6245_v50, %v3160_v44  ;;  %v3164_v48 = vmul.f32 %v6240_v62, %v3145_v57  ;;  %v6275_v47 = vadd.f32 %v6245_v50, %v3161_v51 }
0x1332   :  { %v3101_v19 = vsub.f32 1.5, %v3100_v0  ;;  %v3165_v6 = vmul.f32 %v6240_v62, %v3146_v20  ;;  %v6279_v13 = vadd.f32 %v6245_v50, %v3162_v41  ;;  %v6285_v58 = vadd.f32 %v6245_v50, %v3163_v27 }
0x1333   :  { %v6288_v45 = vadd.f32 %v6245_v50, %v3164_v48  ;;  %v3193_v3 = vpack.c.bf16 %v6260_v54, %v6260_v54  ;;  %v3194_v16 = vpack.c.bf16 %v6268_v56, %v6268_v56  ;;  %v3195_v10 = vpack.c.bf16 %v6271_v37, %v6271_v37  ;;  %3383 = vmatpush.bf16.msra.mxu1 %v4465_v5 }
0x1334   :  { %v3102_v38 = vmul.f32 %v4615_v7, %v3101_v19  ;;  %v6293_v34 = vadd.f32 %v6245_v50, %v3165_v6  ;;  %v3196_v26 = vpack.c.bf16 %v6275_v47, %v6275_v47  ;;  %v3197_v4 = vpack.c.bf16 %v6279_v13, %v6279_v13 }
0x1335   :  { %v3198_v42 = vpack.c.bf16 %v6285_v58, %v6285_v58  ;;  %v3199_v22 = vpack.c.bf16 %v6288_v45, %v6288_v45  ;;  %v3236_v35 = vunpack.c.l.b16 %v3194_v16  ;;  %v3237_v55 = vunpack.c.l.b16 %v3195_v10 }
0x1336   :  { %v3106_v18 = vsel %vm3105_vm14, %v4615_v7, %v3102_v38  ;;  %v3200_v44 = vpack.c.bf16 %v6293_v34, %v6293_v34  ;;  %v3235_v6 = vunpack.c.l.b16 %v3193_v3  ;;  %v3238_v5 = vunpack.c.l.b16 %v3196_v26 }
0x1337   :  { %v3116_v11 = vrot.slane %v3106_v18, 1  ;;  %v3117_v52 = vrot.slane %v3106_v18, 2  ;;  %v3118_v39 = vrot.slane %v3106_v18, 3  ;;  %v3119_v29 = vrot.slane %v3106_v18, 4  ;;  %3384 = vmatpush.bf16.msra.mxu1 %v4464_v31 }
0x1338   :  { %v3120_v23 = vrot.slane %v3106_v18, 5  ;;  %v3121_v7 = vrot.slane %v3106_v18, 6  ;;  %v3122_v2 = vrot.slane %v3106_v18, 7  ;;  %v3147_v28 = vmul.f32 %v3106_v18, %v6178_v61  ;;  %v4463_v61 = vld [vmem:[%s6728_s13 + $0x60] sm:$0xff] }
0x1339   :  { %v3148_v9 = vmul.f32 %v3116_v11, %v6181_v36  ;;  %v3149_v40 = vmul.f32 %v3117_v52, %v6185_v25  ;;  %v3150_v21 = vmul.f32 %v3118_v39, %v6188_v30  ;;  %v3151_v63 = vmul.f32 %v3119_v29, %v6191_v1 }
0x133a   :  { %v3152_v12 = vmul.f32 %v3120_v23, %v6195_v43  ;;  %v3166_v60 = vmul.f32 %v6240_v62, %v3147_v28  ;;  %v3153_v24 = vmul.f32 %v3121_v7, %v6198_v14  ;;  %v3154_v59 = vmul.f32 %v3122_v2, %v6202_v17 }
0x133b   :  { %v3167_v36 = vmul.f32 %v6240_v62, %v3148_v9  ;;  %v3168_v25 = vmul.f32 %v6240_v62, %v3149_v40  ;;  %v3169_v30 = vmul.f32 %v6240_v62, %v3150_v21  ;;  %v3170_v1 = vmul.f32 %v6240_v62, %v3151_v63  ;;  %3385 = vmatpush.bf16.msra.mxu1 %v4463_v61 }
0x133c   :  { %v6327_v43 = vadd.f32 %v6245_v50, %v3166_v60  ;;  %v3171_v14 = vmul.f32 %v6240_v62, %v3152_v12  ;;  %v3172_v17 = vmul.f32 %v6240_v62, %v3153_v24  ;;  %v3173_v15 = vmul.f32 %v6240_v62, %v3154_v59 }
0x133d   :  { %v6333_v33 = vadd.f32 %v6245_v50, %v3167_v36  ;;  %v6336_v8 = vadd.f32 %v6245_v50, %v3168_v25  ;;  %v6339_v46 = vadd.f32 %v6245_v50, %v3169_v30  ;;  %v6342_v53 = vadd.f32 %v6245_v50, %v3170_v1 }
0x133e   :  { %v6345_v32 = vadd.f32 %v6245_v50, %v3171_v14  ;;  %v6348_v57 = vadd.f32 %v6245_v50, %v3172_v17  ;;  %v6351_v62 = vadd.f32 %v6245_v50, %v3173_v15  ;;  %v3201_v20 = vpack.c.bf16 %v6327_v43, %v6327_v43 }
0x133f   :  { %v3202_v51 = vpack.c.bf16 %v6333_v33, %v6333_v33  ;;  %v3203_v41 = vpack.c.bf16 %v6336_v8, %v6336_v8  ;;  %v3204_v0 = vpack.c.bf16 %v6339_v46, %v6339_v46  ;;  %v3205_v50 = vpack.c.bf16 %v6342_v53, %v6342_v53 }
0x1340   :  { %v3206_v27 = vpack.c.bf16 %v6345_v32, %v6345_v32  ;;  %v3207_v48 = vpack.c.bf16 %v6348_v57, %v6348_v57  ;;  %v3208_v19 = vpack.c.bf16 %v6351_v62, %v6351_v62  ;;  %v3239_v38 = vunpack.c.l.b16 %v3197_v4 }
0x1341   :  { %v3240_v16 = vunpack.c.l.b16 %v3198_v42  ;;  %v3244_v18 = vunpack.c.l.b16 %v3202_v51  ;;  %v3245_v31 = vunpack.c.l.b16 %v3203_v41  ;;  %v3241_v11 = vunpack.c.l.b16 %v3199_v22 }
0x1342   :  { %v3242_v52 = vunpack.c.l.b16 %v3200_v44  ;;  %v3246_v39 = vunpack.c.l.b16 %v3204_v0  ;;  %v3251_v29 = vrot.slane %v3236_v35, 7  ;;  %v3243_v23 = vunpack.c.l.b16 %v3201_v20 }
0x1343   :  { %v3247_v7 = vunpack.c.l.b16 %v3205_v50  ;;  %v3248_v2 = vunpack.c.l.b16 %v3206_v27  ;;  %v3253_v10 = vrot.slane %v3237_v55, 6  ;;  %v3249_v28 = vunpack.c.l.b16 %v3207_v48  ;;  %v4462_v27 = vld [vmem:[%s6728_s13 + $0x58] sm:$0xff]  ;;  %v4461_v55 = vld [vmem:[%s6728_s13 + $0x50] sm:$0xff]  ;;  %v4460_v48 = vld [vmem:[%s6728_s13 + $0x48] sm:$0xff] }
0x1344   :  { %v3252_v9 = vsel %vm705_vm1, %v3251_v29, %v3235_v6  ;;  %v3255_v40 = vrot.slane %v3238_v5, 5  ;;  %v3265_v21 = vrot.slane %v3244_v18, 7  ;;  %v3250_v63 = vunpack.c.l.b16 %v3208_v19  ;;  %3386 = vmatpush.bf16.msra.mxu1 %v4462_v27  ;;  %v4459_v19 = vld [vmem:[%s6728_s13 + $0x40] sm:$0xff] }
0x1345   :  { %v3254_v3 = vsel %vm708_vm2, %v3253_v10, %v3252_v9  ;;  %v3257_v26 = vrot.slane %v3239_v38, 4  ;;  %v3267_v4 = vrot.slane %v3245_v31, 6  ;;  %v3259_v22 = vrot.slane %v3240_v16, 3  ;;  %v4532_v5 = vld [vmem:[%s6727_s12 + $0x1] ss:$0 sm:$0xff]  ;;  %s4138_s12 = sshll.u32 %s6736_s21, 4  ;;  %s4139_s12 = int_to_ptr.hbm [resolvable:$true] %s4138_s12 }
0x1346   :  { %v3256_v42 = vsel %vm711_vm3, %v3255_v40, %v3254_v3  ;;  %v3266_v12 = vsel %vm705_vm1, %v3265_v21, %v3243_v23  ;;  %v3269_v60 = vrot.slane %v3246_v39, 5  ;;  %v3261_v59 = vrot.slane %v3241_v11, 2  ;;  %v4533_v39 = vld [vmem:[%s6729_s14 + $0x1] ss:$0 sm:$0xff] }
0x1347   :  { %v3258_v24 = vsel %vm714_vm4, %v3257_v26, %v3256_v42  ;;  %v3268_v61 = vsel %vm708_vm2, %v3267_v4, %v3266_v12  ;;  %v3271_v36 = vrot.slane %v3247_v7, 4  ;;  %v3273_v1 = vrot.slane %v3248_v2, 3 }
0x1348   :  { %v3260_v25 = vsel %vm717_vm5, %v3259_v22, %v3258_v24  ;;  %v3270_v30 = vsel %vm711_vm3, %v3269_v60, %v3268_v61  ;;  %v3275_v15 = vrot.slane %v3249_v28, 2  ;;  %v3263_v35 = vrot.slane %v3242_v52, 1  ;;  %3387 = vmatpush.bf16.msra.mxu1 %v4461_v55 }
0x1349   :  { %v3262_v14 = vsel %vm720_vm6, %v3261_v59, %v3260_v25  ;;  %v3272_v17 = vsel %vm714_vm4, %v3271_v36, %v3270_v30  ;;  %v3277_v51 = vrot.slane %v3250_v63, 1 }
0x134a   :  { %v3274_v44 = vsel %vm717_vm5, %v3273_v1, %v3272_v17  ;;  %v3264_v0 = vsel %vm723_vm7, %v3263_v35, %v3262_v14 }
0x134b   :  { %v3276_v41 = vsel %vm720_vm6, %v3275_v15, %v3274_v44 }
0x134c   :  { %v3278_v20 = vsel %vm723_vm7, %v3277_v51, %v3276_v41  ;;  %3388 = vmatpush.bf16.msra.mxu1 %v4460_v48 }
0x134d   :  { %v3279_v50 = vpack.c.b16 %v3278_v20, %v3264_v0 }
0x134f   :  { %4274 = vmatmul.msk.bf16.vlgmr.msrb.gmra.mxu0 %vm470_vm0, %v3279_v50 }
0x1350   :  { %3389 = vmatpush.bf16.msra.mxu1 %v4459_v19 }
0x13cc   :  { %v3304_v6 = vpop.f32.mrf.mxu0 }
0x13cd   :  { %v3305_v38 = vadd.f32 %v4532_v5, %v3304_v6 }
0x13cf   :  { %v3309_v31 = vmax.f32 %v3305_v38, 0.0 }
0x13d4   :  { %v3306_v16 = vpop.f32.mrf.mxu0 }
0x13d5   :  { %v3307_v18 = vadd.f32 %v4532_v5, %v3306_v16 }
0x13d7   :  { %v3310_v11 = vmax.f32 %v3307_v18, 0.0 }
0x13d9   :  { %v3311_v52 = vpack.c.bf16 %v3310_v11, %v3309_v31 }
0x13db   :  { %3390 = vmatmul.bf16.vlgmr.msra.gmra.mxu1 %v3311_v52 }
0x1458   :  { %v3391_v29 = vpop.f32.mrf.mxu1 }
0x1459   :  { %v3392_v23 = vadd.f32 %v4533_v39, %v3391_v29 }
0x145b   :  { %v3398_v7 = vrot.slane %v3392_v23, 1  ;;  %v3399_v2 = vrot.slane %v3392_v23, 2  ;;  %v3400_v28 = vrot.slane %v3392_v23, 3  ;;  %v6412_v63 = vadd.f32 %v3392_v23, %v6260_v54 }
0x145c   :  { %v3401_v26 = vrot.slane %v3392_v23, 4  ;;  %v3402_v61 = vrot.slane %v3392_v23, 5 }
0x145d   :  { %v6405_v10 = vadd.f32 %v3398_v7, %v6268_v56  ;;  %v6408_v9 = vadd.f32 %v3399_v2, %v6271_v37  ;;  %v6415_v4 = vadd.f32 %v3400_v28, %v6275_v47 }
0x145e   :  { %v6425_v1 = vadd.f32 %v3401_v26, %v6279_v13 }
0x145f   :  { %v3464_v40 = vrot.slane %v6405_v10, 7  ;;  %v3466_v56 = vrot.slane %v6408_v9, 6  ;;  %v3468_v17 = vrot.slane %v6415_v4, 5 }
0x1460   :  { %v3393_v21 = vpop.f32.mrf.mxu1 }
0x1461   :  { %v3394_v3 = vadd.f32 %v4533_v39, %v3393_v21  ;;  %v3465_v42 = vsel %vm705_vm1, %v3464_v40, %v6412_v63 }
0x1462   :  { %v3467_v14 = vsel %vm708_vm2, %v3466_v56, %v3465_v42 }
0x1463   :  { %v3405_v22 = vrot.slane %v3394_v3, 1  ;;  %v3406_v12 = vrot.slane %v3394_v3, 2  ;;  %v3407_v37 = vrot.slane %v3394_v3, 3  ;;  %v3408_v60 = vrot.slane %v3394_v3, 4 }
0x1464   :  { %v3409_v24 = vrot.slane %v3394_v3, 5  ;;  %v3410_v59 = vrot.slane %v3394_v3, 6  ;;  %v3411_v36 = vrot.slane %v3394_v3, 7  ;;  %v3436_v15 = vadd.f32 %v3394_v3, %v6327_v43 }
0x1465   :  { %v3437_v54 = vadd.f32 %v3405_v22, %v6333_v33  ;;  %v3438_v25 = vadd.f32 %v3406_v12, %v6336_v8  ;;  %v3439_v47 = vadd.f32 %v3407_v37, %v6339_v46  ;;  %v3440_v30 = vadd.f32 %v3408_v60, %v6342_v53 }
0x1466   :  { %v3441_v35 = vadd.f32 %v3409_v24, %v6345_v32  ;;  %v3442_v33 = vadd.f32 %v3410_v59, %v6348_v57  ;;  %v3403_v8 = vrot.slane %v3392_v23, 6  ;;  %v6433_v46 = vadd.f32 %v3402_v61, %v6285_v58 }
0x1467   :  { %v3478_v44 = vrot.slane %v3437_v54, 7  ;;  %v3480_v51 = vrot.slane %v3438_v25, 6  ;;  %v3443_v53 = vadd.f32 %v3411_v36, %v6351_v62  ;;  %v3482_v41 = vrot.slane %v3439_v47, 5 }
0x1468   :  { %v3469_v0 = vsel %vm711_vm3, %v3468_v17, %v3467_v14  ;;  %v3484_v43 = vrot.slane %v3440_v30, 4  ;;  %v3470_v32 = vrot.slane %v6425_v1, 4  ;;  %v3486_v27 = vrot.slane %v3441_v35, 3 }
0x1469   :  { %v3479_v13 = vsel %vm705_vm1, %v3478_v44, %v3436_v15  ;;  %v3404_v57 = vrot.slane %v3392_v23, 7  ;;  %v3488_v58 = vrot.slane %v3442_v33, 2  ;;  %v6443_v48 = vadd.f32 %v3403_v8, %v6288_v45 }
0x146a   :  { %v3481_v20 = vsel %vm708_vm2, %v3480_v51, %v3479_v13  ;;  %v3471_v62 = vsel %vm714_vm4, %v3470_v32, %v3469_v0  ;;  %v3490_v6 = vrot.slane %v3443_v53, 1  ;;  %v3472_v5 = vrot.slane %v6433_v46, 3 }
0x146b   :  { %v3483_v50 = vsel %vm711_vm3, %v3482_v41, %v3481_v20  ;;  %v6451_v18 = vadd.f32 %v3404_v57, %v6293_v34  ;;  %v3474_v45 = vrot.slane %v6443_v48, 2 }
0x146c   :  { %v3485_v55 = vsel %vm714_vm4, %v3484_v43, %v3483_v50  ;;  %v3473_v31 = vsel %vm717_vm5, %v3472_v5, %v3471_v62 }
0x146d   :  { %v3487_v19 = vsel %vm717_vm5, %v3486_v27, %v3485_v55  ;;  %v3475_v52 = vsel %vm720_vm6, %v3474_v45, %v3473_v31  ;;  %v3476_v39 = vrot.slane %v6451_v18, 1 }
0x146e   :  { %v3489_v38 = vsel %vm720_vm6, %v3488_v58, %v3487_v19 }
0x146f   :  { %v3491_v16 = vsel %vm723_vm7, %v3490_v6, %v3489_v38  ;;  %v3477_v29 = vsel %vm723_vm7, %v3476_v39, %v3475_v52 }
0x1470   :  { %v3497_v11 = vsel %vm470_vm0, %v3491_v16, 0.0  ;;  %v3494_v23 = vsel %vm470_vm0, %v3477_v29, 0.0 }
0x1471   :  { %3498 = vadd.xlane.f32.xlu0 %v3497_v11 }
0x1479   :  { %3495 = vadd.xlane.f32.xlu0 %v3494_v23 }
0x14e4   :  { %v3499_v7 = vpop.xlane.xlu0 %3498 }
0x14e5   :  { %v3501_v34 = vmul.f32 %v3499_v7, %v5337_v49 }
0x14e7   :  { %v3511_v2 = vrot.slane %v3501_v34, 1  ;;  %v3512_v28 = vrot.slane %v3501_v34, 2  ;;  %v3513_v40 = vrot.slane %v3501_v34, 3  ;;  %v3514_v21 = vrot.slane %v3501_v34, 4 }
0x14e8   :  { %v3515_v3 = vrot.slane %v3501_v34, 5  ;;  %v3516_v26 = vrot.slane %v3501_v34, 6  ;;  %v3517_v42 = vrot.slane %v3501_v34, 7  ;;  %v6461_v56 = vsub.f32 %v3436_v15, %v3501_v34 }
0x14e9   :  { %v6463_v22 = vsub.f32 %v3437_v54, %v3511_v2  ;;  %v6465_v12 = vsub.f32 %v3438_v25, %v3512_v28  ;;  %v6467_v37 = vsub.f32 %v3439_v47, %v3513_v40  ;;  %v6469_v60 = vsub.f32 %v3440_v30, %v3514_v21 }
0x14ea   :  { %v6471_v24 = vsub.f32 %v3441_v35, %v3515_v3  ;;  %v6473_v59 = vsub.f32 %v3442_v33, %v3516_v26  ;;  %v6475_v61 = vsub.f32 %v3443_v53, %v3517_v42  ;;  %v3558_v30 = vmul.f32 %v6461_v56, %v6461_v56 }
0x14eb   :  { %v3559_v36 = vmul.f32 %v6463_v22, %v6463_v22  ;;  %v3560_v14 = vmul.f32 %v6465_v12, %v6465_v12  ;;  %v3561_v54 = vmul.f32 %v6467_v37, %v6467_v37  ;;  %v3562_v25 = vmul.f32 %v6469_v60, %v6469_v60 }
0x14ec   :  { %v3496_v47 = vpop.xlane.xlu0 %3495  ;;  %v3563_v17 = vmul.f32 %v6471_v24, %v6471_v24  ;;  %v3564_v15 = vmul.f32 %v6473_v59, %v6473_v59  ;;  %v3565_v44 = vmul.f32 %v6475_v61, %v6475_v61 }
0x14ed   :  { %v3500_v35 = vmul.f32 %v3496_v47, %v5337_v49  ;;  %v3596_v51 = vrot.slane %v3559_v36, 7  ;;  %v3598_v33 = vrot.slane %v3560_v14, 6  ;;  %v3600_v8 = vrot.slane %v3561_v54, 5 }
0x14ee   :  { %v3602_v53 = vrot.slane %v3562_v25, 4  ;;  %v3604_v13 = vrot.slane %v3563_v17, 3  ;;  %v3606_v41 = vrot.slane %v3564_v15, 2  ;;  %v3608_v45 = vrot.slane %v3565_v44, 1 }
0x14ef   :  { %v3597_v0 = vsel %vm705_vm1, %v3596_v51, %v3558_v30  ;;  %v3504_v20 = vrot.slane %v3500_v35, 1  ;;  %v3505_v43 = vrot.slane %v3500_v35, 2  ;;  %v3506_v32 = vrot.slane %v3500_v35, 3 }
0x14f0   :  { %v3599_v50 = vsel %vm708_vm2, %v3598_v33, %v3597_v0  ;;  %v3507_v27 = vrot.slane %v3500_v35, 4  ;;  %v3508_v57 = vrot.slane %v3500_v35, 5  ;;  %v3509_v55 = vrot.slane %v3500_v35, 6  ;;  %v4468_v33 = vld [vmem:[%s6732_s17 + $0x8] sm:$0xff]  ;;  %v4469_v0 = vld [vmem:[%s6732_s17 + $0x10] sm:$0xff] }
0x14f1   :  { %v3601_v58 = vsel %vm711_vm3, %v3600_v8, %v3599_v50  ;;  %v3510_v62 = vrot.slane %v3500_v35, 7  ;;  %v6498_v19 = vsub.f32 %v6412_v63, %v3500_v35  ;;  %v6501_v6 = vsub.f32 %v6405_v10, %v3504_v20  ;;  %v4470_v8 = vld [vmem:[%s6732_s17 + $0x18] sm:$0xff]  ;;  %3804 = vmatpush.bf16.msra.mxu3 %v4468_v33  ;;  %v4471_v20 = vld [vmem:[%s6732_s17 + $0x20] sm:$0xff] }
0x14f2   :  { %v3603_v5 = vsel %vm714_vm4, %v3602_v53, %v3601_v58  ;;  %v6505_v38 = vsub.f32 %v6408_v9, %v3505_v43  ;;  %v6508_v16 = vsub.f32 %v6415_v4, %v3506_v32  ;;  %v6511_v31 = vsub.f32 %v6425_v1, %v3507_v27  ;;  %v4472_v53 = vld [vmem:[%s6732_s17 + $0x28] sm:$0xff]  ;;  %3769 = vmatpush.bf16.msrb.mxu2 %v4470_v8  ;;  %v4479_v43 = vld [vmem:[%s6732_s17 + $0x60] sm:$0xff] }
0x14f3   :  { %v3605_v11 = vsel %vm717_vm5, %v3604_v13, %v3603_v5  ;;  %v6515_v63 = vsub.f32 %v6433_v46, %v3508_v57  ;;  %v6518_v10 = vsub.f32 %v6443_v48, %v3509_v55  ;;  %v6522_v9 = vsub.f32 %v6451_v18, %v3510_v62  ;;  %v4480_v13 = vld [vmem:[%s6732_s17 + $0x68] sm:$0xff]  ;;  %3846 = vmatpush.bf16.msra.mxu0 %v4472_v53 }
0x14f4   :  { %v3607_v52 = vsel %vm720_vm6, %v3606_v41, %v3605_v11  ;;  %v3551_v4 = vmul.f32 %v6501_v6, %v6501_v6  ;;  %v3552_v1 = vmul.f32 %v6505_v38, %v6505_v38  ;;  %v3553_v46 = vmul.f32 %v6508_v16, %v6508_v16  ;;  %v4467_v41 = vld [vmem:[%s6732_s17] sm:$0xff]  ;;  %4018 = vmatpush.bf16.msrb.mxu1 %v4480_v13 }
0x14f5   :  { %v3609_v39 = vsel %vm723_vm7, %v3608_v45, %v3607_v52  ;;  %v3554_v48 = vmul.f32 %v6511_v31, %v6511_v31  ;;  %v3550_v18 = vmul.f32 %v6498_v19, %v6498_v19  ;;  %v3555_v23 = vmul.f32 %v6515_v63, %v6515_v63  ;;  %3805 = vmatpush.bf16.msra.mxu3 %v4467_v41  ;;  %v4476_v52 = vld [vmem:[%s6732_s17 + $0x48] sm:$0xff] }
0x14f6   :  { %v3615_v29 = vsel %vm470_vm0, %v3609_v39, 0.0  ;;  %v3582_v7 = vrot.slane %v3551_v4, 7  ;;  %v3556_v34 = vmul.f32 %v6518_v10, %v6518_v10  ;;  %v3584_v2 = vrot.slane %v3552_v1, 6  ;;  %3770 = vmatpush.bf16.msrb.mxu2 %v4469_v0  ;;  %v4478_v4 = vld [vmem:[%s6732_s17 + $0x58] sm:$0xff] }
0x14f7   :  { %3616 = vadd.xlane.f32.xlu0 %v3615_v29  ;;  %v3557_v28 = vmul.f32 %v6522_v9, %v6522_v9  ;;  %v3586_v21 = vrot.slane %v3553_v46, 5  ;;  %v3588_v26 = vrot.slane %v3554_v48, 4  ;;  %v3590_v36 = vrot.slane %v3555_v23, 3  ;;  %3847 = vmatpush.bf16.msra.mxu0 %v4471_v20  ;;  %v6590_v46 = vld [vmem:[%s6730_s15 + $0x1] ss:$0 sm:$0xff]  ;;  %v4473_v29 = vld [vmem:[%s6732_s17 + $0x30] sm:$0xff] }
0x14f8   :  { %v3583_v40 = vsel %vm705_vm1, %v3582_v7, %v3550_v18  ;;  %v3592_v54 = vrot.slane %v3556_v34, 2  ;;  %4019 = vmatpush.bf16.msrb.mxu1 %v4479_v43  ;;  %v4475_v48 = vld [vmem:[%s6732_s17 + $0x40] sm:$0xff]  ;;  %v4477_v23 = vld [vmem:[%s6732_s17 + $0x50] sm:$0xff] }
0x14f9   :  { %v3585_v3 = vsel %vm708_vm2, %v3584_v2, %v3583_v40  ;;  %v3594_v47 = vrot.slane %v3557_v28, 1  ;;  %3932 = vmatpush.bf16.msrb.mxu3 %v4476_v52  ;;  %v6609_v40 = vld [vmem:[%s6766_s1 + $0x1] ss:$0 sm:$0xff] }
0x14fa   :  { %v3587_v42 = vsel %vm711_vm3, %v3586_v21, %v3585_v3 }
0x14fb   :  { %v3589_v14 = vsel %vm714_vm4, %v3588_v26, %v3587_v42  ;;  %3975 = vmatpush.bf16.msrb.mxu0 %v4478_v4 }
0x14fc   :  { %v3591_v25 = vsel %vm717_vm5, %v3590_v36, %v3589_v14 }
0x14fd   :  { %v3593_v30 = vsel %vm720_vm6, %v3592_v54, %v3591_v25  ;;  %3933 = vmatpush.bf16.msrb.mxu3 %v4475_v48 }
0x14fe   :  { %v3595_v17 = vsel %vm723_vm7, %v3594_v47, %v3593_v30 }
0x14ff   :  { %v3612_v15 = vsel %vm470_vm0, %v3595_v17, 0.0  ;;  %3976 = vmatpush.bf16.msrb.mxu0 %v4477_v23 }
0x1500   :  { %3613 = vadd.xlane.f32.xlu2 %v3612_v15 }
0x156a   :  { %v3617_v35 = vpop.xlane.xlu0 %3616 }
0x156b   :  { %v3619_v44 = vmul.f32 %v3617_v35, %v5337_v49 }
0x156d   :  { %v3621_v51 = vadd.f32 1e-05, %v3619_v44 }
0x156f   :  { %4616 = vrsqrt.f32 %v3621_v51  ;;  %vm3638_vm3 = vweird.f32 %v3621_v51 }
0x1573   :  { %v3614_v32 = vpop.xlane.xlu2 %3613 }
0x1574   :  { %v3618_v50 = vmul.f32 %v3614_v32, %v5337_v49  ;;  %v4474_v49 = vld [vmem:[%s6732_s17 + $0x38] sm:$0xff] }
0x1575   :  { %v4617_v27 = vpop.eup %4616  ;;  %3889 = vmatpush.bf16.msra.mxu2 %v4474_v49 }
0x1576   :  { %v3633_v57 = vmul.f32 %v4617_v27, %v3621_v51  ;;  %v3620_v55 = vadd.f32 1e-05, %v3618_v50  ;;  %vm3639_vm2 = vweird.f32 %v4617_v27 }
0x1577   :  { %vm3640_vm4 = vmor %vm3638_vm3, %vm3639_vm2 }
0x1578   :  { %v3634_v58 = vmul.f32 %v4617_v27, %v3633_v57  ;;  %4618 = vrsqrt.f32 %v3620_v55  ;;  %vm3628_vm6 = vweird.f32 %v3620_v55 }
0x1579   :  { %3890 = vmatpush.bf16.msra.mxu2 %v4473_v29 }
0x157a   :  { %v3635_v62 = vmul.f32 0.5, %v3634_v58 }
0x157c   :  { %v3636_v5 = vsub.f32 1.5, %v3635_v62 }
0x157e   :  { %v4619_v11 = vpop.eup %4618  ;;  %v3637_v45 = vmul.f32 %v4617_v27, %v3636_v5 }
0x157f   :  { %v3623_v1 = vmul.f32 %v4619_v11, %v3620_v55  ;;  %vm3629_vm5 = vweird.f32 %v4619_v11 }
0x1580   :  { %v6585_v39 = vsel %vm3640_vm4, %v4617_v27, %v3637_v45  ;;  %vm3630_vm7 = vmor %vm3628_vm6, %vm3629_vm5 }
0x1581   :  { %v3652_v18 = vrot.slane %v6585_v39, 2  ;;  %v3682_v7 = vmul.f32 %v6585_v39, %v6461_v56  ;;  %v3624_v34 = vmul.f32 %v4619_v11, %v3623_v1  ;;  %v3651_v2 = vrot.slane %v6585_v39, 1 }
0x1582   :  { %v3654_v21 = vrot.slane %v6585_v39, 4  ;;  %v3653_v56 = vrot.slane %v6585_v39, 3  ;;  %v3655_v36 = vrot.slane %v6585_v39, 5  ;;  %v3656_v14 = vrot.slane %v6585_v39, 6 }
0x1583   :  { %v3684_v28 = vmul.f32 %v3652_v18, %v6465_v12  ;;  %v3625_v3 = vmul.f32 0.5, %v3624_v34  ;;  %v3701_v26 = vmul.f32 %v6590_v46, %v3682_v7  ;;  %v3683_v42 = vmul.f32 %v3651_v2, %v6463_v22 }
0x1584   :  { %v3688_v30 = vmul.f32 %v3656_v14, %v6473_v59  ;;  %v3686_v22 = vmul.f32 %v3654_v21, %v6469_v60  ;;  %v3685_v15 = vmul.f32 %v3653_v56, %v6467_v37  ;;  %v3687_v35 = vmul.f32 %v3655_v36, %v6471_v24 }
0x1585   :  { %v3703_v12 = vmul.f32 %v6590_v46, %v3684_v28  ;;  %v3626_v54 = vsub.f32 1.5, %v3625_v3  ;;  %v3702_v25 = vmul.f32 %v6590_v46, %v3683_v42  ;;  %v3720_v47 = vadd.f32 %v6609_v40, %v3701_v26 }
0x1586   :  { %v3707_v59 = vmul.f32 %v6590_v46, %v3688_v30  ;;  %v3705_v24 = vmul.f32 %v6590_v46, %v3686_v22  ;;  %v3704_v20 = vmul.f32 %v6590_v46, %v3685_v15  ;;  %v3706_v43 = vmul.f32 %v6590_v46, %v3687_v35  ;;  %v4482_v35 = vld [vmem:[%s6732_s17 + $0x78] sm:$0xff] }
0x1587   :  { %v3627_v17 = vmul.f32 %v4619_v11, %v3626_v54  ;;  %v3722_v44 = vadd.f32 %v6609_v40, %v3703_v12  ;;  %v3721_v33 = vadd.f32 %v6609_v40, %v3702_v25  ;;  %v3729_v53 = vpack.c.bf16 %v3720_v47, %v3720_v47 }
0x1588   :  { %v3726_v62 = vadd.f32 %v6609_v40, %v3707_v59  ;;  %v3724_v34 = vadd.f32 %v6609_v40, %v3705_v24  ;;  %v3723_v15 = vadd.f32 %v6609_v40, %v3704_v20 }
0x1589   :  { %v6625_v51 = vsel %vm3630_vm7, %v4619_v11, %v3627_v17  ;;  %v3812_v0 = vpack.c.bf16 %v3722_v44, %v3722_v44  ;;  %v3735_v57 = vpack.c.bf16 %v3721_v33, %v3721_v33  ;;  %v3779_v55 = vunpack.c.l.b16 %v3729_v53 }
0x158a   :  { %v3645_v8 = vrot.slane %v6625_v51, 2  ;;  %v3647_v60 = vrot.slane %v6625_v51, 4  ;;  %v3674_v13 = vmul.f32 %v6625_v51, %v6498_v19  ;;  %v3644_v37 = vrot.slane %v6625_v51, 1 }
0x158b   :  { %v3646_v32 = vrot.slane %v6625_v51, 3  ;;  %v3649_v58 = vrot.slane %v6625_v51, 6  ;;  %v3821_v49 = vunpack.c.l.b16 %v3812_v0  ;;  %v3984_v4 = vpack.c.bf16 %v3726_v62, %v3726_v62 }
0x158c   :  { %v3676_v41 = vmul.f32 %v3645_v8, %v6505_v38  ;;  %v3693_v50 = vmul.f32 %v6590_v46, %v3674_v13  ;;  %v3675_v27 = vmul.f32 %v3644_v37, %v6501_v6  ;;  %v3648_v38 = vrot.slane %v6625_v51, 5 }
0x158d   :  { %v3678_v5 = vmul.f32 %v3647_v60, %v6511_v31  ;;  %v3680_v6 = vmul.f32 %v3649_v58, %v6518_v10  ;;  %v3677_v1 = vmul.f32 %v3646_v32, %v6508_v16  ;;  %v3744_v18 = vunpack.c.l.b16 %v3735_v57  ;;  %v4481_v32 = vld [vmem:[%s6732_s17 + $0x70] sm:$0xff] }
0x158e   :  { %v3695_v19 = vmul.f32 %v6590_v46, %v3676_v41  ;;  %v3712_v11 = vadd.f32 %v6609_v40, %v3693_v50  ;;  %v3694_v45 = vmul.f32 %v6590_v46, %v3675_v27  ;;  %v3780_v23 = vrot.slane %v3779_v55, 7 }
0x158f   :  { %v3699_v31 = vmul.f32 %v6590_v46, %v3680_v6  ;;  %v3679_v2 = vmul.f32 %v3648_v38, %v6515_v63  ;;  %v3697_v3 = vmul.f32 %v6590_v46, %v3678_v5  ;;  %v3822_v26 = vrot.slane %v3821_v49, 7 }
0x1590   :  { %v3714_v52 = vadd.f32 %v6609_v40, %v3695_v19  ;;  %v3728_v48 = vpack.c.bf16 %v3712_v11, %v3712_v11  ;;  %v3713_v29 = vadd.f32 %v6609_v40, %v3694_v45  ;;  %v3993_v42 = vunpack.c.l.b16 %v3984_v4 }
0x1591   :  { %v3718_v16 = vadd.f32 %v6609_v40, %v3699_v31  ;;  %v3745_v12 = vrot.slane %v3744_v18, 7  ;;  %v3696_v14 = vmul.f32 %v6590_v46, %v3677_v1  ;;  %v3725_v63 = vadd.f32 %v6609_v40, %v3706_v43 }
0x1592   :  { %v3811_v7 = vpack.c.bf16 %v3714_v52, %v3714_v52  ;;  %v3778_v28 = vunpack.c.l.b16 %v3728_v48  ;;  %v3734_v21 = vpack.c.bf16 %v3713_v29, %v3713_v29  ;;  %v3716_v17 = vadd.f32 %v6609_v40, %v3697_v3  ;;  %v4486_v3 = vld [vmem:[%s6734_s19 + $0x18] sm:$0xff] }
0x1593   :  { %v3983_v47 = vpack.c.bf16 %v3718_v16, %v3718_v16  ;;  %v3994_v8 = vrot.slane %v3993_v42, 7  ;;  %v3898_v53 = vpack.c.bf16 %v3724_v34, %v3724_v34  ;;  %v3715_v59 = vadd.f32 %v6609_v40, %v3696_v14  ;;  %v4484_v14 = vld [vmem:[%s6734_s19 + $0x8] sm:$0xff] }
0x1594   :  { %v3820_v10 = vunpack.c.l.b16 %v3811_v7  ;;  %v3781_v56 = vsel %vm705_vm1, %v3780_v23, %v3778_v28  ;;  %v3743_v36 = vunpack.c.l.b16 %v3734_v21  ;;  %v3698_v60 = vmul.f32 %v6590_v46, %v3679_v2 }
0x1595   :  { %v3782_v54 = vpack.c.b16 %v3781_v56, %v3781_v56  ;;  %v3992_v33 = vunpack.c.l.b16 %v3983_v47  ;;  %v3657_v13 = vrot.slane %v6585_v39, 7  ;;  %v3941_v24 = vpack.c.bf16 %v3725_v63, %v3725_v63  ;;  %v4483_v47 = vld [vmem:[%s6734_s19] sm:$0xff] }
0x1596   :  { %v3823_v25 = vsel %vm705_vm1, %v3822_v26, %v3820_v10  ;;  %v3746_v30 = vsel %vm705_vm1, %v3745_v12, %v3743_v36  ;;  %v3897_v0 = vpack.c.bf16 %v3716_v17, %v3716_v17  ;;  %v3855_v20 = vpack.c.bf16 %v3723_v15, %v3723_v15 }
0x1597   :  { %v3824_v22 = vpack.c.b16 %v3823_v25, %v3823_v25  ;;  %4347 = vmatmul.msk.bf16.vlgmr.msra.gmra.mxu3 %vm470_vm0, %v3782_v54  ;;  %v3747_v44 = vpack.c.b16 %v3746_v30, %v3746_v30  ;;  %v3995_v37 = vsel %vm705_vm1, %v3994_v8, %v3992_v33  ;;  %v3717_v43 = vadd.f32 %v6609_v40, %v3698_v60  ;;  %v4536_v60 = vld [vmem:[%s6733_s18] ss:$0 sm:$0xff] }
0x1598   :  { %v3996_v41 = vpack.c.b16 %v3995_v37, %v3995_v37  ;;  %v3650_v50 = vrot.slane %v6625_v51, 7  ;;  %v3907_v39 = vunpack.c.l.b16 %v3898_v53  ;;  %v3854_v27 = vpack.c.bf16 %v3715_v59, %v3715_v59  ;;  %4120 = vmatpush.bf16.msra.mxu3 %v4486_v3 }
0x1599   :  { %4360 = vmatmul.msk.bf16.vlgmr.msra.gmra.mxu0 %vm470_vm0, %v3824_v22  ;;  %4338 = vmatmul.msk.bf16.vlgmr.msrb.gmra.mxu2 %vm470_vm0, %v3747_v44  ;;  %v3940_v57 = vpack.c.bf16 %v3717_v43, %v3717_v43  ;;  %v3950_v55 = vunpack.c.l.b16 %v3941_v24  ;;  %v3689_v19 = vmul.f32 %v3657_v13, %v6475_v61  ;;  %v3906_v58 = vunpack.c.l.b16 %v3897_v0  ;;  %v4537_v43 = vld [vmem:[%s6735_s20] ss:$0 sm:$0xff] }
0x159a   :  { %4061 = vmatpush.bf16.msrb.mxu2 %v4482_v35  ;;  %4412 = vmatmul.msk.bf16.vlgmr.msrb.gmra.mxu1 %vm470_vm0, %v3996_v41  ;;  %v3864_v62 = vunpack.c.l.b16 %v3855_v20  ;;  %v3681_v5 = vmul.f32 %v3650_v50, %v6522_v9  ;;  %v3908_v11 = vrot.slane %v3907_v39, 7  ;;  %v3863_v45 = vunpack.c.l.b16 %v3854_v27 }
0x159b   :  { %v3949_v38 = vunpack.c.l.b16 %v3940_v57  ;;  %v3951_v52 = vrot.slane %v3950_v55, 7  ;;  %v3708_v6 = vmul.f32 %v6590_v46, %v3689_v19 }
0x159c   :  { %v3909_v49 = vsel %vm705_vm1, %v3908_v11, %v3906_v58  ;;  %v3865_v51 = vrot.slane %v3864_v62, 7  ;;  %v3700_v61 = vmul.f32 %v6590_v46, %v3681_v5 }
0x159d   :  { %v3952_v4 = vsel %vm705_vm1, %v3951_v52, %v3949_v38  ;;  %v3910_v48 = vpack.c.b16 %v3909_v49, %v3909_v49  ;;  %v3727_v18 = vadd.f32 %v6609_v40, %v3708_v6 }
0x159e   :  { %4062 = vmatpush.bf16.msrb.mxu2 %v4481_v32  ;;  %v3866_v1 = vsel %vm705_vm1, %v3865_v51, %v3863_v45  ;;  %v3953_v29 = vpack.c.b16 %v3952_v4, %v3952_v4  ;;  %v3719_v23 = vadd.f32 %v6609_v40, %v3700_v61  ;;  %v4485_v40 = vld [vmem:[%s6734_s19 + $0x10] sm:$0xff] }
0x159f   :  { %v3867_v9 = vpack.c.b16 %v3866_v1, %v3866_v1  ;;  %v4027_v7 = vpack.c.bf16 %v3727_v18, %v3727_v18  ;;  %4121 = vmatpush.bf16.msra.mxu3 %v4485_v40 }
0x15a0   :  { %v4026_v31 = vpack.c.bf16 %v3719_v23, %v3719_v23 }
0x15a1   :  { %v4036_v34 = vunpack.c.l.b16 %v4027_v7 }
0x15a2   :  { %v4035_v2 = vunpack.c.l.b16 %v4026_v31 }
0x15a3   :  { %v4037_v28 = vrot.slane %v4036_v34, 7  ;;  %4122 = vmatpush.bf16.msra.mxu3 %v4484_v14 }
0x15a5   :  { %v4038_v46 = vsel %vm705_vm1, %v4037_v28, %v4035_v2  ;;  %vm4129_vm1 = vcmask 25600  }
0x15a6   :  { %v4039_v21 = vpack.c.b16 %v4038_v46, %v4038_v46 }
0x15a7   :  { %4386 = vmatmul.msk.bf16.vlgmr.msrb.gmra.mxu3 %vm470_vm0, %v3910_v48 }
0x15a8   :  { %4123 = vmatpush.bf16.msra.mxu3 %v4483_v47 }
0x15a9   :  { %4399 = vmatmul.msk.bf16.vlgmr.msrb.gmra.mxu0 %vm470_vm0, %v3953_v29  ;;  %4373 = vmatmul.msk.bf16.vlgmr.msra.gmra.mxu2 %vm470_vm0, %v3867_v9 }
0x15b9   :  { %4425 = vmatmul.msk.bf16.vlgmr.msrb.gmra.mxu2 %vm470_vm0, %v4039_v21  ;;  %vm4112_vm0 = vcmask 523264  }
0x1616   :  { %v3849_v10 = vpop.f32.mrf.mxu0 }
0x1617   :  { %v4021_v26 = vpop.f32.mrf.mxu1 }
0x161a   :  { %v3807_v16 = vpop.f32.mrf.mxu3 }
0x161c   :  { %v3772_v42 = vpop.f32.mrf.mxu2 }
0x161d   :  { %v3808_v63 = vadd.f32 %v3807_v16, %v3772_v42 }
0x161e   :  { %v3851_v56 = vpop.f32.mrf.mxu0 }
0x161f   :  { %v4023_v36 = vpop.f32.mrf.mxu1  ;;  %v3853_v17 = vadd.f32 %v3849_v10, %v3808_v63 }
0x1622   :  { %v3809_v12 = vpop.f32.mrf.mxu3 }
0x1624   :  { %v3774_v54 = vpop.f32.mrf.mxu2 }
0x1626   :  { %v3978_v25 = vpop.f32.mrf.mxu0 }
0x162a   :  { %v3935_v30 = vpop.f32.mrf.mxu3 }
0x162c   :  { %v3892_v22 = vpop.f32.mrf.mxu2 }
0x162d   :  { %v3896_v35 = vadd.f32 %v3892_v22, %v3853_v17 }
0x162e   :  { %v3980_v15 = vpop.f32.mrf.mxu0 }
0x162f   :  { %v3939_v33 = vadd.f32 %v3935_v30, %v3896_v35 }
0x1631   :  { %v3982_v53 = vadd.f32 %v3978_v25, %v3939_v33 }
0x1632   :  { %v3937_v44 = vpop.f32.mrf.mxu3 }
0x1633   :  { %v4025_v59 = vadd.f32 %v4021_v26, %v3982_v53 }
0x1634   :  { %v3894_v8 = vpop.f32.mrf.mxu2 }
0x163c   :  { %v4064_v13 = vpop.f32.mrf.mxu2 }
0x163d   :  { %v4068_v37 = vadd.f32 %v4064_v13, %v4025_v59 }
0x163f   :  { %v4073_v24 = vadd.f32 %v4536_v60, %v4068_v37 }
0x1641   :  { %v4074_v41 = vmax.f32 %v4073_v24, 0.0 }
0x1643   :  { %v4075_v0 = vpack.c.bf16 %v4074_v41, %v4074_v41 }
0x1644   :  { %v4066_v20 = vpop.f32.mrf.mxu2 }
0x1645   :  { %4442 = vmatmul.msk.bf16.vlgmr.msra.gmra.mxu3 %vm4112_vm0, %v4075_v0 }
0x16c8   :  { %v4125_v32 = vpop.f32.mrf.mxu3 }
0x16c9   :  { %v4126_v50 = vadd.f32 %v4537_v43, %v4125_v32 }
0x16cb   :  { %4130 = vst.msk [vmem:[#allocation2] sm:$0x3] %vm4129_vm1, %v4126_v50 }
0x16cc   :  { %4141 = dma.vmem_to_hbm [thread:$0]  %s4137_s25, 32, %s4139_s12, [#allocation3]  }
0x16d0   :  { %v4127_v39 = vpop.f32.mrf.mxu3 }
0x16d1   :  { %4644 = dma.done.wait [#allocation3], 32  }
0x16d2   :  { %4645 = vsyncadd [#allocation3], 4294967264 }
0x16d3   :  { %4146 = vsyncpa [#allocation3], 1 }

</bundles_post_ra>
